<compile_context>
chip_gen: v7x
topology: tpu7x:2x2x1
jax: 0.10.0
libtpu: 0.0.40
codegen_flags: <defaults>
</compile_context>

<pallas_src>
import functools

import jax
import jax.numpy as jnp
from jax.experimental import pallas as pl
from jax.experimental.pallas import tpu as pltpu

_LANE = 128
_VMEM = pl.BlockSpec(memory_space=pltpu.MemorySpace.VMEM)
_INPUT_SIZES = (56, 28, 14)          # fixed by MultiScaleNetwork.__init__


def _round_up(n, m):
    return (n + m - 1) // m * m


# ------------------------------ kernel helpers -------------------------------

def _gelu(x):
    # TODO(synk): nn.GELU() defaults to the exact erf formulation; erf has no
    # Mosaic TPU lowering, so the tanh approximation is used (EUP slot, max
    # abs deviation from erf-GELU ~1e-3).
    c = 0.7978845608028654  # sqrt(2/pi)
    return 0.5 * x * (1.0 + jnp.tanh(c * (x + 0.044715 * x * x * x)))


def _masked_layernorm(x, g, b, mask, n_valid, eps=1e-5):
    """PyTorch nn.LayerNorm over the first `n_valid` lanes of a 128-lane tile.

    x : (B,128) f32 with lanes >= n_valid equal to 0.
    g/b : (1,128) f32 zero-padded past n_valid, so padded output lanes stay 0.
    Biased variance, eps inside the sqrt (matches nn.LayerNorm).
    """
    inv_n = 1.0 / n_valid
    mu = jnp.sum(x * mask, axis=-1, keepdims=True) * inv_n
    d = (x - mu) * mask
    var = jnp.sum(d * d, axis=-1, keepdims=True) * inv_n
    return (x - mu) * jax.lax.rsqrt(var + eps) * g + b


def _make_kernel(layout):
    """Builds the fused whole-network kernel with the static layout closed over."""
    num_classes = layout["num_classes"]

    def kernel(x_ref, w_ref, b_ref, out_ref):
        def vec(r):                          # one packed (1,128) f32 bias/LN row
            return b_ref[r:r + 1, :]

        def mm(a, w_row0, w_rows):           # bf16 MXU matmul, f32 accumulation
            if a.dtype != jnp.bfloat16:
                a = a.astype(jnp.bfloat16)
            return jnp.dot(a, w_ref[w_row0:w_row0 + w_rows, :],
                           preferred_element_type=jnp.float32)

        # torch.cat(outs,-1) @ fc_w.T + fc_b == fc_b + sum_s outs[s] @ fc_w_s
        logits = vec(layout["fc_b"])         # (1,128); broadcasts on first add
        for sub in layout["subnets"]:
            E, Kp = sub["E"], sub["Kp"]
            x = x_ref[:, sub["x_col"]:sub["x_col"] + Kp]            # (B,Kp) bf16
            h = mm(x, sub["emb_w"], Kp) + vec(sub["emb_b"])         # (B,128) f32
            # Lane-validity mask for LayerNorm stats; hoisted out of the layer
            # loop (JAX does not CSE broadcast_in_dim).
            lane = jax.lax.broadcasted_iota(jnp.int32, h.shape, 1)
            mask = (lane < E).astype(jnp.float32)
            for lw in sub["layers"]:
                # MultiheadAttention with one token: softmax over the single
                # key == 1, so attn_output = out_proj(v_proj(h)).
                v = mm(h, lw["wv"], _LANE) + vec(lw["bv"])
                attn = mm(v, lw["wo"], _LANE) + vec(lw["bo"])
                h = _masked_layernorm(h + attn, vec(lw["ln1g"]), vec(lw["ln1b"]),
                                      mask, E)
                # MLP: Linear -> GELU -> Linear (dropouts: eval-mode identity).
                m = _gelu(mm(h, lw["w1"], _LANE) + vec(lw["b1"]))
                m = mm(m, lw["w2"], _LANE) + vec(lw["b2"])
                h = _masked_layernorm(h + m, vec(lw["ln2g"]), vec(lw["ln2b"]),
                                      mask, E)
            # AdaptiveAvgPool1d(1) over a length-1 sequence: identity.
            logits = logits + mm(h, sub["fc_w"], _LANE)
        out_ref[...] = logits[:, :num_classes].astype(out_ref.dtype)

    return kernel


# --------------------------------- wrapper ------------------------------------

def multiscale_forward(x1, x2, x3, w_slab, b_slab, layout):
    batch = x1.shape[0]
    num_classes = layout["num_classes"]

    # Per-scale flatten + zero-pad to a lane multiple, concat into ONE bf16
    # input slab → a single HBM->VMEM DMA; the pad/concat/cast fuse in XLA.
    cols = []
    for x, sub in zip((x1, x2, x3), layout["subnets"]):
        xf = x.reshape(batch, -1)                      # == torch x.view(B, -1)
        cols.append(jnp.pad(xf, ((0, 0), (0, sub["Kp"] - xf.shape[1]))))
    x_slab = jnp.concatenate(cols, axis=1).astype(jnp.bfloat16)

    flops = 0
    transcendentals = 0
    for sub in layout["subnets"]:
        nl = len(sub["layers"])
        flops += 2 * batch * sub["Kp"] * _LANE                  # embedding
        flops += nl * 4 * 2 * batch * _LANE * _LANE             # attn V/out + MLP
        flops += 2 * batch * _LANE * _LANE                      # classifier part
        transcendentals += nl * batch * _LANE                   # tanh in GELU
    bytes_accessed = (x_slab.size * 2 + w_slab.size * 2 + b_slab.size * 4
                      + batch * num_classes * 4)

    # grid=() (whole network resident in VMEM, one TensorCore) is deliberate at
    # these shapes; if batch/depth grows, add a leading "parallel" batch-tile
    # grid axis with constant index_maps for w_slab/b_slab (v7x 2nd TC).
    return pl.pallas_call(
        _make_kernel(layout),
        out_shape=jax.ShapeDtypeStruct((batch, num_classes), jnp.float32),
        in_specs=[_VMEM, _VMEM, _VMEM],
        out_specs=_VMEM,
        cost_estimate=pl.CostEstimate(flops=int(flops),
                                      transcendentals=int(transcendentals),
                                      bytes_accessed=int(bytes_accessed)),
    )(x_slab, w_slab, b_slab)


# ---------------------------- parameter creation ------------------------------

def _nrm(key, shape, scale=0.02):
    return (scale * jax.random.normal(key, shape)).astype(jnp.float32)


def init_subnet_raw(key, input_size, embed_dim, mlp_dim, num_layers):
    """Raw (unpadded, pre-transposed to (in,out)) f32 params mirroring SubNetwork."""
    patch = input_size * input_size
    ks = jax.random.split(key, 2 + num_layers)
    p = {"emb_w": _nrm(ks[0], (patch, embed_dim)),     # Linear(P,E) weight^T
         "emb_b": _nrm(ks[1], (1, embed_dim)),
         "layers": []}
    for l in range(num_layers):
        kk = jax.random.split(ks[2 + l], 12)
        e = embed_dim
        in_proj_w = _nrm(kk[0], (3 * e, e))            # MultiheadAttention in_proj_weight
        in_proj_b = _nrm(kk[1], (3 * e,))              # in_proj_bias
        p["layers"].append({
            "wv": in_proj_w[2 * e:].T,                 # value projection -> (E,E)
            "bv": in_proj_b[2 * e:][None, :],
            "wo": _nrm(kk[2], (e, e)).T,               # out_proj.weight^T
            "bo": _nrm(kk[3], (1, e)),
            "ln1g": 1.0 + _nrm(kk[4], (1, e), 0.1),    # LayerNorm weight/bias
            "ln1b": _nrm(kk[5], (1, e), 0.1),
            "w1": _nrm(kk[6], (mlp_dim, e)).T,         # mlp Linear(E,M) weight^T
            "b1": _nrm(kk[7], (1, mlp_dim)),
            "w2": _nrm(kk[8], (e, mlp_dim)).T,         # mlp Linear(M,E) weight^T
            "b2": _nrm(kk[9], (1, e)),
            "ln2g": 1.0 + _nrm(kk[10], (1, e), 0.1),
            "ln2b": _nrm(kk[11], (1, e), 0.1),
        })
    return p


def pack_multiscale(key, num_classes, embed_dims, mlp_dims, num_layers):
    """Init + pack all parameters into two VMEM slabs plus a static layout.

    w_slab : (ROWS,128) bf16 — weight matrices zero-padded to 128 lanes,
             stacked row-wise at 128-aligned offsets (per-layer blocks are
             (128,128) because activations are kept 128 lanes wide in-kernel;
             zero rows/cols contribute exactly 0 to every contraction).
    b_slab : (NVEC,128) f32 — every bias / LayerNorm vector, one row each,
             zero-padded to 128 lanes (zero padding keeps invalid lanes 0).
    """
    subnets_raw = []
    for isz, e, m, nl in zip(_INPUT_SIZES, embed_dims, mlp_dims, num_layers):
        key, k = jax.random.split(key)
        subnets_raw.append(init_subnet_raw(k, isz, e, m, nl))
    key, kw, kb = jax.random.split(key, 3)
    fc_w = _nrm(kw, (sum(embed_dims), num_classes))    # Linear(sum(E),C) weight^T
    fc_b = _nrm(kb, (1, num_classes))

    w_blocks, b_rows = [], []
    w_off = 0

    def add_w(a, rows):                                # returns static row offset
        nonlocal w_off
        r, c = a.shape
        w_blocks.append(jnp.pad(a, ((0, rows - r), (0, _LANE - c))))
        off = w_off
        w_off += rows
        return off

    def add_b(a):                                      # returns static row index
        b_rows.append(jnp.pad(a, ((0, 0), (0, _LANE - a.shape[1]))))
        return len(b_rows) - 1

    layout = {"num_classes": num_classes, "subnets": []}
    x_col = 0
    fc_off = 0
    for raw, isz, e, m in zip(subnets_raw, _INPUT_SIZES, embed_dims, mlp_dims):
        patch = isz * isz
        kp = _round_up(patch, _LANE)
        sub = {"E": e, "M": m, "Kp": kp, "x_col": x_col,
               "emb_w": add_w(raw["emb_w"], kp),
               "emb_b": add_b(raw["emb_b"]),
               # concat+classifier folded: per-subnet row-slice of fc_w
               "fc_w": add_w(fc_w[fc_off:fc_off + e], _LANE),
               "layers": []}
        x_col += kp
        fc_off += e
        for lr in raw["layers"]:
            sub["layers"].append({
                "wv": add_w(lr["wv"], _LANE), "bv": add_b(lr["bv"]),
                "wo": add_w(lr["wo"], _LANE), "bo": add_b(lr["bo"]),
                "ln1g": add_b(lr["ln1g"]), "ln1b": add_b(lr["ln1b"]),
                "w1": add_w(lr["w1"], _LANE), "b1": add_b(lr["b1"]),
                "w2": add_w(lr["w2"], _LANE), "b2": add_b(lr["b2"]),
                "ln2g": add_b(lr["ln2g"]), "ln2b": add_b(lr["ln2b"]),
            })
        layout["subnets"].append(sub)
    layout["fc_b"] = add_b(fc_b)

    w_slab = jnp.concatenate(w_blocks, axis=0).astype(jnp.bfloat16)
    b_slab = jnp.concatenate(b_rows, axis=0).astype(jnp.float32)
    return w_slab, b_slab, layout


# ----------------------------------- main -------------------------------------

if __name__ == "__main__":
    num_classes = 5
    embed_dims = [32, 24, 16]
    num_heads = [4, 4, 4]      # numerically irrelevant: seq_len==1 -> softmax == 1
    mlp_dims = [64, 48, 32]
    num_layers = [2, 1, 1]

    key = jax.random.PRNGKey(0)
    key, kparams, k1, k2, k3 = jax.random.split(key, 5)
    w_slab, b_slab, layout = pack_multiscale(kparams, num_classes, embed_dims,
                                             mlp_dims, num_layers)

    batch = 2
    x1 = jax.random.normal(k1, (batch, 1, 56, 56), jnp.float32)
    x2 = jax.random.normal(k2, (batch, 1, 28, 28), jnp.float32)
    x3 = jax.random.normal(k3, (batch, 1, 14, 14), jnp.float32)

    fwd = jax.jit(functools.partial(multiscale_forward, layout=layout))
    out = fwd(x1, x2, x3, w_slab, b_slab)
    jax.block_until_ready(out)
    assert out.shape == (batch, num_classes) and out.dtype == jnp.float32
    assert bool(jnp.all(jnp.isfinite(out)))
    print("KERNEL_OK")
</pallas_src>

<mosaic_0001>
module attributes {stable_mosaic.version = 11 : i64} {
  func.func @kernel(%arg0: memref<2x4352xbf16, #tpu.memory_space<vmem>>, %arg1: memref<6784x128xbf16, #tpu.memory_space<vmem>>, %arg2: memref<36x128xf32, #tpu.memory_space<vmem>>, %arg3: memref<2x5xf32, #tpu.memory_space<vmem>>) attributes {dimension_semantics = [], scalar_prefetch = 0 : i64, scratch_operands = 0 : i64, tpu.core_type = #tpu.core_type<tc>} {
    %c35 = arith.constant 35 : index
    %c0 = arith.constant 0 : index
    %0 = vector.load %arg2[%c35, %c0] : memref<36x128xf32, #tpu.memory_space<vmem>>, vector<1x128xf32>
    %c0_0 = arith.constant 0 : index
    %c0_1 = arith.constant 0 : index
    %1 = vector.load %arg0[%c0_0, %c0_1] : memref<2x4352xbf16, #tpu.memory_space<vmem>>, vector<2x3200xbf16>
    %c0_2 = arith.constant 0 : index
    %c0_3 = arith.constant 0 : index
    %2 = vector.load %arg1[%c0_2, %c0_3] : memref<6784x128xbf16, #tpu.memory_space<vmem>>, vector<3200x128xbf16>
    %cst = arith.constant dense<0.000000e+00> : vector<2x128xf32>
    %3 = tpu.matmul %1, %2, %cst {dimension_numbers = #tpu.dot_dimension_numbers<[1], [0], [0], [1], [0, 0, 1, 1], [], []>} : vector<2x3200xbf16>, vector<3200x128xbf16>, vector<2x128xf32> -> vector<2x128xf32>
    %c0_4 = arith.constant 0 : index
    %c0_5 = arith.constant 0 : index
    %4 = vector.load %arg2[%c0_4, %c0_5] : memref<36x128xf32, #tpu.memory_space<vmem>>, vector<1x128xf32>
    %5 = vector.broadcast %4 : vector<1x128xf32> to vector<2x128xf32>
    %6 = arith.addf %3, %5 : vector<2x128xf32>
    %7 = tpu.iota {dimensions = array<i32: 1>} : vector<2x128xi32>
    %c32_i32 = arith.constant 32 : i32
    %8 = vector.broadcast %c32_i32 : i32 to vector<2x128xi32>
    %9 = arith.cmpi slt, %7, %8 : vector<2x128xi32>
    %10 = arith.extui %9 : vector<2x128xi1> to vector<2x128xi32>
    %11 = arith.sitofp %10 : vector<2x128xi32> to vector<2x128xf32>
    %12 = arith.truncf %6 : vector<2x128xf32> to vector<2x128xbf16>
    %c3328 = arith.constant 3328 : index
    %c0_6 = arith.constant 0 : index
    %13 = vector.load %arg1[%c3328, %c0_6] : memref<6784x128xbf16, #tpu.memory_space<vmem>>, vector<128x128xbf16>
    %cst_7 = arith.constant dense<0.000000e+00> : vector<2x128xf32>
    %14 = tpu.matmul %12, %13, %cst_7 {dimension_numbers = #tpu.dot_dimension_numbers<[1], [0], [0], [1], [0, 0, 1, 1], [], []>} : vector<2x128xbf16>, vector<128x128xbf16>, vector<2x128xf32> -> vector<2x128xf32>
    %c1 = arith.constant 1 : index
    %c0_8 = arith.constant 0 : index
    %15 = vector.load %arg2[%c1, %c0_8] : memref<36x128xf32, #tpu.memory_space<vmem>>, vector<1x128xf32>
    %16 = vector.broadcast %15 : vector<1x128xf32> to vector<2x128xf32>
    %17 = arith.addf %14, %16 : vector<2x128xf32>
    %18 = arith.truncf %17 : vector<2x128xf32> to vector<2x128xbf16>
    %c3456 = arith.constant 3456 : index
    %c0_9 = arith.constant 0 : index
    %19 = vector.load %arg1[%c3456, %c0_9] : memref<6784x128xbf16, #tpu.memory_space<vmem>>, vector<128x128xbf16>
    %cst_10 = arith.constant dense<0.000000e+00> : vector<2x128xf32>
    %20 = tpu.matmul %18, %19, %cst_10 {dimension_numbers = #tpu.dot_dimension_numbers<[1], [0], [0], [1], [0, 0, 1, 1], [], []>} : vector<2x128xbf16>, vector<128x128xbf16>, vector<2x128xf32> -> vector<2x128xf32>
    %c2 = arith.constant 2 : index
    %c0_11 = arith.constant 0 : index
    %21 = vector.load %arg2[%c2, %c0_11] : memref<36x128xf32, #tpu.memory_space<vmem>>, vector<1x128xf32>
    %22 = vector.broadcast %21 : vector<1x128xf32> to vector<2x128xf32>
    %23 = arith.addf %20, %22 : vector<2x128xf32>
    %24 = arith.addf %6, %23 : vector<2x128xf32>
    %c3 = arith.constant 3 : index
    %c0_12 = arith.constant 0 : index
    %25 = vector.load %arg2[%c3, %c0_12] : memref<36x128xf32, #tpu.memory_space<vmem>>, vector<1x128xf32>
    %c4 = arith.constant 4 : index
    %c0_13 = arith.constant 0 : index
    %26 = vector.load %arg2[%c4, %c0_13] : memref<36x128xf32, #tpu.memory_space<vmem>>, vector<1x128xf32>
    %27 = arith.mulf %24, %11 : vector<2x128xf32>
    %cst_14 = arith.constant dense<0.000000e+00> : vector<2xf32>
    %28 = vector.multi_reduction <add>, %27, %cst_14 [1] : vector<2x128xf32> to vector<2xf32>
    %29 = vector.shape_cast %28 : vector<2xf32> to vector<2x1xf32>
    %cst_15 = arith.constant 3.125000e-02 : f32
    %30 = vector.broadcast %cst_15 : f32 to vector<2x1xf32>
    %31 = arith.mulf %29, %30 : vector<2x1xf32>
    %32 = vector.broadcast %31 : vector<2x1xf32> to vector<2x128xf32>
    %33 = arith.subf %24, %32 : vector<2x128xf32>
    %34 = arith.mulf %33, %11 : vector<2x128xf32>
    %35 = arith.mulf %34, %34 : vector<2x128xf32>
    %cst_16 = arith.constant dense<0.000000e+00> : vector<2xf32>
    %36 = vector.multi_reduction <add>, %35, %cst_16 [1] : vector<2x128xf32> to vector<2xf32>
    %37 = vector.shape_cast %36 : vector<2xf32> to vector<2x1xf32>
    %cst_17 = arith.constant 3.125000e-02 : f32
    %38 = vector.broadcast %cst_17 : f32 to vector<2x1xf32>
    %39 = arith.mulf %37, %38 : vector<2x1xf32>
    %40 = vector.broadcast %31 : vector<2x1xf32> to vector<2x128xf32>
    %41 = arith.subf %24, %40 : vector<2x128xf32>
    %cst_18 = arith.constant 9.99999974E-6 : f32
    %42 = vector.broadcast %cst_18 : f32 to vector<2x1xf32>
    %43 = arith.addf %39, %42 : vector<2x1xf32>
    %44 = math.rsqrt %43 : vector<2x1xf32>
    %45 = vector.broadcast %44 : vector<2x1xf32> to vector<2x128xf32>
    %46 = arith.mulf %41, %45 : vector<2x128xf32>
    %47 = vector.broadcast %25 : vector<1x128xf32> to vector<2x128xf32>
    %48 = arith.mulf %46, %47 : vector<2x128xf32>
    %49 = vector.broadcast %26 : vector<1x128xf32> to vector<2x128xf32>
    %50 = arith.addf %48, %49 : vector<2x128xf32>
    %51 = arith.truncf %50 : vector<2x128xf32> to vector<2x128xbf16>
    %c3584 = arith.constant 3584 : index
    %c0_19 = arith.constant 0 : index
    %52 = vector.load %arg1[%c3584, %c0_19] : memref<6784x128xbf16, #tpu.memory_space<vmem>>, vector<128x128xbf16>
    %cst_20 = arith.constant dense<0.000000e+00> : vector<2x128xf32>
    %53 = tpu.matmul %51, %52, %cst_20 {dimension_numbers = #tpu.dot_dimension_numbers<[1], [0], [0], [1], [0, 0, 1, 1], [], []>} : vector<2x128xbf16>, vector<128x128xbf16>, vector<2x128xf32> -> vector<2x128xf32>
    %c5 = arith.constant 5 : index
    %c0_21 = arith.constant 0 : index
    %54 = vector.load %arg2[%c5, %c0_21] : memref<36x128xf32, #tpu.memory_space<vmem>>, vector<1x128xf32>
    %55 = vector.broadcast %54 : vector<1x128xf32> to vector<2x128xf32>
    %56 = arith.addf %53, %55 : vector<2x128xf32>
    %cst_22 = arith.constant 5.000000e-01 : f32
    %57 = vector.broadcast %cst_22 : f32 to vector<2x128xf32>
    %58 = arith.mulf %57, %56 : vector<2x128xf32>
    %cst_23 = arith.constant 4.471500e-02 : f32
    %59 = vector.broadcast %cst_23 : f32 to vector<2x128xf32>
    %60 = arith.mulf %59, %56 : vector<2x128xf32>
    %61 = arith.mulf %60, %56 : vector<2x128xf32>
    %62 = arith.mulf %61, %56 : vector<2x128xf32>
    %63 = arith.addf %56, %62 : vector<2x128xf32>
    %cst_24 = arith.constant 0.797884583 : f32
    %64 = vector.broadcast %cst_24 : f32 to vector<2x128xf32>
    %65 = arith.mulf %64, %63 : vector<2x128xf32>
    %66 = math.tanh %65 : vector<2x128xf32>
    %cst_25 = arith.constant 1.000000e+00 : f32
    %67 = vector.broadcast %cst_25 : f32 to vector<2x128xf32>
    %68 = arith.addf %67, %66 : vector<2x128xf32>
    %69 = arith.mulf %58, %68 : vector<2x128xf32>
    %70 = arith.truncf %69 : vector<2x128xf32> to vector<2x128xbf16>
    %c3712 = arith.constant 3712 : index
    %c0_26 = arith.constant 0 : index
    %71 = vector.load %arg1[%c3712, %c0_26] : memref<6784x128xbf16, #tpu.memory_space<vmem>>, vector<128x128xbf16>
    %cst_27 = arith.constant dense<0.000000e+00> : vector<2x128xf32>
    %72 = tpu.matmul %70, %71, %cst_27 {dimension_numbers = #tpu.dot_dimension_numbers<[1], [0], [0], [1], [0, 0, 1, 1], [], []>} : vector<2x128xbf16>, vector<128x128xbf16>, vector<2x128xf32> -> vector<2x128xf32>
    %c6 = arith.constant 6 : index
    %c0_28 = arith.constant 0 : index
    %73 = vector.load %arg2[%c6, %c0_28] : memref<36x128xf32, #tpu.memory_space<vmem>>, vector<1x128xf32>
    %74 = vector.broadcast %73 : vector<1x128xf32> to vector<2x128xf32>
    %75 = arith.addf %72, %74 : vector<2x128xf32>
    %76 = arith.addf %50, %75 : vector<2x128xf32>
    %c7 = arith.constant 7 : index
    %c0_29 = arith.constant 0 : index
    %77 = vector.load %arg2[%c7, %c0_29] : memref<36x128xf32, #tpu.memory_space<vmem>>, vector<1x128xf32>
    %c8 = arith.constant 8 : index
    %c0_30 = arith.constant 0 : index
    %78 = vector.load %arg2[%c8, %c0_30] : memref<36x128xf32, #tpu.memory_space<vmem>>, vector<1x128xf32>
    %79 = arith.mulf %76, %11 : vector<2x128xf32>
    %cst_31 = arith.constant dense<0.000000e+00> : vector<2xf32>
    %80 = vector.multi_reduction <add>, %79, %cst_31 [1] : vector<2x128xf32> to vector<2xf32>
    %81 = vector.shape_cast %80 : vector<2xf32> to vector<2x1xf32>
    %cst_32 = arith.constant 3.125000e-02 : f32
    %82 = vector.broadcast %cst_32 : f32 to vector<2x1xf32>
    %83 = arith.mulf %81, %82 : vector<2x1xf32>
    %84 = vector.broadcast %83 : vector<2x1xf32> to vector<2x128xf32>
    %85 = arith.subf %76, %84 : vector<2x128xf32>
    %86 = arith.mulf %85, %11 : vector<2x128xf32>
    %87 = arith.mulf %86, %86 : vector<2x128xf32>
    %cst_33 = arith.constant dense<0.000000e+00> : vector<2xf32>
    %88 = vector.multi_reduction <add>, %87, %cst_33 [1] : vector<2x128xf32> to vector<2xf32>
    %89 = vector.shape_cast %88 : vector<2xf32> to vector<2x1xf32>
    %cst_34 = arith.constant 3.125000e-02 : f32
    %90 = vector.broadcast %cst_34 : f32 to vector<2x1xf32>
    %91 = arith.mulf %89, %90 : vector<2x1xf32>
    %92 = vector.broadcast %83 : vector<2x1xf32> to vector<2x128xf32>
    %93 = arith.subf %76, %92 : vector<2x128xf32>
    %cst_35 = arith.constant 9.99999974E-6 : f32
    %94 = vector.broadcast %cst_35 : f32 to vector<2x1xf32>
    %95 = arith.addf %91, %94 : vector<2x1xf32>
    %96 = math.rsqrt %95 : vector<2x1xf32>
    %97 = vector.broadcast %96 : vector<2x1xf32> to vector<2x128xf32>
    %98 = arith.mulf %93, %97 : vector<2x128xf32>
    %99 = vector.broadcast %77 : vector<1x128xf32> to vector<2x128xf32>
    %100 = arith.mulf %98, %99 : vector<2x128xf32>
    %101 = vector.broadcast %78 : vector<1x128xf32> to vector<2x128xf32>
    %102 = arith.addf %100, %101 : vector<2x128xf32>
    %103 = arith.truncf %102 : vector<2x128xf32> to vector<2x128xbf16>
    %c3840 = arith.constant 3840 : index
    %c0_36 = arith.constant 0 : index
    %104 = vector.load %arg1[%c3840, %c0_36] : memref<6784x128xbf16, #tpu.memory_space<vmem>>, vector<128x128xbf16>
    %cst_37 = arith.constant dense<0.000000e+00> : vector<2x128xf32>
    %105 = tpu.matmul %103, %104, %cst_37 {dimension_numbers = #tpu.dot_dimension_numbers<[1], [0], [0], [1], [0, 0, 1, 1], [], []>} : vector<2x128xbf16>, vector<128x128xbf16>, vector<2x128xf32> -> vector<2x128xf32>
    %c9 = arith.constant 9 : index
    %c0_38 = arith.constant 0 : index
    %106 = vector.load %arg2[%c9, %c0_38] : memref<36x128xf32, #tpu.memory_space<vmem>>, vector<1x128xf32>
    %107 = vector.broadcast %106 : vector<1x128xf32> to vector<2x128xf32>
    %108 = arith.addf %105, %107 : vector<2x128xf32>
    %109 = arith.truncf %108 : vector<2x128xf32> to vector<2x128xbf16>
    %c3968 = arith.constant 3968 : index
    %c0_39 = arith.constant 0 : index
    %110 = vector.load %arg1[%c3968, %c0_39] : memref<6784x128xbf16, #tpu.memory_space<vmem>>, vector<128x128xbf16>
    %cst_40 = arith.constant dense<0.000000e+00> : vector<2x128xf32>
    %111 = tpu.matmul %109, %110, %cst_40 {dimension_numbers = #tpu.dot_dimension_numbers<[1], [0], [0], [1], [0, 0, 1, 1], [], []>} : vector<2x128xbf16>, vector<128x128xbf16>, vector<2x128xf32> -> vector<2x128xf32>
    %c10 = arith.constant 10 : index
    %c0_41 = arith.constant 0 : index
    %112 = vector.load %arg2[%c10, %c0_41] : memref<36x128xf32, #tpu.memory_space<vmem>>, vector<1x128xf32>
    %113 = vector.broadcast %112 : vector<1x128xf32> to vector<2x128xf32>
    %114 = arith.addf %111, %113 : vector<2x128xf32>
    %115 = arith.addf %102, %114 : vector<2x128xf32>
    %c11 = arith.constant 11 : index
    %c0_42 = arith.constant 0 : index
    %116 = vector.load %arg2[%c11, %c0_42] : memref<36x128xf32, #tpu.memory_space<vmem>>, vector<1x128xf32>
    %c12 = arith.constant 12 : index
    %c0_43 = arith.constant 0 : index
    %117 = vector.load %arg2[%c12, %c0_43] : memref<36x128xf32, #tpu.memory_space<vmem>>, vector<1x128xf32>
    %118 = arith.mulf %115, %11 : vector<2x128xf32>
    %cst_44 = arith.constant dense<0.000000e+00> : vector<2xf32>
    %119 = vector.multi_reduction <add>, %118, %cst_44 [1] : vector<2x128xf32> to vector<2xf32>
    %120 = vector.shape_cast %119 : vector<2xf32> to vector<2x1xf32>
    %cst_45 = arith.constant 3.125000e-02 : f32
    %121 = vector.broadcast %cst_45 : f32 to vector<2x1xf32>
    %122 = arith.mulf %120, %121 : vector<2x1xf32>
    %123 = vector.broadcast %122 : vector<2x1xf32> to vector<2x128xf32>
    %124 = arith.subf %115, %123 : vector<2x128xf32>
    %125 = arith.mulf %124, %11 : vector<2x128xf32>
    %126 = arith.mulf %125, %125 : vector<2x128xf32>
    %cst_46 = arith.constant dense<0.000000e+00> : vector<2xf32>
    %127 = vector.multi_reduction <add>, %126, %cst_46 [1] : vector<2x128xf32> to vector<2xf32>
    %128 = vector.shape_cast %127 : vector<2xf32> to vector<2x1xf32>
    %cst_47 = arith.constant 3.125000e-02 : f32
    %129 = vector.broadcast %cst_47 : f32 to vector<2x1xf32>
    %130 = arith.mulf %128, %129 : vector<2x1xf32>
    %131 = vector.broadcast %122 : vector<2x1xf32> to vector<2x128xf32>
    %132 = arith.subf %115, %131 : vector<2x128xf32>
    %cst_48 = arith.constant 9.99999974E-6 : f32
    %133 = vector.broadcast %cst_48 : f32 to vector<2x1xf32>
    %134 = arith.addf %130, %133 : vector<2x1xf32>
    %135 = math.rsqrt %134 : vector<2x1xf32>
    %136 = vector.broadcast %135 : vector<2x1xf32> to vector<2x128xf32>
    %137 = arith.mulf %132, %136 : vector<2x128xf32>
    %138 = vector.broadcast %116 : vector<1x128xf32> to vector<2x128xf32>
    %139 = arith.mulf %137, %138 : vector<2x128xf32>
    %140 = vector.broadcast %117 : vector<1x128xf32> to vector<2x128xf32>
    %141 = arith.addf %139, %140 : vector<2x128xf32>
    %142 = arith.truncf %141 : vector<2x128xf32> to vector<2x128xbf16>
    %c4096 = arith.constant 4096 : index
    %c0_49 = arith.constant 0 : index
    %143 = vector.load %arg1[%c4096, %c0_49] : memref<6784x128xbf16, #tpu.memory_space<vmem>>, vector<128x128xbf16>
    %cst_50 = arith.constant dense<0.000000e+00> : vector<2x128xf32>
    %144 = tpu.matmul %142, %143, %cst_50 {dimension_numbers = #tpu.dot_dimension_numbers<[1], [0], [0], [1], [0, 0, 1, 1], [], []>} : vector<2x128xbf16>, vector<128x128xbf16>, vector<2x128xf32> -> vector<2x128xf32>
    %c13 = arith.constant 13 : index
    %c0_51 = arith.constant 0 : index
    %145 = vector.load %arg2[%c13, %c0_51] : memref<36x128xf32, #tpu.memory_space<vmem>>, vector<1x128xf32>
    %146 = vector.broadcast %145 : vector<1x128xf32> to vector<2x128xf32>
    %147 = arith.addf %144, %146 : vector<2x128xf32>
    %cst_52 = arith.constant 5.000000e-01 : f32
    %148 = vector.broadcast %cst_52 : f32 to vector<2x128xf32>
    %149 = arith.mulf %148, %147 : vector<2x128xf32>
    %cst_53 = arith.constant 4.471500e-02 : f32
    %150 = vector.broadcast %cst_53 : f32 to vector<2x128xf32>
    %151 = arith.mulf %150, %147 : vector<2x128xf32>
    %152 = arith.mulf %151, %147 : vector<2x128xf32>
    %153 = arith.mulf %152, %147 : vector<2x128xf32>
    %154 = arith.addf %147, %153 : vector<2x128xf32>
    %cst_54 = arith.constant 0.797884583 : f32
    %155 = vector.broadcast %cst_54 : f32 to vector<2x128xf32>
    %156 = arith.mulf %155, %154 : vector<2x128xf32>
    %157 = math.tanh %156 : vector<2x128xf32>
    %cst_55 = arith.constant 1.000000e+00 : f32
    %158 = vector.broadcast %cst_55 : f32 to vector<2x128xf32>
    %159 = arith.addf %158, %157 : vector<2x128xf32>
    %160 = arith.mulf %149, %159 : vector<2x128xf32>
    %161 = arith.truncf %160 : vector<2x128xf32> to vector<2x128xbf16>
    %c4224 = arith.constant 4224 : index
    %c0_56 = arith.constant 0 : index
    %162 = vector.load %arg1[%c4224, %c0_56] : memref<6784x128xbf16, #tpu.memory_space<vmem>>, vector<128x128xbf16>
    %cst_57 = arith.constant dense<0.000000e+00> : vector<2x128xf32>
    %163 = tpu.matmul %161, %162, %cst_57 {dimension_numbers = #tpu.dot_dimension_numbers<[1], [0], [0], [1], [0, 0, 1, 1], [], []>} : vector<2x128xbf16>, vector<128x128xbf16>, vector<2x128xf32> -> vector<2x128xf32>
    %c14 = arith.constant 14 : index
    %c0_58 = arith.constant 0 : index
    %164 = vector.load %arg2[%c14, %c0_58] : memref<36x128xf32, #tpu.memory_space<vmem>>, vector<1x128xf32>
    %165 = vector.broadcast %164 : vector<1x128xf32> to vector<2x128xf32>
    %166 = arith.addf %163, %165 : vector<2x128xf32>
    %167 = arith.addf %141, %166 : vector<2x128xf32>
    %c15 = arith.constant 15 : index
    %c0_59 = arith.constant 0 : index
    %168 = vector.load %arg2[%c15, %c0_59] : memref<36x128xf32, #tpu.memory_space<vmem>>, vector<1x128xf32>
    %c16 = arith.constant 16 : index
    %c0_60 = arith.constant 0 : index
    %169 = vector.load %arg2[%c16, %c0_60] : memref<36x128xf32, #tpu.memory_space<vmem>>, vector<1x128xf32>
    %170 = arith.mulf %167, %11 : vector<2x128xf32>
    %cst_61 = arith.constant dense<0.000000e+00> : vector<2xf32>
    %171 = vector.multi_reduction <add>, %170, %cst_61 [1] : vector<2x128xf32> to vector<2xf32>
    %172 = vector.shape_cast %171 : vector<2xf32> to vector<2x1xf32>
    %cst_62 = arith.constant 3.125000e-02 : f32
    %173 = vector.broadcast %cst_62 : f32 to vector<2x1xf32>
    %174 = arith.mulf %172, %173 : vector<2x1xf32>
    %175 = vector.broadcast %174 : vector<2x1xf32> to vector<2x128xf32>
    %176 = arith.subf %167, %175 : vector<2x128xf32>
    %177 = arith.mulf %176, %11 : vector<2x128xf32>
    %178 = arith.mulf %177, %177 : vector<2x128xf32>
    %cst_63 = arith.constant dense<0.000000e+00> : vector<2xf32>
    %179 = vector.multi_reduction <add>, %178, %cst_63 [1] : vector<2x128xf32> to vector<2xf32>
    %180 = vector.shape_cast %179 : vector<2xf32> to vector<2x1xf32>
    %cst_64 = arith.constant 3.125000e-02 : f32
    %181 = vector.broadcast %cst_64 : f32 to vector<2x1xf32>
    %182 = arith.mulf %180, %181 : vector<2x1xf32>
    %183 = vector.broadcast %174 : vector<2x1xf32> to vector<2x128xf32>
    %184 = arith.subf %167, %183 : vector<2x128xf32>
    %cst_65 = arith.constant 9.99999974E-6 : f32
    %185 = vector.broadcast %cst_65 : f32 to vector<2x1xf32>
    %186 = arith.addf %182, %185 : vector<2x1xf32>
    %187 = math.rsqrt %186 : vector<2x1xf32>
    %188 = vector.broadcast %187 : vector<2x1xf32> to vector<2x128xf32>
    %189 = arith.mulf %184, %188 : vector<2x128xf32>
    %190 = vector.broadcast %168 : vector<1x128xf32> to vector<2x128xf32>
    %191 = arith.mulf %189, %190 : vector<2x128xf32>
    %192 = vector.broadcast %169 : vector<1x128xf32> to vector<2x128xf32>
    %193 = arith.addf %191, %192 : vector<2x128xf32>
    %194 = arith.truncf %193 : vector<2x128xf32> to vector<2x128xbf16>
    %c3200 = arith.constant 3200 : index
    %c0_66 = arith.constant 0 : index
    %195 = vector.load %arg1[%c3200, %c0_66] : memref<6784x128xbf16, #tpu.memory_space<vmem>>, vector<128x128xbf16>
    %cst_67 = arith.constant dense<0.000000e+00> : vector<2x128xf32>
    %196 = tpu.matmul %194, %195, %cst_67 {dimension_numbers = #tpu.dot_dimension_numbers<[1], [0], [0], [1], [0, 0, 1, 1], [], []>} : vector<2x128xbf16>, vector<128x128xbf16>, vector<2x128xf32> -> vector<2x128xf32>
    %197 = vector.broadcast %0 : vector<1x128xf32> to vector<2x128xf32>
    %198 = arith.addf %197, %196 : vector<2x128xf32>
    %c0_68 = arith.constant 0 : index
    %c3200_69 = arith.constant 3200 : index
    %199 = vector.load %arg0[%c0_68, %c3200_69] : memref<2x4352xbf16, #tpu.memory_space<vmem>>, vector<2x896xbf16>
    %c4352 = arith.constant 4352 : index
    %c0_70 = arith.constant 0 : index
    %200 = vector.load %arg1[%c4352, %c0_70] : memref<6784x128xbf16, #tpu.memory_space<vmem>>, vector<896x128xbf16>
    %cst_71 = arith.constant dense<0.000000e+00> : vector<2x128xf32>
    %201 = tpu.matmul %199, %200, %cst_71 {dimension_numbers = #tpu.dot_dimension_numbers<[1], [0], [0], [1], [0, 0, 1, 1], [], []>} : vector<2x896xbf16>, vector<896x128xbf16>, vector<2x128xf32> -> vector<2x128xf32>
    %c17 = arith.constant 17 : index
    %c0_72 = arith.constant 0 : index
    %202 = vector.load %arg2[%c17, %c0_72] : memref<36x128xf32, #tpu.memory_space<vmem>>, vector<1x128xf32>
    %203 = vector.broadcast %202 : vector<1x128xf32> to vector<2x128xf32>
    %204 = arith.addf %201, %203 : vector<2x128xf32>
    %205 = tpu.iota {dimensions = array<i32: 1>} : vector<2x128xi32>
    %c24_i32 = arith.constant 24 : i32
    %206 = vector.broadcast %c24_i32 : i32 to vector<2x128xi32>
    %207 = arith.cmpi slt, %205, %206 : vector<2x128xi32>
    %208 = arith.extui %207 : vector<2x128xi1> to vector<2x128xi32>
    %209 = arith.sitofp %208 : vector<2x128xi32> to vector<2x128xf32>
    %210 = arith.truncf %204 : vector<2x128xf32> to vector<2x128xbf16>
    %c5376 = arith.constant 5376 : index
    %c0_73 = arith.constant 0 : index
    %211 = vector.load %arg1[%c5376, %c0_73] : memref<6784x128xbf16, #tpu.memory_space<vmem>>, vector<128x128xbf16>
    %cst_74 = arith.constant dense<0.000000e+00> : vector<2x128xf32>
    %212 = tpu.matmul %210, %211, %cst_74 {dimension_numbers = #tpu.dot_dimension_numbers<[1], [0], [0], [1], [0, 0, 1, 1], [], []>} : vector<2x128xbf16>, vector<128x128xbf16>, vector<2x128xf32> -> vector<2x128xf32>
    %c18 = arith.constant 18 : index
    %c0_75 = arith.constant 0 : index
    %213 = vector.load %arg2[%c18, %c0_75] : memref<36x128xf32, #tpu.memory_space<vmem>>, vector<1x128xf32>
    %214 = vector.broadcast %213 : vector<1x128xf32> to vector<2x128xf32>
    %215 = arith.addf %212, %214 : vector<2x128xf32>
    %216 = arith.truncf %215 : vector<2x128xf32> to vector<2x128xbf16>
    %c5504 = arith.constant 5504 : index
    %c0_76 = arith.constant 0 : index
    %217 = vector.load %arg1[%c5504, %c0_76] : memref<6784x128xbf16, #tpu.memory_space<vmem>>, vector<128x128xbf16>
    %cst_77 = arith.constant dense<0.000000e+00> : vector<2x128xf32>
    %218 = tpu.matmul %216, %217, %cst_77 {dimension_numbers = #tpu.dot_dimension_numbers<[1], [0], [0], [1], [0, 0, 1, 1], [], []>} : vector<2x128xbf16>, vector<128x128xbf16>, vector<2x128xf32> -> vector<2x128xf32>
    %c19 = arith.constant 19 : index
    %c0_78 = arith.constant 0 : index
    %219 = vector.load %arg2[%c19, %c0_78] : memref<36x128xf32, #tpu.memory_space<vmem>>, vector<1x128xf32>
    %220 = vector.broadcast %219 : vector<1x128xf32> to vector<2x128xf32>
    %221 = arith.addf %218, %220 : vector<2x128xf32>
    %222 = arith.addf %204, %221 : vector<2x128xf32>
    %c20 = arith.constant 20 : index
    %c0_79 = arith.constant 0 : index
    %223 = vector.load %arg2[%c20, %c0_79] : memref<36x128xf32, #tpu.memory_space<vmem>>, vector<1x128xf32>
    %c21 = arith.constant 21 : index
    %c0_80 = arith.constant 0 : index
    %224 = vector.load %arg2[%c21, %c0_80] : memref<36x128xf32, #tpu.memory_space<vmem>>, vector<1x128xf32>
    %225 = arith.mulf %222, %209 : vector<2x128xf32>
    %cst_81 = arith.constant dense<0.000000e+00> : vector<2xf32>
    %226 = vector.multi_reduction <add>, %225, %cst_81 [1] : vector<2x128xf32> to vector<2xf32>
    %227 = vector.shape_cast %226 : vector<2xf32> to vector<2x1xf32>
    %cst_82 = arith.constant 0.0416666679 : f32
    %228 = vector.broadcast %cst_82 : f32 to vector<2x1xf32>
    %229 = arith.mulf %227, %228 : vector<2x1xf32>
    %230 = vector.broadcast %229 : vector<2x1xf32> to vector<2x128xf32>
    %231 = arith.subf %222, %230 : vector<2x128xf32>
    %232 = arith.mulf %231, %209 : vector<2x128xf32>
    %233 = arith.mulf %232, %232 : vector<2x128xf32>
    %cst_83 = arith.constant dense<0.000000e+00> : vector<2xf32>
    %234 = vector.multi_reduction <add>, %233, %cst_83 [1] : vector<2x128xf32> to vector<2xf32>
    %235 = vector.shape_cast %234 : vector<2xf32> to vector<2x1xf32>
    %cst_84 = arith.constant 0.0416666679 : f32
    %236 = vector.broadcast %cst_84 : f32 to vector<2x1xf32>
    %237 = arith.mulf %235, %236 : vector<2x1xf32>
    %238 = vector.broadcast %229 : vector<2x1xf32> to vector<2x128xf32>
    %239 = arith.subf %222, %238 : vector<2x128xf32>
    %cst_85 = arith.constant 9.99999974E-6 : f32
    %240 = vector.broadcast %cst_85 : f32 to vector<2x1xf32>
    %241 = arith.addf %237, %240 : vector<2x1xf32>
    %242 = math.rsqrt %241 : vector<2x1xf32>
    %243 = vector.broadcast %242 : vector<2x1xf32> to vector<2x128xf32>
    %244 = arith.mulf %239, %243 : vector<2x128xf32>
    %245 = vector.broadcast %223 : vector<1x128xf32> to vector<2x128xf32>
    %246 = arith.mulf %244, %245 : vector<2x128xf32>
    %247 = vector.broadcast %224 : vector<1x128xf32> to vector<2x128xf32>
    %248 = arith.addf %246, %247 : vector<2x128xf32>
    %249 = arith.truncf %248 : vector<2x128xf32> to vector<2x128xbf16>
    %c5632 = arith.constant 5632 : index
    %c0_86 = arith.constant 0 : index
    %250 = vector.load %arg1[%c5632, %c0_86] : memref<6784x128xbf16, #tpu.memory_space<vmem>>, vector<128x128xbf16>
    %cst_87 = arith.constant dense<0.000000e+00> : vector<2x128xf32>
    %251 = tpu.matmul %249, %250, %cst_87 {dimension_numbers = #tpu.dot_dimension_numbers<[1], [0], [0], [1], [0, 0, 1, 1], [], []>} : vector<2x128xbf16>, vector<128x128xbf16>, vector<2x128xf32> -> vector<2x128xf32>
    %c22 = arith.constant 22 : index
    %c0_88 = arith.constant 0 : index
    %252 = vector.load %arg2[%c22, %c0_88] : memref<36x128xf32, #tpu.memory_space<vmem>>, vector<1x128xf32>
    %253 = vector.broadcast %252 : vector<1x128xf32> to vector<2x128xf32>
    %254 = arith.addf %251, %253 : vector<2x128xf32>
    %cst_89 = arith.constant 5.000000e-01 : f32
    %255 = vector.broadcast %cst_89 : f32 to vector<2x128xf32>
    %256 = arith.mulf %255, %254 : vector<2x128xf32>
    %cst_90 = arith.constant 4.471500e-02 : f32
    %257 = vector.broadcast %cst_90 : f32 to vector<2x128xf32>
    %258 = arith.mulf %257, %254 : vector<2x128xf32>
    %259 = arith.mulf %258, %254 : vector<2x128xf32>
    %260 = arith.mulf %259, %254 : vector<2x128xf32>
    %261 = arith.addf %254, %260 : vector<2x128xf32>
    %cst_91 = arith.constant 0.797884583 : f32
    %262 = vector.broadcast %cst_91 : f32 to vector<2x128xf32>
    %263 = arith.mulf %262, %261 : vector<2x128xf32>
    %264 = math.tanh %263 : vector<2x128xf32>
    %cst_92 = arith.constant 1.000000e+00 : f32
    %265 = vector.broadcast %cst_92 : f32 to vector<2x128xf32>
    %266 = arith.addf %265, %264 : vector<2x128xf32>
    %267 = arith.mulf %256, %266 : vector<2x128xf32>
    %268 = arith.truncf %267 : vector<2x128xf32> to vector<2x128xbf16>
    %c5760 = arith.constant 5760 : index
    %c0_93 = arith.constant 0 : index
    %269 = vector.load %arg1[%c5760, %c0_93] : memref<6784x128xbf16, #tpu.memory_space<vmem>>, vector<128x128xbf16>
    %cst_94 = arith.constant dense<0.000000e+00> : vector<2x128xf32>
    %270 = tpu.matmul %268, %269, %cst_94 {dimension_numbers = #tpu.dot_dimension_numbers<[1], [0], [0], [1], [0, 0, 1, 1], [], []>} : vector<2x128xbf16>, vector<128x128xbf16>, vector<2x128xf32> -> vector<2x128xf32>
    %c23 = arith.constant 23 : index
    %c0_95 = arith.constant 0 : index
    %271 = vector.load %arg2[%c23, %c0_95] : memref<36x128xf32, #tpu.memory_space<vmem>>, vector<1x128xf32>
    %272 = vector.broadcast %271 : vector<1x128xf32> to vector<2x128xf32>
    %273 = arith.addf %270, %272 : vector<2x128xf32>
    %274 = arith.addf %248, %273 : vector<2x128xf32>
    %c24 = arith.constant 24 : index
    %c0_96 = arith.constant 0 : index
    %275 = vector.load %arg2[%c24, %c0_96] : memref<36x128xf32, #tpu.memory_space<vmem>>, vector<1x128xf32>
    %c25 = arith.constant 25 : index
    %c0_97 = arith.constant 0 : index
    %276 = vector.load %arg2[%c25, %c0_97] : memref<36x128xf32, #tpu.memory_space<vmem>>, vector<1x128xf32>
    %277 = arith.mulf %274, %209 : vector<2x128xf32>
    %cst_98 = arith.constant dense<0.000000e+00> : vector<2xf32>
    %278 = vector.multi_reduction <add>, %277, %cst_98 [1] : vector<2x128xf32> to vector<2xf32>
    %279 = vector.shape_cast %278 : vector<2xf32> to vector<2x1xf32>
    %cst_99 = arith.constant 0.0416666679 : f32
    %280 = vector.broadcast %cst_99 : f32 to vector<2x1xf32>
    %281 = arith.mulf %279, %280 : vector<2x1xf32>
    %282 = vector.broadcast %281 : vector<2x1xf32> to vector<2x128xf32>
    %283 = arith.subf %274, %282 : vector<2x128xf32>
    %284 = arith.mulf %283, %209 : vector<2x128xf32>
    %285 = arith.mulf %284, %284 : vector<2x128xf32>
    %cst_100 = arith.constant dense<0.000000e+00> : vector<2xf32>
    %286 = vector.multi_reduction <add>, %285, %cst_100 [1] : vector<2x128xf32> to vector<2xf32>
    %287 = vector.shape_cast %286 : vector<2xf32> to vector<2x1xf32>
    %cst_101 = arith.constant 0.0416666679 : f32
    %288 = vector.broadcast %cst_101 : f32 to vector<2x1xf32>
    %289 = arith.mulf %287, %288 : vector<2x1xf32>
    %290 = vector.broadcast %281 : vector<2x1xf32> to vector<2x128xf32>
    %291 = arith.subf %274, %290 : vector<2x128xf32>
    %cst_102 = arith.constant 9.99999974E-6 : f32
    %292 = vector.broadcast %cst_102 : f32 to vector<2x1xf32>
    %293 = arith.addf %289, %292 : vector<2x1xf32>
    %294 = math.rsqrt %293 : vector<2x1xf32>
    %295 = vector.broadcast %294 : vector<2x1xf32> to vector<2x128xf32>
    %296 = arith.mulf %291, %295 : vector<2x128xf32>
    %297 = vector.broadcast %275 : vector<1x128xf32> to vector<2x128xf32>
    %298 = arith.mulf %296, %297 : vector<2x128xf32>
    %299 = vector.broadcast %276 : vector<1x128xf32> to vector<2x128xf32>
    %300 = arith.addf %298, %299 : vector<2x128xf32>
    %301 = arith.truncf %300 : vector<2x128xf32> to vector<2x128xbf16>
    %c5248 = arith.constant 5248 : index
    %c0_103 = arith.constant 0 : index
    %302 = vector.load %arg1[%c5248, %c0_103] : memref<6784x128xbf16, #tpu.memory_space<vmem>>, vector<128x128xbf16>
    %cst_104 = arith.constant dense<0.000000e+00> : vector<2x128xf32>
    %303 = tpu.matmul %301, %302, %cst_104 {dimension_numbers = #tpu.dot_dimension_numbers<[1], [0], [0], [1], [0, 0, 1, 1], [], []>} : vector<2x128xbf16>, vector<128x128xbf16>, vector<2x128xf32> -> vector<2x128xf32>
    %304 = arith.addf %198, %303 : vector<2x128xf32>
    %c0_105 = arith.constant 0 : index
    %c4096_106 = arith.constant 4096 : index
    %305 = vector.load %arg0[%c0_105, %c4096_106] : memref<2x4352xbf16, #tpu.memory_space<vmem>>, vector<2x256xbf16>
    %c5888 = arith.constant 5888 : index
    %c0_107 = arith.constant 0 : index
    %306 = vector.load %arg1[%c5888, %c0_107] : memref<6784x128xbf16, #tpu.memory_space<vmem>>, vector<256x128xbf16>
    %cst_108 = arith.constant dense<0.000000e+00> : vector<2x128xf32>
    %307 = tpu.matmul %305, %306, %cst_108 {dimension_numbers = #tpu.dot_dimension_numbers<[1], [0], [0], [1], [0, 0, 1, 1], [], []>} : vector<2x256xbf16>, vector<256x128xbf16>, vector<2x128xf32> -> vector<2x128xf32>
    %c26 = arith.constant 26 : index
    %c0_109 = arith.constant 0 : index
    %308 = vector.load %arg2[%c26, %c0_109] : memref<36x128xf32, #tpu.memory_space<vmem>>, vector<1x128xf32>
    %309 = vector.broadcast %308 : vector<1x128xf32> to vector<2x128xf32>
    %310 = arith.addf %307, %309 : vector<2x128xf32>
    %311 = tpu.iota {dimensions = array<i32: 1>} : vector<2x128xi32>
    %c16_i32 = arith.constant 16 : i32
    %312 = vector.broadcast %c16_i32 : i32 to vector<2x128xi32>
    %313 = arith.cmpi slt, %311, %312 : vector<2x128xi32>
    %314 = arith.extui %313 : vector<2x128xi1> to vector<2x128xi32>
    %315 = arith.sitofp %314 : vector<2x128xi32> to vector<2x128xf32>
    %316 = arith.truncf %310 : vector<2x128xf32> to vector<2x128xbf16>
    %c6272 = arith.constant 6272 : index
    %c0_110 = arith.constant 0 : index
    %317 = vector.load %arg1[%c6272, %c0_110] : memref<6784x128xbf16, #tpu.memory_space<vmem>>, vector<128x128xbf16>
    %cst_111 = arith.constant dense<0.000000e+00> : vector<2x128xf32>
    %318 = tpu.matmul %316, %317, %cst_111 {dimension_numbers = #tpu.dot_dimension_numbers<[1], [0], [0], [1], [0, 0, 1, 1], [], []>} : vector<2x128xbf16>, vector<128x128xbf16>, vector<2x128xf32> -> vector<2x128xf32>
    %c27 = arith.constant 27 : index
    %c0_112 = arith.constant 0 : index
    %319 = vector.load %arg2[%c27, %c0_112] : memref<36x128xf32, #tpu.memory_space<vmem>>, vector<1x128xf32>
    %320 = vector.broadcast %319 : vector<1x128xf32> to vector<2x128xf32>
    %321 = arith.addf %318, %320 : vector<2x128xf32>
    %322 = arith.truncf %321 : vector<2x128xf32> to vector<2x128xbf16>
    %c6400 = arith.constant 6400 : index
    %c0_113 = arith.constant 0 : index
    %323 = vector.load %arg1[%c6400, %c0_113] : memref<6784x128xbf16, #tpu.memory_space<vmem>>, vector<128x128xbf16>
    %cst_114 = arith.constant dense<0.000000e+00> : vector<2x128xf32>
    %324 = tpu.matmul %322, %323, %cst_114 {dimension_numbers = #tpu.dot_dimension_numbers<[1], [0], [0], [1], [0, 0, 1, 1], [], []>} : vector<2x128xbf16>, vector<128x128xbf16>, vector<2x128xf32> -> vector<2x128xf32>
    %c28 = arith.constant 28 : index
    %c0_115 = arith.constant 0 : index
    %325 = vector.load %arg2[%c28, %c0_115] : memref<36x128xf32, #tpu.memory_space<vmem>>, vector<1x128xf32>
    %326 = vector.broadcast %325 : vector<1x128xf32> to vector<2x128xf32>
    %327 = arith.addf %324, %326 : vector<2x128xf32>
    %328 = arith.addf %310, %327 : vector<2x128xf32>
    %c29 = arith.constant 29 : index
    %c0_116 = arith.constant 0 : index
    %329 = vector.load %arg2[%c29, %c0_116] : memref<36x128xf32, #tpu.memory_space<vmem>>, vector<1x128xf32>
    %c30 = arith.constant 30 : index
    %c0_117 = arith.constant 0 : index
    %330 = vector.load %arg2[%c30, %c0_117] : memref<36x128xf32, #tpu.memory_space<vmem>>, vector<1x128xf32>
    %331 = arith.mulf %328, %315 : vector<2x128xf32>
    %cst_118 = arith.constant dense<0.000000e+00> : vector<2xf32>
    %332 = vector.multi_reduction <add>, %331, %cst_118 [1] : vector<2x128xf32> to vector<2xf32>
    %333 = vector.shape_cast %332 : vector<2xf32> to vector<2x1xf32>
    %cst_119 = arith.constant 6.250000e-02 : f32
    %334 = vector.broadcast %cst_119 : f32 to vector<2x1xf32>
    %335 = arith.mulf %333, %334 : vector<2x1xf32>
    %336 = vector.broadcast %335 : vector<2x1xf32> to vector<2x128xf32>
    %337 = arith.subf %328, %336 : vector<2x128xf32>
    %338 = arith.mulf %337, %315 : vector<2x128xf32>
    %339 = arith.mulf %338, %338 : vector<2x128xf32>
    %cst_120 = arith.constant dense<0.000000e+00> : vector<2xf32>
    %340 = vector.multi_reduction <add>, %339, %cst_120 [1] : vector<2x128xf32> to vector<2xf32>
    %341 = vector.shape_cast %340 : vector<2xf32> to vector<2x1xf32>
    %cst_121 = arith.constant 6.250000e-02 : f32
    %342 = vector.broadcast %cst_121 : f32 to vector<2x1xf32>
    %343 = arith.mulf %341, %342 : vector<2x1xf32>
    %344 = vector.broadcast %335 : vector<2x1xf32> to vector<2x128xf32>
    %345 = arith.subf %328, %344 : vector<2x128xf32>
    %cst_122 = arith.constant 9.99999974E-6 : f32
    %346 = vector.broadcast %cst_122 : f32 to vector<2x1xf32>
    %347 = arith.addf %343, %346 : vector<2x1xf32>
    %348 = math.rsqrt %347 : vector<2x1xf32>
    %349 = vector.broadcast %348 : vector<2x1xf32> to vector<2x128xf32>
    %350 = arith.mulf %345, %349 : vector<2x128xf32>
    %351 = vector.broadcast %329 : vector<1x128xf32> to vector<2x128xf32>
    %352 = arith.mulf %350, %351 : vector<2x128xf32>
    %353 = vector.broadcast %330 : vector<1x128xf32> to vector<2x128xf32>
    %354 = arith.addf %352, %353 : vector<2x128xf32>
    %355 = arith.truncf %354 : vector<2x128xf32> to vector<2x128xbf16>
    %c6528 = arith.constant 6528 : index
    %c0_123 = arith.constant 0 : index
    %356 = vector.load %arg1[%c6528, %c0_123] : memref<6784x128xbf16, #tpu.memory_space<vmem>>, vector<128x128xbf16>
    %cst_124 = arith.constant dense<0.000000e+00> : vector<2x128xf32>
    %357 = tpu.matmul %355, %356, %cst_124 {dimension_numbers = #tpu.dot_dimension_numbers<[1], [0], [0], [1], [0, 0, 1, 1], [], []>} : vector<2x128xbf16>, vector<128x128xbf16>, vector<2x128xf32> -> vector<2x128xf32>
    %c31 = arith.constant 31 : index
    %c0_125 = arith.constant 0 : index
    %358 = vector.load %arg2[%c31, %c0_125] : memref<36x128xf32, #tpu.memory_space<vmem>>, vector<1x128xf32>
    %359 = vector.broadcast %358 : vector<1x128xf32> to vector<2x128xf32>
    %360 = arith.addf %357, %359 : vector<2x128xf32>
    %cst_126 = arith.constant 5.000000e-01 : f32
    %361 = vector.broadcast %cst_126 : f32 to vector<2x128xf32>
    %362 = arith.mulf %361, %360 : vector<2x128xf32>
    %cst_127 = arith.constant 4.471500e-02 : f32
    %363 = vector.broadcast %cst_127 : f32 to vector<2x128xf32>
    %364 = arith.mulf %363, %360 : vector<2x128xf32>
    %365 = arith.mulf %364, %360 : vector<2x128xf32>
    %366 = arith.mulf %365, %360 : vector<2x128xf32>
    %367 = arith.addf %360, %366 : vector<2x128xf32>
    %cst_128 = arith.constant 0.797884583 : f32
    %368 = vector.broadcast %cst_128 : f32 to vector<2x128xf32>
    %369 = arith.mulf %368, %367 : vector<2x128xf32>
    %370 = math.tanh %369 : vector<2x128xf32>
    %cst_129 = arith.constant 1.000000e+00 : f32
    %371 = vector.broadcast %cst_129 : f32 to vector<2x128xf32>
    %372 = arith.addf %371, %370 : vector<2x128xf32>
    %373 = arith.mulf %362, %372 : vector<2x128xf32>
    %374 = arith.truncf %373 : vector<2x128xf32> to vector<2x128xbf16>
    %c6656 = arith.constant 6656 : index
    %c0_130 = arith.constant 0 : index
    %375 = vector.load %arg1[%c6656, %c0_130] : memref<6784x128xbf16, #tpu.memory_space<vmem>>, vector<128x128xbf16>
    %cst_131 = arith.constant dense<0.000000e+00> : vector<2x128xf32>
    %376 = tpu.matmul %374, %375, %cst_131 {dimension_numbers = #tpu.dot_dimension_numbers<[1], [0], [0], [1], [0, 0, 1, 1], [], []>} : vector<2x128xbf16>, vector<128x128xbf16>, vector<2x128xf32> -> vector<2x128xf32>
    %c32 = arith.constant 32 : index
    %c0_132 = arith.constant 0 : index
    %377 = vector.load %arg2[%c32, %c0_132] : memref<36x128xf32, #tpu.memory_space<vmem>>, vector<1x128xf32>
    %378 = vector.broadcast %377 : vector<1x128xf32> to vector<2x128xf32>
    %379 = arith.addf %376, %378 : vector<2x128xf32>
    %380 = arith.addf %354, %379 : vector<2x128xf32>
    %c33 = arith.constant 33 : index
    %c0_133 = arith.constant 0 : index
    %381 = vector.load %arg2[%c33, %c0_133] : memref<36x128xf32, #tpu.memory_space<vmem>>, vector<1x128xf32>
    %c34 = arith.constant 34 : index
    %c0_134 = arith.constant 0 : index
    %382 = vector.load %arg2[%c34, %c0_134] : memref<36x128xf32, #tpu.memory_space<vmem>>, vector<1x128xf32>
    %383 = arith.mulf %380, %315 : vector<2x128xf32>
    %cst_135 = arith.constant dense<0.000000e+00> : vector<2xf32>
    %384 = vector.multi_reduction <add>, %383, %cst_135 [1] : vector<2x128xf32> to vector<2xf32>
    %385 = vector.shape_cast %384 : vector<2xf32> to vector<2x1xf32>
    %cst_136 = arith.constant 6.250000e-02 : f32
    %386 = vector.broadcast %cst_136 : f32 to vector<2x1xf32>
    %387 = arith.mulf %385, %386 : vector<2x1xf32>
    %388 = vector.broadcast %387 : vector<2x1xf32> to vector<2x128xf32>
    %389 = arith.subf %380, %388 : vector<2x128xf32>
    %390 = arith.mulf %389, %315 : vector<2x128xf32>
    %391 = arith.mulf %390, %390 : vector<2x128xf32>
    %cst_137 = arith.constant dense<0.000000e+00> : vector<2xf32>
    %392 = vector.multi_reduction <add>, %391, %cst_137 [1] : vector<2x128xf32> to vector<2xf32>
    %393 = vector.shape_cast %392 : vector<2xf32> to vector<2x1xf32>
    %cst_138 = arith.constant 6.250000e-02 : f32
    %394 = vector.broadcast %cst_138 : f32 to vector<2x1xf32>
    %395 = arith.mulf %393, %394 : vector<2x1xf32>
    %396 = vector.broadcast %387 : vector<2x1xf32> to vector<2x128xf32>
    %397 = arith.subf %380, %396 : vector<2x128xf32>
    %cst_139 = arith.constant 9.99999974E-6 : f32
    %398 = vector.broadcast %cst_139 : f32 to vector<2x1xf32>
    %399 = arith.addf %395, %398 : vector<2x1xf32>
    %400 = math.rsqrt %399 : vector<2x1xf32>
    %401 = vector.broadcast %400 : vector<2x1xf32> to vector<2x128xf32>
    %402 = arith.mulf %397, %401 : vector<2x128xf32>
    %403 = vector.broadcast %381 : vector<1x128xf32> to vector<2x128xf32>
    %404 = arith.mulf %402, %403 : vector<2x128xf32>
    %405 = vector.broadcast %382 : vector<1x128xf32> to vector<2x128xf32>
    %406 = arith.addf %404, %405 : vector<2x128xf32>
    %407 = arith.truncf %406 : vector<2x128xf32> to vector<2x128xbf16>
    %c6144 = arith.constant 6144 : index
    %c0_140 = arith.constant 0 : index
    %408 = vector.load %arg1[%c6144, %c0_140] : memref<6784x128xbf16, #tpu.memory_space<vmem>>, vector<128x128xbf16>
    %cst_141 = arith.constant dense<0.000000e+00> : vector<2x128xf32>
    %409 = tpu.matmul %407, %408, %cst_141 {dimension_numbers = #tpu.dot_dimension_numbers<[1], [0], [0], [1], [0, 0, 1, 1], [], []>} : vector<2x128xbf16>, vector<128x128xbf16>, vector<2x128xf32> -> vector<2x128xf32>
    %410 = arith.addf %304, %409 : vector<2x128xf32>
    %411 = vector.extract_strided_slice %410 {offsets = [0, 0], sizes = [2, 5], strides = [1, 1]} : vector<2x128xf32> to vector<2x5xf32>
    %c0_142 = arith.constant 0 : index
    %c0_143 = arith.constant 0 : index
    %412 = vector.load %arg3[%c0_142, %c0_143] : memref<2x5xf32, #tpu.memory_space<vmem>>, vector<2x5xf32>
    tpu.vector_store %arg3[%c0_142, %c0_143], %411 {strides = array<i32>} : memref<2x5xf32, #tpu.memory_space<vmem>>, vector<2x5xf32>,
    return
  }
}

</mosaic_0001>

<bundles_post_ra>
// kernel: multiscale_forward.1
= control target key start
LH: loop header
LB: loop body
LE: loop exit
PB: predicated region body
PF: predicated region fallthrough
CT: control target
= control target key end

     0   :  { %8 = vsyncpa [#allocation3], 0  ;;  %s7984_s0 = inlined_call_operand.vmem [shape: bf16[2,4352], index: 0, kind: input, shape index: {}]   ;;  %s7985_s1 = inlined_call_operand.hbm [shape: bf16[6784,128], index: 1, kind: input, shape index: {}]   ;;  %s7986_s2 = inlined_call_operand.hbm [shape: f32[36,128], index: 2, kind: input, shape index: {}]   ;;  %s7987_s3 = inlined_call_operand.hbm [shape: f32[2,5], index: 3, kind: output, shape index: {}]  }
   0x1   :  { %9 = vsyncpa [#allocation6], 0 }
   0x2   :  { %10 = vsyncpa [#allocation4], 0  ;;  %s7574_s12 = smov [#allocation2]   ;;  %s7502_s16 = scalar_lea.hbm %s7985_s1, 54272 }
   0x3   :  { %s18_s13 = sshll.u32 %s7574_s12, 4  ;;  %p7503_p0 = scmp.ne.s32.totalorder %s7985_s1, %s7502_s16  ;;  %s19_s13 = int_to_ptr.vmem [resolvable:$true] %s18_s13 }
   0x4   :  { %p7506_p1 = scmp.lt.u32.totalorder %s7502_s16, %s7985_s1 }
   0x6   :  { %p7508_p2 = pnand %p7506_p1, %p7503_p0 }
   0x8   :  { %7511 = shalt.err (!%p7508_p2)
}
   0x9   :  { %s7512_s21 = scalar_lea.vmem %s19_s13, 54272  ;;  %p7517_p4 = scmp.lt.s32.totalorder %s19_s13, %s19_s13 }
   0xa   :  { %p7513_p3 = scmp.ne.s32.totalorder %s19_s13, %s7512_s21  ;;  %p7518_p5 = scmp.lt.s32.totalorder %s7512_s21, %s7512_s21 }
   0xc   :  { %p7519_p6 = por %p7518_p5, %p7517_p4 }
   0xe   :  { %p7520_p7 = pnand %p7519_p6, %p7513_p3 }
  0x10   :  { %7523 = shalt.err (!%p7520_p7)
}
  0x11   :  { %s7575_s22 = smov 64   ;;  %s7576_s23 = smov 4  }
  0x12   :  { %24 = dma.hbm_to_vmem [thread:$0]  %s7985_s1, 54272, %s19_s13, [#allocation3], %s7575_s22, %s7575_s22, %s7576_s23  }
  0x13   :  { %s7577_s26 = smov [#allocation5]   ;;  %s7524_s30 = scalar_lea.hbm %s7986_s2, 640 }
  0x14   :  { %s30_s27 = sshll.u32 %s7577_s26, 4  ;;  %p7525_p8 = scmp.ne.s32.totalorder %s7986_s2, %s7524_s30  ;;  %s31_s27 = int_to_ptr.vmem [resolvable:$true] %s30_s27 }
  0x15   :  { %p7528_p9 = scmp.lt.u32.totalorder %s7524_s30, %s7986_s2 }
  0x17   :  { %p7530_p10 = pnand %p7528_p9, %p7525_p8 }
  0x19   :  { %7533 = shalt.err (!%p7530_p10)
}
  0x1a   :  { %s7534_s8 = scalar_lea.vmem %s31_s27, 640  ;;  %p7539_p12 = scmp.lt.s32.totalorder %s31_s27, %s31_s27 }
  0x1b   :  { %p7535_p11 = scmp.ne.s32.totalorder %s31_s27, %s7534_s8  ;;  %p7540_p13 = scmp.lt.s32.totalorder %s7534_s8, %s7534_s8 }
  0x1d   :  { %p7541_p0 = por %p7540_p13, %p7539_p12 }
  0x1f   :  { %p7542_p1 = pnand %p7541_p0, %p7535_p11 }
  0x21   :  { %7545 = shalt.err (!%p7542_p1)
}
  0x22   :  { %s7578_s1 = smov 128   ;;  %s7579_s9 = smov 8  }
  0x23   :  { %36 = dma.hbm_to_vmem [thread:$0]  %s7986_s2, 640, %s31_s27, [#allocation6], %s7578_s1, %s7578_s1, %s7579_s9  }
  0x24   :  { %7568 = dma.done.wait [#allocation3], 54272  }
  0x25   :  { %7569 = vsyncadd [#allocation3], 4294913024 }
  0x26   :  { %7570 = dma.done.wait [#allocation6], 640  }
  0x27   :  { %7571 = vsyncadd [#allocation6], 4294966656  ;;  %v7050_v0 = vld [vmem:[#allocation2 + $0x40] sm:$0xff]   ;;  %v7054_v4 = vld [vmem:[#allocation2 + $0x48] sm:$0xff]   ;;  %v7580_v21 = vmov 1966171168   ;;  %v462_v23 = vlaneseq }
  0x28   :  { %v7051_v1 = vld [vmem:[#allocation2] sm:$0xff]   ;;  %6070 = vmatprep.subr.bf16.mxu0 %v7050_v0  ;;  %v7055_v5 = vld [vmem:[#allocation2 + $0x8] sm:$0xff]   ;;  %v7058_v8 = vld [vmem:[#allocation2 + $0x50] sm:$0xff]   ;;  %v460_v22 = vunpack.c.l.s4 %v7580_v21  ;;  %vm7582_vm0 = vmmov 0   ;;  %vm2593_vm2 = vcmask 1041408   ;;  %vm5587_vm5 = vcmask 33792  }
  0x29   :  { %v7052_v2 = vld [vmem:[#allocation2 + $0xc0] sm:$0xff]   ;;  %6071 = vmatpush3.bf16.msra.mxu0 %v7051_v1  ;;  %v7056_v6 = vld [vmem:[#allocation2 + $0xc8] sm:$0xff]   ;;  %v7059_v9 = vld [vmem:[#allocation2 + $0x10] sm:$0xff]   ;;  %v463_v29 = vshrl.u32 %v462_v23, 7 }
  0x2a   :  { %v7053_v3 = vld [vmem:[#allocation2 + $0x80] sm:$0xff]   ;;  %6092 = vmatprep.subr.bf16.mxu1 %v7052_v2  ;;  %6072 = vmatprep.subr.bf16.mxu0 %v7054_v4  ;;  %v7057_v7 = vld [vmem:[#allocation2 + $0x88] sm:$0xff]   ;;  %v7060_v10 = vld [vmem:[#allocation2 + $0xd0] sm:$0xff]   ;;  %v461_v28 = vunpack.c.0.s8 %v460_v22 }
  0x2b   :  { %6093 = vmatpush3.bf16.msra.mxu1 %v7053_v3  ;;  %v7061_v11 = vld [vmem:[#allocation2 + $0x90] sm:$0xff]   ;;  %v7062_v12 = vld [vmem:[#allocation2 + $0x58] sm:$0xff]   ;;  %v7066_v16 = vld [vmem:[#allocation2 + $0x60] sm:$0xff]  }
  0x2c   :  { %6094 = vmatprep.subr.bf16.mxu1 %v7056_v6  ;;  %v7063_v13 = vld [vmem:[#allocation2 + $0x18] sm:$0xff]   ;;  %v7067_v17 = vld [vmem:[#allocation2 + $0x20] sm:$0xff]   ;;  %v7070_v20 = vld [vmem:[#allocation2 + $0x68] sm:$0xff]   ;;  %v7629_v34 = vsub.s32 %v461_v28, %v463_v29 }
  0x2d   :  { %6073 = vmatpush3.bf16.msra.mxu0 %v7055_v5  ;;  %v7064_v14 = vld [vmem:[#allocation2 + $0xd8] sm:$0xff]   ;;  %v7068_v18 = vld [vmem:[#allocation2 + $0xe0] sm:$0xff]   ;;  %v7071_v24 = vld [vmem:[#allocation2 + $0x28] sm:$0xff]  }
  0x2e   :  { %6074 = vmatprep.subr.bf16.mxu0 %v7058_v8  ;;  %v7065_v15 = vld [vmem:[#allocation2 + $0x98] sm:$0xff]   ;;  %v7069_v19 = vld [vmem:[#allocation2 + $0xa0] sm:$0xff]   ;;  %v7072_v25 = vld [vmem:[#allocation2 + $0xe8] sm:$0xff]  }
  0x2f   :  { %6095 = vmatpush3.bf16.msra.mxu1 %v7057_v7  ;;  %v7073_v26 = vld [vmem:[#allocation2 + $0xa8] sm:$0xff]   ;;  %v7074_v27 = vld [vmem:[#allocation2 + $0x70] sm:$0xff]   ;;  %v7078_v33 = vld [vmem:[#allocation2 + $0x78] sm:$0xff]  }
  0x30   :  { %6096 = vmatprep.subr.bf16.mxu1 %v7060_v10  ;;  %v7075_v30 = vld [vmem:[#allocation2 + $0x30] sm:$0xff]   ;;  %v7079_v35 = vld [vmem:[#allocation2 + $0x38] sm:$0xff]   ;;  %v45_v37 = vld [vmem:[%s7984_s0] sm:$0xff] }
  0x31   :  { %6075 = vmatpush3.bf16.msra.mxu0 %v7059_v9  ;;  %v7076_v31 = vld [vmem:[#allocation2 + $0xf0] sm:$0xff]   ;;  %v7080_v36 = vld [vmem:[#allocation2 + $0xf8] sm:$0xff]   ;;  %v458_v38 = vcombine.high %v45_v37, %v45_v37  ;;  %v465_v39 = vrot.slane %v45_v37, %v7629_v34  ;;  %v7083_v41 = vld [vmem:[#allocation2 + $0x140] sm:$0xff]  }
  0x32   :  { %6076 = vmatprep.subr.bf16.mxu0 %v7062_v12  ;;  %v7077_v32 = vld [vmem:[#allocation2 + $0xb0] sm:$0xff]   ;;  %v7082_v40 = vld [vmem:[#allocation2 + $0xb8] sm:$0xff]   ;;  %v7085_v45 = vld [vmem:[#allocation2 + $0x1c0] sm:$0xff]  }
  0x33   :  { %6097 = vmatpush3.bf16.msra.mxu1 %v7061_v11  ;;  %v473_v42 = vcombine.high %v465_v39, %v465_v39  ;;  %v481_v43 = vrot.slane %v465_v39, %v7629_v34  ;;  %v7637_v44 = vrot.slane %v458_v38, %v7629_v34  ;;  %v7084_v47 = vld [vmem:[#allocation2 + $0x100] sm:$0xff]   ;;  %v7087_v50 = vld [vmem:[#allocation2 + $0x148] sm:$0xff]   ;;  %v7091_v57 = vld [vmem:[#allocation2 + $0x150] sm:$0xff]  }
  0x34   :  { %6098 = vmatprep.subr.bf16.mxu1 %v7064_v14  ;;  %v7086_v52 = vld [vmem:[#allocation2 + $0x180] sm:$0xff]   ;;  %v7089_v54 = vld [vmem:[#allocation2 + $0x1c8] sm:$0xff]   ;;  %v7093_v59 = vld [vmem:[#allocation2 + $0x1d0] sm:$0xff]  }
  0x35   :  { %6077 = vmatpush3.bf16.msra.mxu0 %v7063_v13  ;;  %v495_v46 = vrot.slane %v473_v42, %v7629_v34  ;;  %v474_v48 = vcombine.high %v7637_v44, %v7637_v44  ;;  %v503_v49 = vcombine.high %v481_v43, %v481_v43  ;;  %v7088_v55 = vld [vmem:[#allocation2 + $0x108] sm:$0xff]   ;;  %v7092_v60 = vld [vmem:[#allocation2 + $0x110] sm:$0xff]   ;;  %v7095_v61 = vld [vmem:[#allocation2 + $0x158] sm:$0xff]  }
  0x36   :  { %6078 = vmatprep.subr.bf16.mxu0 %v7066_v16  ;;  %v7090_v58 = vld [vmem:[#allocation2 + $0x188] sm:$0xff]   ;;  %v7094_v62 = vld [vmem:[#allocation2 + $0x190] sm:$0xff]   ;;  %v7097_v63 = vld [vmem:[#allocation2 + $0x1d8] sm:$0xff]  }
  0x37   :  { %6099 = vmatpush3.bf16.msra.mxu1 %v7065_v15  ;;  %1876 = vmatprep.mubr.bf16.mxu0 %v495_v46  ;;  %v505_v51 = vcombine.high %v495_v46, %v495_v46  ;;  %v502_v53 = vrot.slane %v474_v48, %v7629_v34  ;;  %v7096_v0 = vld [vmem:[#allocation2 + $0x118] sm:$0xff]   ;;  %v7099_v1 = vld [vmem:[#allocation2 + $0x160] sm:$0xff]   ;;  %v7103_v5 = vld [vmem:[#allocation2 + $0x168] sm:$0xff]  }
  0x38   :  { %6100 = vmatprep.subr.bf16.mxu1 %v7068_v18  ;;  %v7098_v2 = vld [vmem:[#allocation2 + $0x198] sm:$0xff]   ;;  %v7101_v3 = vld [vmem:[#allocation2 + $0x1e0] sm:$0xff]   ;;  %v7105_v7 = vld [vmem:[#allocation2 + $0x1e8] sm:$0xff]  }
  0x39   :  { %6079 = vmatpush3.bf16.msra.mxu0 %v7067_v17  ;;  %1916 = vmatprep.mubr.bf16.mxu1 %v505_v51  ;;  %v506_v56 = vcombine.high %v502_v53, %v502_v53  ;;  %v7100_v4 = vld [vmem:[#allocation2 + $0x120] sm:$0xff]   ;;  %v7104_v8 = vld [vmem:[#allocation2 + $0x128] sm:$0xff]   ;;  %v7107_v9 = vld [vmem:[#allocation2 + $0x170] sm:$0xff]   ;;  %v488_v17 = vrot.slane %v7637_v44, %v7629_v34 }
  0x3a   :  { %6080 = vmatprep.subr.bf16.mxu0 %v7070_v20  ;;  %v7102_v6 = vld [vmem:[#allocation2 + $0x1a0] sm:$0xff]   ;;  %v7106_v10 = vld [vmem:[#allocation2 + $0x1a8] sm:$0xff]   ;;  %v7109_v11 = vld [vmem:[#allocation2 + $0x1f0] sm:$0xff]  }
  0x3b   :  { %6101 = vmatpush3.bf16.msra.mxu1 %v7069_v19  ;;  %v7108_v12 = vld [vmem:[#allocation2 + $0x130] sm:$0xff]   ;;  %v7111_v13 = vld [vmem:[#allocation2 + $0x178] sm:$0xff]   ;;  %v7115_v18 = vld [vmem:[#allocation2 + $0x240] sm:$0xff]   ;;  %v504_v22 = vcombine.high %v488_v17, %v488_v17 }
  0x3c   :  { %6102 = vmatprep.subr.bf16.mxu1 %v7072_v25  ;;  %v7110_v14 = vld [vmem:[#allocation2 + $0x1b0] sm:$0xff]   ;;  %v7113_v15 = vld [vmem:[#allocation2 + $0x1f8] sm:$0xff]   ;;  %v7117_v20 = vld [vmem:[#allocation2 + $0x2c0] sm:$0xff]  }
  0x3d   :  { %6081 = vmatpush3.bf16.msra.mxu0 %v7071_v24  ;;  %v7112_v16 = vld [vmem:[#allocation2 + $0x138] sm:$0xff]   ;;  %v7116_v21 = vld [vmem:[#allocation2 + $0x200] sm:$0xff]   ;;  %v7119_v24 = vld [vmem:[#allocation2 + $0x248] sm:$0xff]  }
  0x3e   :  { %6082 = vmatprep.subr.bf16.mxu0 %v7074_v27  ;;  %v7114_v19 = vld [vmem:[#allocation2 + $0x1b8] sm:$0xff]   ;;  %v7118_v25 = vld [vmem:[#allocation2 + $0x280] sm:$0xff]   ;;  %v7120_v27 = vld [vmem:[#allocation2 + $0x208] sm:$0xff]  }
  0x3f   :  { %6103 = vmatpush3.bf16.msra.mxu1 %v7073_v26  ;;  %v7121_v26 = vld [vmem:[#allocation2 + $0x2c8] sm:$0xff]   ;;  %v7123_v28 = vld [vmem:[#allocation2 + $0x250] sm:$0xff]   ;;  %v7131_v37 = vld [vmem:[#allocation2 + $0x260] sm:$0xff]  }
  0x40   :  { %6104 = vmatprep.subr.bf16.mxu1 %v7076_v31  ;;  %v7122_v29 = vld [vmem:[#allocation2 + $0x288] sm:$0xff]   ;;  %v7124_v31 = vld [vmem:[#allocation2 + $0x210] sm:$0xff]   ;;  %v7130_v38 = vld [vmem:[#allocation2 + $0x298] sm:$0xff]  }
  0x41   :  { %6083 = vmatpush3.bf16.msra.mxu0 %v7075_v30  ;;  %v7125_v30 = vld [vmem:[#allocation2 + $0x2d0] sm:$0xff]   ;;  %v7133_v39 = vld [vmem:[#allocation2 + $0x2e0] sm:$0xff]   ;;  %v7136_v44 = vld [vmem:[#allocation2 + $0x228] sm:$0xff]  }
  0x42   :  { %6084 = vmatprep.subr.bf16.mxu0 %v7078_v33  ;;  %v7126_v33 = vld [vmem:[#allocation2 + $0x290] sm:$0xff]   ;;  %v7134_v42 = vld [vmem:[#allocation2 + $0x2a0] sm:$0xff]   ;;  %v7138_v46 = vld [vmem:[#allocation2 + $0x2a8] sm:$0xff]  }
  0x43   :  { %6105 = vmatpush3.bf16.msra.mxu1 %v7077_v32  ;;  %v7127_v32 = vld [vmem:[#allocation2 + $0x258] sm:$0xff]   ;;  %v7140_v48 = vld [vmem:[#allocation2 + $0x230] sm:$0xff]  }
  0x44   :  { %6106 = vmatprep.subr.bf16.mxu1 %v7080_v36  ;;  %v7128_v36 = vld [vmem:[#allocation2 + $0x218] sm:$0xff]  }
  0x45   :  { %6085 = vmatpush3.bf16.msra.mxu0 %v7079_v35  ;;  %v7129_v35 = vld [vmem:[#allocation2 + $0x2d8] sm:$0xff]  }
  0x46   :  { %6114 = vmatprep.subr.bf16.mxu0 %v7083_v41  ;;  %v7135_v41 = vld [vmem:[#allocation2 + $0x268] sm:$0xff]   ;;  %v7145_v51 = vld [vmem:[#allocation2 + $0x2f8] sm:$0xff]  }
  0x47   :  { %6107 = vmatpush3.bf16.msra.mxu1 %v7082_v40  ;;  %v7132_v40 = vld [vmem:[#allocation2 + $0x220] sm:$0xff]  }
  0x48   :  { %6136 = vmatprep.subr.bf16.mxu1 %v7085_v45  ;;  %1877 = vmatmul.mubr.bf16.vlgmr.msra.gmra.mrb[0].mxu0 %v481_v43  ;;  %v7137_v43 = vld [vmem:[#allocation2 + $0x2e8] sm:$0xff]   ;;  %v7139_v45 = vld [vmem:[#allocation2 + $0x270] sm:$0xff]  }
  0x49   :  { %6115 = vmatpush3.bf16.msra.mxu0 %v7084_v47  ;;  %1956 = vmatprep.mubr.bf16.mxu0 %v502_v53  ;;  %v7141_v47 = vld [vmem:[#allocation2 + $0x2f0] sm:$0xff]   ;;  %v7144_v53 = vld [vmem:[#allocation2 + $0x238] sm:$0xff]  }
  0x4a   :  { %1917 = vmatmul.mubr.bf16.vlgmr.msra.gmra.mrb[0].mxu1 %v503_v49  ;;  %6116 = vmatprep.subr.bf16.mxu0 %v7087_v50  ;;  %v7143_v49 = vld [vmem:[#allocation2 + $0x278] sm:$0xff]   ;;  %v7142_v50 = vld [vmem:[#allocation2 + $0x2b0] sm:$0xff]  }
  0x4b   :  { %6137 = vmatpush3.bf16.msra.mxu1 %v7086_v52  ;;  %1996 = vmatprep.mubr.bf16.mxu1 %v506_v56  ;;  %v46_v52 = vld [vmem:[%s7984_s0 + $0x8] sm:$0xff]  ;;  %v7147_v56 = vld [vmem:[#allocation2 + $0x340] sm:$0xff]  }
  0x4c   :  { %6138 = vmatprep.subr.bf16.mxu1 %v7089_v54  ;;  %v514_v54 = vrot.slane %v46_v52, %v7629_v34 }
  0x4d   :  { %6117 = vmatpush3.bf16.msra.mxu0 %v7088_v55  ;;  %v507_v55 = vcombine.high %v46_v52, %v46_v52  ;;  %v7193_v52 = vld [vmem:[#allocation2 + $0x418] sm:$0xff]  }
  0x4e   :  { %6118 = vmatprep.subr.bf16.mxu0 %v7091_v57  ;;  %v522_v57 = vcombine.high %v514_v54, %v514_v54 }
  0x4f   :  { %6139 = vmatpush3.bf16.msra.mxu1 %v7090_v58  ;;  %v7146_v58 = vld [vmem:[#allocation2 + $0x2b8] sm:$0xff]  }
  0x50   :  { %6140 = vmatprep.subr.bf16.mxu1 %v7093_v59  ;;  %v530_v59 = vrot.slane %v514_v54, %v7629_v34  ;;  %v7195_v54 = vld [vmem:[#allocation2 + $0x498] sm:$0xff]  }
  0x51   :  { %6119 = vmatpush3.bf16.msra.mxu0 %v7092_v60  ;;  %v7651_v60 = vrot.slane %v507_v55, %v7629_v34  ;;  %v7198_v55 = vld [vmem:[#allocation2 + $0x4e0] sm:$0xff]  }
  0x52   :  { %6120 = vmatprep.subr.bf16.mxu0 %v7095_v61  ;;  %v7149_v61 = vld [vmem:[#allocation2 + $0x3c0] sm:$0xff]  }
  0x53   :  { %6141 = vmatpush3.bf16.msra.mxu1 %v7094_v62  ;;  %v544_v62 = vrot.slane %v522_v57, %v7629_v34  ;;  %v7200_v57 = vld [vmem:[#allocation2 + $0x468] sm:$0xff]  }
  0x54   :  { %6142 = vmatprep.subr.bf16.mxu1 %v7097_v63  ;;  %v7148_v63 = vld [vmem:[#allocation2 + $0x300] sm:$0xff]  }
  0x55   :  { %6121 = vmatpush3.bf16.msra.mxu0 %v7096_v0  ;;  %v523_v0 = vcombine.high %v7651_v60, %v7651_v60 }
  0x56   :  { %6122 = vmatprep.subr.bf16.mxu0 %v7099_v1  ;;  %v552_v1 = vcombine.high %v530_v59, %v530_v59 }
  0x57   :  { %6143 = vmatpush3.bf16.msra.mxu1 %v7098_v2  ;;  %v7151_v2 = vld [vmem:[#allocation2 + $0x348] sm:$0xff]  }
  0x58   :  { %6144 = vmatprep.subr.bf16.mxu1 %v7101_v3  ;;  %v554_v3 = vcombine.high %v544_v62, %v544_v62 }
  0x59   :  { %6123 = vmatpush3.bf16.msra.mxu0 %v7100_v4  ;;  %v7150_v4 = vld [vmem:[#allocation2 + $0x380] sm:$0xff]  }
  0x5a   :  { %6124 = vmatprep.subr.bf16.mxu0 %v7103_v5  ;;  %v551_v5 = vrot.slane %v523_v0, %v7629_v34  ;;  %v7205_v0 = vld [vmem:[#allocation2 + $0x430] sm:$0xff]  }
  0x5b   :  { %6145 = vmatpush3.bf16.msra.mxu1 %v7102_v6  ;;  %v7153_v6 = vld [vmem:[#allocation2 + $0x3c8] sm:$0xff]  }
  0x5c   :  { %6146 = vmatprep.subr.bf16.mxu1 %v7105_v7  ;;  %v7152_v7 = vld [vmem:[#allocation2 + $0x308] sm:$0xff]  }
  0x5d   :  { %6125 = vmatpush3.bf16.msra.mxu0 %v7104_v8  ;;  %v555_v8 = vcombine.high %v551_v5, %v551_v5 }
  0x5e   :  { %6126 = vmatprep.subr.bf16.mxu0 %v7107_v9  ;;  %v7155_v9 = vld [vmem:[#allocation2 + $0x350] sm:$0xff]  }
  0x5f   :  { %6147 = vmatpush3.bf16.msra.mxu1 %v7106_v10  ;;  %v7154_v10 = vld [vmem:[#allocation2 + $0x388] sm:$0xff]  }
  0x60   :  { %6148 = vmatprep.subr.bf16.mxu1 %v7109_v11  ;;  %v7157_v11 = vld [vmem:[#allocation2 + $0x3d0] sm:$0xff]  }
  0x61   :  { %6127 = vmatpush3.bf16.msra.mxu0 %v7108_v12  ;;  %v7156_v12 = vld [vmem:[#allocation2 + $0x310] sm:$0xff]  }
  0x62   :  { %6128 = vmatprep.subr.bf16.mxu0 %v7111_v13  ;;  %v7159_v13 = vld [vmem:[#allocation2 + $0x358] sm:$0xff]  }
  0x63   :  { %6149 = vmatpush3.bf16.msra.mxu1 %v7110_v14  ;;  %v7158_v14 = vld [vmem:[#allocation2 + $0x390] sm:$0xff]  }
  0x64   :  { %6150 = vmatprep.subr.bf16.mxu1 %v7113_v15  ;;  %v7161_v15 = vld [vmem:[#allocation2 + $0x3d8] sm:$0xff]  }
  0x65   :  { %6129 = vmatpush3.bf16.msra.mxu0 %v7112_v16  ;;  %v7160_v16 = vld [vmem:[#allocation2 + $0x318] sm:$0xff]  }
  0x66   :  { %6158 = vmatprep.subr.bf16.mxu0 %v7115_v18  ;;  %v7162_v18 = vld [vmem:[#allocation2 + $0x398] sm:$0xff]  }
  0x67   :  { %6151 = vmatpush3.bf16.msra.mxu1 %v7114_v19  ;;  %v7165_v19 = vld [vmem:[#allocation2 + $0x3e0] sm:$0xff]  }
  0x68   :  { %1957 = vmatmul.mubr.bf16.vlgmr.msra.gmra.mrb[4].mxu0 %v488_v17  ;;  %6180 = vmatprep.subr.bf16.mxu1 %v7117_v20  ;;  %v7163_v17 = vld [vmem:[#allocation2 + $0x360] sm:$0xff]  }
  0x69   :  { %6159 = vmatpush3.bf16.msra.mxu0 %v7116_v21  ;;  %2036 = vmatprep.mubr.bf16.mxu0 %v544_v62  ;;  %v7164_v20 = vld [vmem:[#allocation2 + $0x320] sm:$0xff]   ;;  %v7167_v21 = vld [vmem:[#allocation2 + $0x368] sm:$0xff]  }
  0x6a   :  { %1997 = vmatmul.mubr.bf16.vlgmr.msra.gmra.mrb[4].mxu1 %v504_v22  ;;  %6160 = vmatprep.subr.bf16.mxu0 %v7119_v24  ;;  %v7166_v22 = vld [vmem:[#allocation2 + $0x3a0] sm:$0xff]   ;;  %v7169_v24 = vld [vmem:[#allocation2 + $0x3e8] sm:$0xff]  }
  0x6b   :  { %6181 = vmatpush3.bf16.msra.mxu1 %v7118_v25  ;;  %2076 = vmatprep.mubr.bf16.mxu1 %v554_v3  ;;  %v7168_v25 = vld [vmem:[#allocation2 + $0x328] sm:$0xff]   ;;  %v7210_v3 = vld [vmem:[#allocation2 + $0x4f8] sm:$0xff]  }
  0x6c   :  { %6182 = vmatprep.subr.bf16.mxu1 %v7121_v26  ;;  %v7171_v26 = vld [vmem:[#allocation2 + $0x370] sm:$0xff]   ;;  %v7203_v62 = vld [vmem:[#allocation2 + $0x4a8] sm:$0xff]  }
  0x6d   :  { %6161 = vmatpush3.bf16.msra.mxu0 %v7120_v27  ;;  %v7170_v27 = vld [vmem:[#allocation2 + $0x3a8] sm:$0xff]  }
  0x6e   :  { %6162 = vmatprep.subr.bf16.mxu0 %v7123_v28  ;;  %v7173_v28 = vld [vmem:[#allocation2 + $0x3f0] sm:$0xff]  }
  0x6f   :  { %6183 = vmatpush3.bf16.msra.mxu1 %v7122_v29  ;;  %v7172_v29 = vld [vmem:[#allocation2 + $0x330] sm:$0xff]  }
  0x70   :  { %6184 = vmatprep.subr.bf16.mxu1 %v7125_v30  ;;  %v7175_v30 = vld [vmem:[#allocation2 + $0x378] sm:$0xff]  }
  0x71   :  { %6163 = vmatpush3.bf16.msra.mxu0 %v7124_v31  ;;  %v7174_v31 = vld [vmem:[#allocation2 + $0x3b0] sm:$0xff]  }
  0x72   :  { %6164 = vmatprep.subr.bf16.mxu0 %v7127_v32  ;;  %v7177_v32 = vld [vmem:[#allocation2 + $0x3f8] sm:$0xff]  }
  0x73   :  { %6185 = vmatpush3.bf16.msra.mxu1 %v7126_v33  ;;  %v7176_v33 = vld [vmem:[#allocation2 + $0x338] sm:$0xff]  }
  0x74   :  { %6186 = vmatprep.subr.bf16.mxu1 %v7129_v35  ;;  %v537_v35 = vrot.slane %v7651_v60, %v7629_v34  ;;  %v7201_v60 = vld [vmem:[#allocation2 + $0x428] sm:$0xff]  }
  0x75   :  { %6165 = vmatpush3.bf16.msra.mxu0 %v7128_v36  ;;  %v7180_v36 = vld [vmem:[#allocation2 + $0x440] sm:$0xff]  }
  0x76   :  { %6166 = vmatprep.subr.bf16.mxu0 %v7131_v37  ;;  %v7179_v37 = vld [vmem:[#allocation2 + $0x3b8] sm:$0xff]  }
  0x77   :  { %6187 = vmatpush3.bf16.msra.mxu1 %v7130_v38  ;;  %v7182_v38 = vld [vmem:[#allocation2 + $0x4c0] sm:$0xff]  }
  0x78   :  { %6188 = vmatprep.subr.bf16.mxu1 %v7133_v39  ;;  %v7181_v39 = vld [vmem:[#allocation2 + $0x400] sm:$0xff]  }
  0x79   :  { %6167 = vmatpush3.bf16.msra.mxu0 %v7132_v40  ;;  %v553_v40 = vcombine.high %v537_v35, %v537_v35 }
  0x7a   :  { %6168 = vmatprep.subr.bf16.mxu0 %v7135_v41  ;;  %v7184_v41 = vld [vmem:[#allocation2 + $0x448] sm:$0xff]  }
  0x7b   :  { %6189 = vmatpush3.bf16.msra.mxu1 %v7134_v42  ;;  %v7183_v42 = vld [vmem:[#allocation2 + $0x480] sm:$0xff]  }
  0x7c   :  { %6190 = vmatprep.subr.bf16.mxu1 %v7137_v43  ;;  %v7186_v43 = vld [vmem:[#allocation2 + $0x4c8] sm:$0xff]  }
  0x7d   :  { %6169 = vmatpush3.bf16.msra.mxu0 %v7136_v44  ;;  %v7185_v44 = vld [vmem:[#allocation2 + $0x408] sm:$0xff]  }
  0x7e   :  { %6170 = vmatprep.subr.bf16.mxu0 %v7139_v45  ;;  %v7188_v45 = vld [vmem:[#allocation2 + $0x450] sm:$0xff]  }
  0x7f   :  { %6191 = vmatpush3.bf16.msra.mxu1 %v7138_v46  ;;  %v7187_v46 = vld [vmem:[#allocation2 + $0x488] sm:$0xff]  }
  0x80   :  { %6192 = vmatprep.subr.bf16.mxu1 %v7141_v47  ;;  %v7190_v47 = vld [vmem:[#allocation2 + $0x4d0] sm:$0xff]  }
  0x81   :  { %6171 = vmatpush3.bf16.msra.mxu0 %v7140_v48  ;;  %v7189_v48 = vld [vmem:[#allocation2 + $0x410] sm:$0xff]  }
  0x82   :  { %6172 = vmatprep.subr.bf16.mxu0 %v7143_v49  ;;  %v7192_v49 = vld [vmem:[#allocation2 + $0x458] sm:$0xff]  }
  0x83   :  { %6193 = vmatpush3.bf16.msra.mxu1 %v7142_v50  ;;  %v7191_v50 = vld [vmem:[#allocation2 + $0x490] sm:$0xff]  }
  0x84   :  { %6194 = vmatprep.subr.bf16.mxu1 %v7145_v51  ;;  %v7194_v51 = vld [vmem:[#allocation2 + $0x4d8] sm:$0xff]  }
  0x85   :  { %6173 = vmatpush3.bf16.msra.mxu0 %v7144_v53  ;;  %v7196_v53 = vld [vmem:[#allocation2 + $0x460] sm:$0xff]  }
  0x86   :  { %6202 = vmatprep.subr.bf16.mxu0 %v7147_v56  ;;  %v7197_v56 = vld [vmem:[#allocation2 + $0x420] sm:$0xff]  }
  0x87   :  { %6195 = vmatpush3.bf16.msra.mxu1 %v7146_v58  ;;  %v7199_v58 = vld [vmem:[#allocation2 + $0x4a0] sm:$0xff]  }
  0x88   :  { %2037 = vmatmul.mubr.bf16.vlgmr.msra.gmra.mrb[8].mxu0 %v530_v59  ;;  %6224 = vmatprep.subr.bf16.mxu1 %v7149_v61  ;;  %v7202_v59 = vld [vmem:[#allocation2 + $0x4e8] sm:$0xff]   ;;  %v7204_v61 = vld [vmem:[#allocation2 + $0x470] sm:$0xff]  }
  0x89   :  { %6203 = vmatpush3.bf16.msra.mxu0 %v7148_v63  ;;  %2116 = vmatprep.mubr.bf16.mxu0 %v551_v5  ;;  %v7206_v63 = vld [vmem:[#allocation2 + $0x4f0] sm:$0xff]   ;;  %v7209_v5 = vld [vmem:[#allocation2 + $0x438] sm:$0xff]  }
  0x8a   :  { %2077 = vmatmul.mubr.bf16.vlgmr.msra.gmra.mrb[8].mxu1 %v552_v1  ;;  %6204 = vmatprep.subr.bf16.mxu0 %v7151_v2  ;;  %v7208_v1 = vld [vmem:[#allocation2 + $0x478] sm:$0xff]   ;;  %v7207_v2 = vld [vmem:[#allocation2 + $0x4b0] sm:$0xff]  }
  0x8b   :  { %6225 = vmatpush3.bf16.msra.mxu1 %v7150_v4  ;;  %2156 = vmatprep.mubr.bf16.mxu1 %v555_v8  ;;  %v47_v4 = vld [vmem:[%s7984_s0 + $0x10] sm:$0xff]  ;;  %v7212_v8 = vld [vmem:[#allocation2 + $0x540] sm:$0xff]  }
  0x8c   :  { %6226 = vmatprep.subr.bf16.mxu1 %v7153_v6  ;;  %v563_v6 = vrot.slane %v47_v4, %v7629_v34 }
  0x8d   :  { %6205 = vmatpush3.bf16.msra.mxu0 %v7152_v7  ;;  %v556_v7 = vcombine.high %v47_v4, %v47_v4 }
  0x8e   :  { %6206 = vmatprep.subr.bf16.mxu0 %v7155_v9  ;;  %v571_v9 = vcombine.high %v563_v6, %v563_v6 }
  0x8f   :  { %6227 = vmatpush3.bf16.msra.mxu1 %v7154_v10  ;;  %v7211_v10 = vld [vmem:[#allocation2 + $0x4b8] sm:$0xff]  }
  0x90   :  { %6228 = vmatprep.subr.bf16.mxu1 %v7157_v11  ;;  %v579_v11 = vrot.slane %v563_v6, %v7629_v34 }
  0x91   :  { %6207 = vmatpush3.bf16.msra.mxu0 %v7156_v12  ;;  %v7665_v12 = vrot.slane %v556_v7, %v7629_v34 }
  0x92   :  { %6208 = vmatprep.subr.bf16.mxu0 %v7159_v13  ;;  %v7214_v13 = vld [vmem:[#allocation2 + $0x5c0] sm:$0xff]  }
  0x93   :  { %6229 = vmatpush3.bf16.msra.mxu1 %v7158_v14  ;;  %v593_v14 = vrot.slane %v571_v9, %v7629_v34 }
  0x94   :  { %6230 = vmatprep.subr.bf16.mxu1 %v7161_v15  ;;  %v7213_v15 = vld [vmem:[#allocation2 + $0x500] sm:$0xff]  }
  0x95   :  { %6209 = vmatpush3.bf16.msra.mxu0 %v7160_v16  ;;  %v572_v16 = vcombine.high %v7665_v12, %v7665_v12 }
  0x96   :  { %6210 = vmatprep.subr.bf16.mxu0 %v7163_v17  ;;  %v601_v17 = vcombine.high %v579_v11, %v579_v11 }
  0x97   :  { %6231 = vmatpush3.bf16.msra.mxu1 %v7162_v18  ;;  %v7216_v18 = vld [vmem:[#allocation2 + $0x548] sm:$0xff]  }
  0x98   :  { %6232 = vmatprep.subr.bf16.mxu1 %v7165_v19  ;;  %v603_v19 = vcombine.high %v593_v14, %v593_v14 }
  0x99   :  { %6211 = vmatpush3.bf16.msra.mxu0 %v7164_v20  ;;  %v7215_v20 = vld [vmem:[#allocation2 + $0x580] sm:$0xff]  }
  0x9a   :  { %6212 = vmatprep.subr.bf16.mxu0 %v7167_v21  ;;  %v600_v21 = vrot.slane %v572_v16, %v7629_v34 }
  0x9b   :  { %6233 = vmatpush3.bf16.msra.mxu1 %v7166_v22  ;;  %v7218_v22 = vld [vmem:[#allocation2 + $0x5c8] sm:$0xff]  }
  0x9c   :  { %6234 = vmatprep.subr.bf16.mxu1 %v7169_v24  ;;  %v7217_v24 = vld [vmem:[#allocation2 + $0x508] sm:$0xff]  }
  0x9d   :  { %6213 = vmatpush3.bf16.msra.mxu0 %v7168_v25  ;;  %v604_v25 = vcombine.high %v600_v21, %v600_v21 }
  0x9e   :  { %6214 = vmatprep.subr.bf16.mxu0 %v7171_v26  ;;  %v7220_v26 = vld [vmem:[#allocation2 + $0x550] sm:$0xff]  }
  0x9f   :  { %6235 = vmatpush3.bf16.msra.mxu1 %v7170_v27  ;;  %v7219_v27 = vld [vmem:[#allocation2 + $0x588] sm:$0xff]  }
  0xa0   :  { %6236 = vmatprep.subr.bf16.mxu1 %v7173_v28  ;;  %v7222_v28 = vld [vmem:[#allocation2 + $0x5d0] sm:$0xff]  }
  0xa1   :  { %6215 = vmatpush3.bf16.msra.mxu0 %v7172_v29  ;;  %v7221_v29 = vld [vmem:[#allocation2 + $0x510] sm:$0xff]  }
  0xa2   :  { %6216 = vmatprep.subr.bf16.mxu0 %v7175_v30  ;;  %v7224_v30 = vld [vmem:[#allocation2 + $0x558] sm:$0xff]  }
  0xa3   :  { %6237 = vmatpush3.bf16.msra.mxu1 %v7174_v31  ;;  %v7223_v31 = vld [vmem:[#allocation2 + $0x590] sm:$0xff]  }
  0xa4   :  { %6238 = vmatprep.subr.bf16.mxu1 %v7177_v32  ;;  %v7226_v32 = vld [vmem:[#allocation2 + $0x5d8] sm:$0xff]  }
  0xa5   :  { %6217 = vmatpush3.bf16.msra.mxu0 %v7176_v33  ;;  %v7225_v33 = vld [vmem:[#allocation2 + $0x518] sm:$0xff]  }
  0xa6   :  { %6246 = vmatprep.subr.bf16.mxu0 %v7180_v36  ;;  %v7227_v36 = vld [vmem:[#allocation2 + $0x598] sm:$0xff]  }
  0xa7   :  { %6239 = vmatpush3.bf16.msra.mxu1 %v7179_v37  ;;  %v7230_v37 = vld [vmem:[#allocation2 + $0x5e0] sm:$0xff]  }
  0xa8   :  { %2117 = vmatmul.mubr.bf16.vlgmr.msra.gmra.mrb[12].mxu0 %v537_v35  ;;  %6268 = vmatprep.subr.bf16.mxu1 %v7182_v38  ;;  %v7228_v35 = vld [vmem:[#allocation2 + $0x560] sm:$0xff]  }
  0xa9   :  { %6247 = vmatpush3.bf16.msra.mxu0 %v7181_v39  ;;  %2196 = vmatprep.mubr.bf16.mxu0 %v593_v14  ;;  %v7229_v38 = vld [vmem:[#allocation2 + $0x520] sm:$0xff]   ;;  %v7232_v39 = vld [vmem:[#allocation2 + $0x568] sm:$0xff]  }
  0xaa   :  { %2157 = vmatmul.mubr.bf16.vlgmr.msra.gmra.mrb[12].mxu1 %v553_v40  ;;  %6248 = vmatprep.subr.bf16.mxu0 %v7184_v41  ;;  %v7231_v40 = vld [vmem:[#allocation2 + $0x5a0] sm:$0xff]   ;;  %v7234_v41 = vld [vmem:[#allocation2 + $0x5e8] sm:$0xff]  }
  0xab   :  { %6269 = vmatpush3.bf16.msra.mxu1 %v7183_v42  ;;  %2236 = vmatprep.mubr.bf16.mxu1 %v603_v19  ;;  %v7233_v42 = vld [vmem:[#allocation2 + $0x528] sm:$0xff]  }
  0xac   :  { %6270 = vmatprep.subr.bf16.mxu1 %v7186_v43  ;;  %v7236_v43 = vld [vmem:[#allocation2 + $0x570] sm:$0xff]  }
  0xad   :  { %6249 = vmatpush3.bf16.msra.mxu0 %v7185_v44  ;;  %v7235_v44 = vld [vmem:[#allocation2 + $0x5a8] sm:$0xff]  }
  0xae   :  { %6250 = vmatprep.subr.bf16.mxu0 %v7188_v45  ;;  %v7238_v45 = vld [vmem:[#allocation2 + $0x5f0] sm:$0xff]  }
  0xaf   :  { %6271 = vmatpush3.bf16.msra.mxu1 %v7187_v46  ;;  %v7237_v46 = vld [vmem:[#allocation2 + $0x530] sm:$0xff]  }
  0xb0   :  { %6272 = vmatprep.subr.bf16.mxu1 %v7190_v47  ;;  %v7240_v47 = vld [vmem:[#allocation2 + $0x578] sm:$0xff]  }
  0xb1   :  { %6251 = vmatpush3.bf16.msra.mxu0 %v7189_v48  ;;  %v7239_v48 = vld [vmem:[#allocation2 + $0x5b0] sm:$0xff]  }
  0xb2   :  { %6252 = vmatprep.subr.bf16.mxu0 %v7192_v49  ;;  %v7242_v49 = vld [vmem:[#allocation2 + $0x5f8] sm:$0xff]  }
  0xb3   :  { %6273 = vmatpush3.bf16.msra.mxu1 %v7191_v50  ;;  %v7241_v50 = vld [vmem:[#allocation2 + $0x538] sm:$0xff]  }
  0xb4   :  { %6274 = vmatprep.subr.bf16.mxu1 %v7194_v51  ;;  %v586_v51 = vrot.slane %v7665_v12, %v7629_v34 }
  0xb5   :  { %6253 = vmatpush3.bf16.msra.mxu0 %v7193_v52  ;;  %v7244_v52 = vld [vmem:[#allocation2 + $0x5b8] sm:$0xff]  }
  0xb6   :  { %6254 = vmatprep.subr.bf16.mxu0 %v7196_v53  ;;  %v7245_v53 = vld [vmem:[#allocation2 + $0x600] sm:$0xff]  }
  0xb7   :  { %6275 = vmatpush3.bf16.msra.mxu1 %v7195_v54  ;;  %v7581_v54 = vmov 0.0  }
  0xb8   :  { %6276 = vmatprep.subr.bf16.mxu1 %v7198_v55  ;;  %v602_v55 = vcombine.high %v586_v51, %v586_v51 }
  0xb9   :  { %6255 = vmatpush3.bf16.msra.mxu0 %v7197_v56  ;;  %v7246_v56 = vld [vmem:[#allocation2 + $0x608] sm:$0xff]  }
  0xba   :  { %6256 = vmatprep.subr.bf16.mxu0 %v7200_v57  ;;  %v7247_v57 = vld [vmem:[#allocation2 + $0x610] sm:$0xff]  }
  0xbb   :  { %6277 = vmatpush3.bf16.msra.mxu1 %v7199_v58  ;;  %v7248_v58 = vld [vmem:[#allocation2 + $0x618] sm:$0xff]  }
  0xbc   :  { %6278 = vmatprep.subr.bf16.mxu1 %v7202_v59  ;;  %v7249_v59 = vld [vmem:[#allocation2 + $0x620] sm:$0xff]  }
  0xbd   :  { %6257 = vmatpush3.bf16.msra.mxu0 %v7201_v60  ;;  %v7250_v60 = vld [vmem:[#allocation2 + $0x628] sm:$0xff]  }
  0xbe   :  { %6258 = vmatprep.subr.bf16.mxu0 %v7204_v61  ;;  %v7251_v61 = vld [vmem:[#allocation2 + $0x630] sm:$0xff]  }
  0xbf   :  { %6279 = vmatpush3.bf16.msra.mxu1 %v7203_v62  ;;  %v7252_v62 = vld [vmem:[#allocation2 + $0x638] sm:$0xff]  }
  0xc0   :  { %6280 = vmatprep.subr.bf16.mxu1 %v7206_v63  ;;  %v5606_v63 = vld.sshfl [vmem:[%s7984_s0 + $0x18] sm:$0x1 pattern:$0x75316420] }
  0xc1   :  { %6259 = vmatpush3.bf16.msra.mxu0 %v7205_v0  ;;  %v618_v0 = vrot.slane %v5606_v63, %v7629_v34 }
  0xc2   :  { %6260 = vmatprep.subr.bf16.mxu0 %v7208_v1  ;;  %v5605_v1 = vld [vmem:[#allocation5] ss:$0 sm:$0xff] }
  0xc3   :  { %6281 = vmatpush3.bf16.msra.mxu1 %v7207_v2 }
  0xc4   :  { %6282 = vmatprep.subr.bf16.mxu1 %v7210_v3 }
  0xc5   :  { %6261 = vmatpush3.bf16.msra.mxu0 %v7209_v5 }
  0xc6   :  { %6290 = vmatprep.subr.bf16.mxu0 %v7212_v8 }
  0xc7   :  { %6283 = vmatpush3.bf16.msra.mxu1 %v7211_v10 }
  0xc8   :  { %2197 = vmatmul.mubr.bf16.vlgmr.msra.gmra.mrb[16].mxu0 %v579_v11  ;;  %6312 = vmatprep.subr.bf16.mxu1 %v7214_v13 }
  0xc9   :  { %6291 = vmatpush3.bf16.msra.mxu0 %v7213_v15  ;;  %2276 = vmatprep.mubr.bf16.mxu0 %v600_v21 }
  0xca   :  { %2237 = vmatmul.mubr.bf16.vlgmr.msra.gmra.mrb[16].mxu1 %v601_v17  ;;  %6292 = vmatprep.subr.bf16.mxu0 %v7216_v18 }
  0xcb   :  { %6313 = vmatpush3.bf16.msra.mxu1 %v7215_v20  ;;  %2316 = vmatprep.mubr.bf16.mxu1 %v604_v25  ;;  %v7253_v25 = vld [vmem:[#allocation2 + $0x680] sm:$0xff]  }
  0xcc   :  { %6314 = vmatprep.subr.bf16.mxu1 %v7218_v22 }
  0xcd   :  { %6293 = vmatpush3.bf16.msra.mxu0 %v7217_v24 }
  0xce   :  { %6294 = vmatprep.subr.bf16.mxu0 %v7220_v26 }
  0xcf   :  { %6315 = vmatpush3.bf16.msra.mxu1 %v7219_v27 }
  0xd0   :  { %6316 = vmatprep.subr.bf16.mxu1 %v7222_v28  ;;  %v7254_v28 = vld [vmem:[#allocation2 + $0x688] sm:$0xff]  }
  0xd1   :  { %6295 = vmatpush3.bf16.msra.mxu0 %v7221_v29  ;;  %v7255_v29 = vld [vmem:[#allocation2 + $0x690] sm:$0xff]  }
  0xd2   :  { %6296 = vmatprep.subr.bf16.mxu0 %v7224_v30  ;;  %v7256_v30 = vld [vmem:[#allocation2 + $0x698] sm:$0xff]  }
  0xd3   :  { %6317 = vmatpush3.bf16.msra.mxu1 %v7223_v31  ;;  %v7257_v31 = vld [vmem:[#allocation2 + $0x6a0] sm:$0xff]  }
  0xd4   :  { %6318 = vmatprep.subr.bf16.mxu1 %v7226_v32  ;;  %v7258_v32 = vld [vmem:[#allocation2 + $0x6a8] sm:$0xff]  }
  0xd5   :  { %6297 = vmatpush3.bf16.msra.mxu0 %v7225_v33  ;;  %v7259_v33 = vld [vmem:[#allocation2 + $0x6b0] sm:$0xff]  }
  0xd6   :  { %6298 = vmatprep.subr.bf16.mxu0 %v7228_v35 }
  0xd7   :  { %6319 = vmatpush3.bf16.msra.mxu1 %v7227_v36  ;;  %v7260_v36 = vld [vmem:[#allocation2 + $0x6b8] sm:$0xff]  }
  0xd8   :  { %6320 = vmatprep.subr.bf16.mxu1 %v7230_v37 }
  0xd9   :  { %6299 = vmatpush3.bf16.msra.mxu0 %v7229_v38 }
  0xda   :  { %6300 = vmatprep.subr.bf16.mxu0 %v7232_v39 }
  0xdb   :  { %6321 = vmatpush3.bf16.msra.mxu1 %v7231_v40 }
  0xdc   :  { %6322 = vmatprep.subr.bf16.mxu1 %v7234_v41 }
  0xdd   :  { %6301 = vmatpush3.bf16.msra.mxu0 %v7233_v42 }
  0xde   :  { %6302 = vmatprep.subr.bf16.mxu0 %v7236_v43 }
  0xdf   :  { %6323 = vmatpush3.bf16.msra.mxu1 %v7235_v44 }
  0xe0   :  { %6324 = vmatprep.subr.bf16.mxu1 %v7238_v45 }
  0xe1   :  { %6303 = vmatpush3.bf16.msra.mxu0 %v7237_v46 }
  0xe2   :  { %6304 = vmatprep.subr.bf16.mxu0 %v7240_v47  ;;  %v7261_v47 = vld [vmem:[#allocation2 + $0x6c0] sm:$0xff]  }
  0xe3   :  { %6325 = vmatpush3.bf16.msra.mxu1 %v7239_v48 }
  0xe4   :  { %6326 = vmatprep.subr.bf16.mxu1 %v7242_v49  ;;  %v7262_v49 = vld [vmem:[#allocation2 + $0x6c8] sm:$0xff]  }
  0xe5   :  { %6305 = vmatpush3.bf16.msra.mxu0 %v7241_v50  ;;  %v7263_v50 = vld [vmem:[#allocation2 + $0x6d0] sm:$0xff]  }
  0xe6   :  { %6611 = vmatprep.subr.bf16.mxu0 %v7581_v54 }
  0xe7   :  { %6327 = vmatpush3.bf16.msra.mxu1 %v7244_v52  ;;  %v7265_v52 = vld [vmem:[#allocation2 + $0x6e0] sm:$0xff]  }
  0xe8   :  { %2277 = vmatmul.mubr.bf16.vlgmr.msra.gmra.mrb[20].mxu0 %v586_v51  ;;  %6631 = vmatprep.subr.bf16.mxu1 %v7581_v54  ;;  %v7264_v51 = vld [vmem:[#allocation2 + $0x6d8] sm:$0xff]  }
  0xe9   :  { %6612 = vmatpush3.bf16.msra.mxu0 %v7245_v53  ;;  %6627 = vmatprep.mubr.msk.bf16.mxu0 %vm7582_vm0, %v7581_v54  ;;  %v7266_v53 = vld [vmem:[#allocation2 + $0x6e8] sm:$0xff]  }
  0xea   :  { %2317 = vmatmul.mubr.bf16.vlgmr.msra.gmra.mrb[20].mxu1 %v602_v55  ;;  %6613 = vmatprep.subr.bf16.mxu0 %v7581_v54  ;;  %v7267_v55 = vld [vmem:[#allocation2 + $0x6f0] sm:$0xff]  }
  0xeb   :  { %6647 = vmatprep.mubr.msk.bf16.mxu1 %vm7582_vm0, %v7581_v54  ;;  %6632 = vmatpush3.bf16.msra.mxu1 %v7253_v25 }
  0xec   :  { %6633 = vmatprep.subr.bf16.mxu1 %v7581_v54 }
  0xed   :  { %6614 = vmatpush3.bf16.msra.mxu0 %v7246_v56 }
  0xee   :  { %6615 = vmatprep.subr.bf16.mxu0 %v7581_v54 }
  0xef   :  { %6634 = vmatpush3.bf16.msra.mxu1 %v7254_v28 }
  0xf0   :  { %6635 = vmatprep.subr.bf16.mxu1 %v7581_v54 }
  0xf1   :  { %6616 = vmatpush3.bf16.msra.mxu0 %v7247_v57 }
  0xf2   :  { %6617 = vmatprep.subr.bf16.mxu0 %v7581_v54 }
  0xf3   :  { %6636 = vmatpush3.bf16.msra.mxu1 %v7255_v29 }
  0xf4   :  { %6637 = vmatprep.subr.bf16.mxu1 %v7581_v54 }
  0xf5   :  { %6618 = vmatpush3.bf16.msra.mxu0 %v7248_v58 }
  0xf6   :  { %6619 = vmatprep.subr.bf16.mxu0 %v7581_v54 }
  0xf7   :  { %6638 = vmatpush3.bf16.msra.mxu1 %v7256_v30 }
  0xf8   :  { %6639 = vmatprep.subr.bf16.mxu1 %v7581_v54 }
  0xf9   :  { %6620 = vmatpush3.bf16.msra.mxu0 %v7249_v59 }
  0xfa   :  { %6621 = vmatprep.subr.bf16.mxu0 %v7581_v54 }
  0xfb   :  { %6640 = vmatpush3.bf16.msra.mxu1 %v7257_v31 }
  0xfc   :  { %6641 = vmatprep.subr.bf16.mxu1 %v7581_v54 }
  0xfd   :  { %6622 = vmatpush3.bf16.msra.mxu0 %v7250_v60 }
  0xfe   :  { %6623 = vmatprep.subr.bf16.mxu0 %v7581_v54 }
  0xff   :  { %6642 = vmatpush3.bf16.msra.mxu1 %v7258_v32 }
 0x100   :  { %6643 = vmatprep.subr.bf16.mxu1 %v7581_v54 }
 0x101   :  { %6624 = vmatpush3.bf16.msra.mxu0 %v7251_v61 }
 0x102   :  { %6625 = vmatprep.subr.bf16.mxu0 %v7581_v54 }
 0x103   :  { %6644 = vmatpush3.bf16.msra.mxu1 %v7259_v33 }
 0x104   :  { %6645 = vmatprep.subr.bf16.mxu1 %v7581_v54 }
 0x105   :  { %6626 = vmatpush3.bf16.msra.mxu0 %v7252_v62 }
 0x106   :  { %6651 = vmatprep.subr.bf16.mxu0 %v7581_v54 }
 0x107   :  { %6646 = vmatpush3.bf16.msra.mxu1 %v7260_v36  ;;  %v7268_v36 = vld [vmem:[#allocation2 + $0x6f8] sm:$0xff]  }
 0x108   :  { %6628 = vmatmul.mubr.bf16.vlgmr.msra.gmra.mrb[24].mxu0 %v618_v0  ;;  %6671 = vmatprep.subr.bf16.mxu1 %v7581_v54 }
 0x109   :  { %6667 = vmatprep.mubr.msk.bf16.mxu0 %vm7582_vm0, %v7581_v54  ;;  %6652 = vmatpush3.bf16.msra.mxu0 %v7261_v47 }
 0x10a   :  { %6653 = vmatprep.subr.bf16.mxu0 %v7581_v54 }
 0x10d   :  { %6654 = vmatpush3.bf16.msra.mxu0 %v7262_v49 }
 0x10e   :  { %6655 = vmatprep.subr.bf16.mxu0 %v7581_v54 }
 0x111   :  { %6656 = vmatpush3.bf16.msra.mxu0 %v7263_v50 }
 0x112   :  { %6657 = vmatprep.subr.bf16.mxu0 %v7581_v54 }
 0x115   :  { %6658 = vmatpush3.bf16.msra.mxu0 %v7264_v51 }
 0x116   :  { %6659 = vmatprep.subr.bf16.mxu0 %v7581_v54 }
 0x119   :  { %6660 = vmatpush3.bf16.msra.mxu0 %v7265_v52 }
 0x11a   :  { %6661 = vmatprep.subr.bf16.mxu0 %v7581_v54 }
 0x11b   :  { %v6086_v2 = vpop.f32.mrb[0].mxu0 }
 0x11c   :  { %v6087_v3 = vpop.f32.mrb[1].mxu0 }
 0x11d   :  { %v6088_v4 = vadd.f32 %v6087_v3, %v6086_v2  ;;  %v6089_v5 = vpop.f32.mrb[2].mxu0  ;;  %v6108_v6 = vpop.f32.mrb[0].mxu1  ;;  %6662 = vmatpush3.bf16.msra.mxu0 %v7266_v53 }
 0x11e   :  { %v6090_v7 = vpop.f32.mrb[3].mxu0  ;;  %v6109_v8 = vpop.f32.mrb[1].mxu1  ;;  %6663 = vmatprep.subr.bf16.mxu0 %v7581_v54 }
 0x11f   :  { %v1879_v9 = vadd.f32 %v6088_v4, %v5605_v1  ;;  %v6110_v10 = vadd.f32 %v6109_v8, %v6108_v6  ;;  %v6111_v11 = vpop.f32.mrb[2].mxu1 }
 0x120   :  { %v6112_v12 = vpop.f32.mrb[3].mxu1 }
 0x121   :  { %v1919_v13 = vadd.f32 %v6110_v10, %v1879_v9  ;;  %6664 = vmatpush3.bf16.msra.mxu0 %v7267_v55 }
 0x122   :  { %6665 = vmatprep.subr.bf16.mxu0 %v7581_v54 }
 0x125   :  { %6666 = vmatpush3.bf16.msra.mxu0 %v7268_v36 }
 0x126   :  { %6691 = vmatprep.subr.bf16.mxu0 %v7581_v54 }
 0x13b   :  { %v6130_v14 = vpop.f32.mrb[4].mxu0 }
 0x13c   :  { %v6131_v15 = vpop.f32.mrb[5].mxu0 }
 0x13d   :  { %v6132_v16 = vadd.f32 %v6131_v15, %v6130_v14  ;;  %v6133_v17 = vpop.f32.mrb[6].mxu0  ;;  %v6152_v18 = vpop.f32.mrb[4].mxu1 }
 0x13e   :  { %v6134_v19 = vpop.f32.mrb[7].mxu0  ;;  %v6153_v20 = vpop.f32.mrb[5].mxu1 }
 0x13f   :  { %v1959_v21 = vadd.f32 %v6132_v16, %v1919_v13  ;;  %v6154_v22 = vadd.f32 %v6153_v20, %v6152_v18  ;;  %v6155_v24 = vpop.f32.mrb[6].mxu1 }
 0x140   :  { %v6156_v26 = vpop.f32.mrb[7].mxu1 }
 0x141   :  { %v1999_v27 = vadd.f32 %v6154_v22, %v1959_v21 }
 0x15b   :  { %v6174_v35 = vpop.f32.mrb[8].mxu0 }
 0x15c   :  { %v6175_v37 = vpop.f32.mrb[9].mxu0 }
 0x15d   :  { %v6176_v38 = vadd.f32 %v6175_v37, %v6174_v35  ;;  %v6177_v39 = vpop.f32.mrb[10].mxu0  ;;  %v6196_v40 = vpop.f32.mrb[8].mxu1  ;;  %v5808_v37 = vld [vmem:[#allocation5 + $0x1] ss:$0 sm:$0xff] }
 0x15e   :  { %v6178_v41 = vpop.f32.mrb[11].mxu0  ;;  %v6197_v42 = vpop.f32.mrb[9].mxu1 }
 0x15f   :  { %v2039_v43 = vadd.f32 %v6176_v38, %v1999_v27  ;;  %v6198_v44 = vadd.f32 %v6197_v42, %v6196_v40  ;;  %v6199_v45 = vpop.f32.mrb[10].mxu1 }
 0x160   :  { %v6200_v46 = vpop.f32.mrb[11].mxu1  ;;  %v5817_v45 = vld [vmem:[#allocation5 + $0x2] ss:$0 sm:$0xff] }
 0x161   :  { %v2079_v48 = vadd.f32 %v6198_v44, %v2039_v43  ;;  %v7714_v44 = vand.u32 127, %v462_v23  ;;  %v7269_v23 = vld [vmem:[#allocation2 + $0x700] sm:$0xff]  }
 0x163   :  { %vm2366_vm1 = vcmp.lt.s32.totalorder %v7714_v44, 32  ;;  %vm4160_vm3 = vcmp.lt.s32.totalorder %v7714_v44, 24  ;;  %vm4973_vm4 = vcmp.lt.s32.totalorder %v7714_v44, 16 }
 0x164   :  { %v7718_v50 = vsel %vm2366_vm1, 1.0, %v7581_v54 }
 0x17b   :  { %v6218_v56 = vpop.f32.mrb[12].mxu0 }
 0x17c   :  { %v6219_v57 = vpop.f32.mrb[13].mxu0 }
 0x17d   :  { %v6220_v58 = vadd.f32 %v6219_v57, %v6218_v56  ;;  %v6221_v59 = vpop.f32.mrb[14].mxu0  ;;  %v6240_v60 = vpop.f32.mrb[12].mxu1  ;;  %v7270_v56 = vld [vmem:[#allocation2 + $0x708] sm:$0xff]  }
 0x17e   :  { %v6222_v61 = vpop.f32.mrb[15].mxu0  ;;  %v6241_v62 = vpop.f32.mrb[13].mxu1 }
 0x17f   :  { %v2119_v63 = vadd.f32 %v6220_v58, %v2079_v48  ;;  %v6242_v0 = vadd.f32 %v6241_v62, %v6240_v60  ;;  %v6243_v1 = vpop.f32.mrb[14].mxu1 }
 0x180   :  { %v6244_v2 = vpop.f32.mrb[15].mxu1  ;;  %v7273_v1 = vld [vmem:[#allocation2 + $0x720] sm:$0xff]  }
 0x181   :  { %v2159_v3 = vadd.f32 %v6242_v0, %v2119_v63  ;;  %v7271_v63 = vld [vmem:[#allocation2 + $0x710] sm:$0xff]   ;;  %v7272_v0 = vld [vmem:[#allocation2 + $0x718] sm:$0xff]   ;;  %v7274_v2 = vld [vmem:[#allocation2 + $0x728] sm:$0xff]  }
 0x19b   :  { %v6262_v4 = vpop.f32.mrb[16].mxu0 }
 0x19c   :  { %v6263_v5 = vpop.f32.mrb[17].mxu0 }
 0x19d   :  { %v6264_v6 = vadd.f32 %v6263_v5, %v6262_v4  ;;  %v6265_v7 = vpop.f32.mrb[18].mxu0  ;;  %v6284_v8 = vpop.f32.mrb[16].mxu1  ;;  %v7276_v4 = vld [vmem:[#allocation2 + $0x738] sm:$0xff]   ;;  %v7277_v5 = vld [vmem:[#allocation2 + $0x740] sm:$0xff]  }
 0x19e   :  { %v6266_v9 = vpop.f32.mrb[19].mxu0  ;;  %v6285_v10 = vpop.f32.mrb[17].mxu1 }
 0x19f   :  { %v2199_v11 = vadd.f32 %v6264_v6, %v2159_v3  ;;  %v6286_v12 = vadd.f32 %v6285_v10, %v6284_v8  ;;  %v6287_v13 = vpop.f32.mrb[18].mxu1  ;;  %v7275_v3 = vld [vmem:[#allocation2 + $0x730] sm:$0xff]   ;;  %v5826_v10 = vld [vmem:[#allocation5 + $0x3] ss:$0 sm:$0xff] }
 0x1a0   :  { %v6288_v14 = vpop.f32.mrb[19].mxu1 }
 0x1a1   :  { %v2239_v15 = vadd.f32 %v6286_v12, %v2199_v11  ;;  %v5827_v12 = vld [vmem:[#allocation5 + $0x4] ss:$0 sm:$0xff] }
 0x1bb   :  { %v6306_v16 = vpop.f32.mrb[20].mxu0 }
 0x1bc   :  { %v6307_v17 = vpop.f32.mrb[21].mxu0 }
 0x1bd   :  { %v6308_v18 = vadd.f32 %v6307_v17, %v6306_v16  ;;  %v6309_v19 = vpop.f32.mrb[22].mxu0  ;;  %v6328_v20 = vpop.f32.mrb[20].mxu1  ;;  %v7278_v16 = vld [vmem:[#allocation2 + $0x748] sm:$0xff]   ;;  %v7279_v17 = vld [vmem:[#allocation2 + $0x750] sm:$0xff]  }
 0x1be   :  { %v6310_v21 = vpop.f32.mrb[23].mxu0  ;;  %v6329_v22 = vpop.f32.mrb[21].mxu1  ;;  %v7281_v19 = vld [vmem:[#allocation2 + $0x760] sm:$0xff]  }
 0x1bf   :  { %v2279_v24 = vadd.f32 %v6308_v18, %v2239_v15  ;;  %v6330_v25 = vadd.f32 %v6329_v22, %v6328_v20  ;;  %v6331_v26 = vpop.f32.mrb[22].mxu1  ;;  %v7280_v18 = vld [vmem:[#allocation2 + $0x758] sm:$0xff]   ;;  %v7282_v20 = vld [vmem:[#allocation2 + $0x768] sm:$0xff]   ;;  %v7283_v21 = vld [vmem:[#allocation2 + $0x770] sm:$0xff]  }
 0x1c0   :  { %v6332_v27 = vpop.f32.mrb[23].mxu1  ;;  %v7284_v22 = vld [vmem:[#allocation2 + $0x778] sm:$0xff]  }
 0x1c1   :  { %v2319_v28 = vadd.f32 %v6330_v25, %v2279_v24  ;;  %v5828_v24 = vld [vmem:[#allocation5 + $0x5] ss:$0 sm:$0xff] }
 0x1db   :  { %v2358_v29 = vpop.f32.mrb[24].mxu0 }
 0x1dc   :  { %v2359_v30 = vadd.f32 %v2358_v29, %v2319_v28  ;;  %v6629_v31 = vpop.f32.mrb[25].mxu0 }
 0x1dd   :  { %v2361_v32 = vpop.f32.mrb[26].mxu0 }
 0x1de   :  { %v2369_v33 = vpack.c.bf16 %v2359_v30, %v2359_v30  ;;  %v6630_v35 = vpop.f32.mrb[27].mxu0 }
 0x1e0   :  { %6648 = vmatmul.mubr.bf16.vlgmr.msra.gmra.mrb[24].mxu1 %v2369_v33 }
 0x1e1   :  { %6687 = vmatprep.mubr.msk.bf16.mxu1 %vm7582_vm0, %v7581_v54  ;;  %6672 = vmatpush3.bf16.msra.mxu1 %v7269_v23 }
 0x1e2   :  { %6673 = vmatprep.subr.bf16.mxu1 %v7581_v54 }
 0x1e5   :  { %6674 = vmatpush3.bf16.msra.mxu1 %v7270_v56 }
 0x1e6   :  { %6675 = vmatprep.subr.bf16.mxu1 %v7581_v54 }
 0x1e9   :  { %6676 = vmatpush3.bf16.msra.mxu1 %v7271_v63  ;;  %v7290_v63 = vld [vmem:[#allocation2 + $0x7a8] sm:$0xff]  }
 0x1ea   :  { %6677 = vmatprep.subr.bf16.mxu1 %v7581_v54 }
 0x1ed   :  { %6678 = vmatpush3.bf16.msra.mxu1 %v7272_v0  ;;  %v7291_v0 = vld [vmem:[#allocation2 + $0x7b0] sm:$0xff]  }
 0x1ee   :  { %6679 = vmatprep.subr.bf16.mxu1 %v7581_v54 }
 0x1f1   :  { %6680 = vmatpush3.bf16.msra.mxu1 %v7273_v1  ;;  %v7292_v1 = vld [vmem:[#allocation2 + $0x7b8] sm:$0xff]  }
 0x1f2   :  { %6681 = vmatprep.subr.bf16.mxu1 %v7581_v54 }
 0x1f5   :  { %6682 = vmatpush3.bf16.msra.mxu1 %v7274_v2  ;;  %v7293_v2 = vld [vmem:[#allocation2 + $0x7c0] sm:$0xff]  }
 0x1f6   :  { %6683 = vmatprep.subr.bf16.mxu1 %v7581_v54 }
 0x1f9   :  { %6684 = vmatpush3.bf16.msra.mxu1 %v7275_v3  ;;  %v7294_v3 = vld [vmem:[#allocation2 + $0x7c8] sm:$0xff]  }
 0x1fa   :  { %6685 = vmatprep.subr.bf16.mxu1 %v7581_v54 }
 0x1fd   :  { %6686 = vmatpush3.bf16.msra.mxu1 %v7276_v4  ;;  %v7295_v4 = vld [vmem:[#allocation2 + $0x7d0] sm:$0xff]  }
 0x1fe   :  { %6711 = vmatprep.subr.bf16.mxu1 %v7581_v54 }
 0x2b3   :  { %v2473_v38 = vpop.f32.mrb[24].mxu1 }
 0x2b4   :  { %v2474_v39 = vadd.f32 %v5808_v37, %v2473_v38  ;;  %v6649_v40 = vpop.f32.mrb[25].mxu1 }
 0x2b5   :  { %v2476_v41 = vpop.f32.mrb[26].mxu1 }
 0x2b6   :  { %v2479_v42 = vpack.c.bf16 %v2474_v39, %v2474_v39  ;;  %v6650_v43 = vpop.f32.mrb[27].mxu1  ;;  %v5837_v41 = vld [vmem:[#allocation5 + $0x6] ss:$0 sm:$0xff] }
 0x2b8   :  { %6668 = vmatmul.mubr.bf16.vlgmr.msra.gmra.mrb[28].mxu0 %v2479_v42 }
 0x2b9   :  { %6707 = vmatprep.mubr.msk.bf16.mxu0 %vm7582_vm0, %v7581_v54  ;;  %6692 = vmatpush3.bf16.msra.mxu0 %v7277_v5  ;;  %v7296_v5 = vld [vmem:[#allocation2 + $0x7d8] sm:$0xff]  }
 0x2ba   :  { %6693 = vmatprep.subr.bf16.mxu0 %v7581_v54 }
 0x2bd   :  { %6694 = vmatpush3.bf16.msra.mxu0 %v7278_v16 }
 0x2be   :  { %6695 = vmatprep.subr.bf16.mxu0 %v7581_v54 }
 0x2c1   :  { %6696 = vmatpush3.bf16.msra.mxu0 %v7279_v17 }
 0x2c2   :  { %6697 = vmatprep.subr.bf16.mxu0 %v7581_v54 }
 0x2c5   :  { %6698 = vmatpush3.bf16.msra.mxu0 %v7280_v18 }
 0x2c6   :  { %6699 = vmatprep.subr.bf16.mxu0 %v7581_v54 }
 0x2c9   :  { %6700 = vmatpush3.bf16.msra.mxu0 %v7281_v19  ;;  %v7300_v19 = vld [vmem:[#allocation2 + $0x7f8] sm:$0xff]  }
 0x2ca   :  { %6701 = vmatprep.subr.bf16.mxu0 %v7581_v54 }
 0x2cd   :  { %6702 = vmatpush3.bf16.msra.mxu0 %v7282_v20  ;;  %v5848_v20 = vld [vmem:[#allocation5 + $0x9] ss:$0 sm:$0xff] }
 0x2ce   :  { %6703 = vmatprep.subr.bf16.mxu0 %v7581_v54 }
 0x2d1   :  { %6704 = vmatpush3.bf16.msra.mxu0 %v7283_v21 }
 0x2d2   :  { %6705 = vmatprep.subr.bf16.mxu0 %v7581_v54 }
 0x2d5   :  { %6706 = vmatpush3.bf16.msra.mxu0 %v7284_v22 }
 0x2d6   :  { %6731 = vmatprep.subr.bf16.mxu0 %v7581_v54 }
 0x38b   :  { %v2583_v46 = vpop.f32.mrb[28].mxu0 }
 0x38c   :  { %v2584_v47 = vadd.f32 %v5817_v45, %v2583_v46  ;;  %v6669_v48 = vpop.f32.mrb[29].mxu0 }
 0x38d   :  { %v2586_v49 = vpop.f32.mrb[30].mxu0 }
 0x38e   :  { %v2589_v51 = vadd.f32 %v2584_v47, %v2359_v30  ;;  %v6670_v52 = vpop.f32.mrb[31].mxu0 }
 0x38f   :  { %v7285_v52 = vld [vmem:[#allocation2 + $0x780] sm:$0xff]  }
 0x390   :  { %v2592_v53 = vmul.f32 %v7718_v50, %v2589_v51 }
 0x392   :  { %v2594_v55 = vsel %vm2593_vm2, %v2592_v53, 0.0  ;;  %v7286_v53 = vld [vmem:[#allocation2 + $0x788] sm:$0xff]  }
 0x393   :  { %2595 = vadd.xlane.f32.xlu0 %v2594_v55 }
 0x420   :  { %v2596_v57 = vpop.xlane.xlu0 %2595 }
 0x421   :  { %v2597_v58 = vmul.f32 0.03125, %v2596_v57 }
 0x423   :  { %v2598_v59 = vsub.f32 %v2589_v51, %v2597_v58 }
 0x425   :  { %v2599_v60 = vmul.f32 %v7718_v50, %v2598_v59 }
 0x427   :  { %v2600_v61 = vmul.f32 %v2599_v60, %v2599_v60  ;;  %v7287_v60 = vld [vmem:[#allocation2 + $0x790] sm:$0xff]  }
 0x429   :  { %v2601_v62 = vsel %vm2593_vm2, %v2600_v61, 0.0  ;;  %v7288_v61 = vld [vmem:[#allocation2 + $0x798] sm:$0xff]  }
 0x42a   :  { %2602 = vadd.xlane.f32.xlu0 %v2601_v62  ;;  %v7289_v62 = vld [vmem:[#allocation2 + $0x7a0] sm:$0xff]  }
 0x4b7   :  { %v2603_v6 = vpop.xlane.xlu0 %2602 }
 0x4b8   :  { %v2604_v7 = vmul.f32 0.03125, %v2603_v6  ;;  %v7297_v6 = vld [vmem:[#allocation2 + $0x7e0] sm:$0xff]  }
 0x4ba   :  { %v2605_v8 = vadd.f32 1e-05, %v2604_v7  ;;  %v7298_v7 = vld [vmem:[#allocation2 + $0x7e8] sm:$0xff]  }
 0x4bc   :  { %7478 = vrsqrt.f32 %v2605_v8  ;;  %v7299_v8 = vld [vmem:[#allocation2 + $0x7f0] sm:$0xff]  }
 0x4c6   :  { %v7479_v9 = vpop.eup %7478 }
 0x4c7   :  { %v2607_v11 = vmul.f32 %v7479_v9, %v2598_v59 }
 0x4c9   :  { %v2612_v13 = vmul.f32 %v5826_v10, %v2607_v11 }
 0x4cb   :  { %v2617_v14 = vadd.f32 %v5827_v12, %v2612_v13  ;;  %v5846_v13 = vld [vmem:[#allocation5 + $0x7] ss:$0 sm:$0xff] }
 0x4cd   :  { %v2618_v15 = vpack.c.bf16 %v2617_v14, %v2617_v14 }
 0x4cf   :  { %6688 = vmatmul.mubr.bf16.vlgmr.msra.gmra.mrb[28].mxu1 %v2618_v15  ;;  %v5847_v15 = vld [vmem:[#allocation5 + $0x8] ss:$0 sm:$0xff] }
 0x4d0   :  { %6727 = vmatprep.mubr.msk.bf16.mxu1 %vm7582_vm0, %v7581_v54  ;;  %6712 = vmatpush3.bf16.msra.mxu1 %v7285_v52  ;;  %v7307_v52 = vld [vmem:[#allocation2 + $0x830] sm:$0xff]  }
 0x4d1   :  { %6713 = vmatprep.subr.bf16.mxu1 %v7581_v54 }
 0x4d4   :  { %6714 = vmatpush3.bf16.msra.mxu1 %v7286_v53  ;;  %v7308_v53 = vld [vmem:[#allocation2 + $0x838] sm:$0xff]  }
 0x4d5   :  { %6715 = vmatprep.subr.bf16.mxu1 %v7581_v54 }
 0x4d8   :  { %6716 = vmatpush3.bf16.msra.mxu1 %v7287_v60 }
 0x4d9   :  { %6717 = vmatprep.subr.bf16.mxu1 %v7581_v54 }
 0x4dc   :  { %6718 = vmatpush3.bf16.msra.mxu1 %v7288_v61  ;;  %v5867_v61 = vld [vmem:[#allocation5 + $0xc] ss:$0 sm:$0xff] }
 0x4dd   :  { %6719 = vmatprep.subr.bf16.mxu1 %v7581_v54 }
 0x4e0   :  { %6720 = vmatpush3.bf16.msra.mxu1 %v7289_v62 }
 0x4e1   :  { %6721 = vmatprep.subr.bf16.mxu1 %v7581_v54 }
 0x4e4   :  { %6722 = vmatpush3.bf16.msra.mxu1 %v7290_v63 }
 0x4e5   :  { %6723 = vmatprep.subr.bf16.mxu1 %v7581_v54 }
 0x4e8   :  { %6724 = vmatpush3.bf16.msra.mxu1 %v7291_v0 }
 0x4e9   :  { %6725 = vmatprep.subr.bf16.mxu1 %v7581_v54 }
 0x4ec   :  { %6726 = vmatpush3.bf16.msra.mxu1 %v7292_v1  ;;  %v7310_v1 = vld [vmem:[#allocation2 + $0x848] sm:$0xff]  }
 0x4ed   :  { %6751 = vmatprep.subr.bf16.mxu1 %v7581_v54 }
 0x5a2   :  { %v2722_v25 = vpop.f32.mrb[28].mxu1 }
 0x5a3   :  { %v2723_v26 = vadd.f32 %v5828_v24, %v2722_v25  ;;  %v6689_v27 = vpop.f32.mrb[29].mxu1 }
 0x5a4   :  { %v2725_v28 = vpop.f32.mrb[30].mxu1 }
 0x5a5   :  { %v2729_v29 = vmul.f32 0.044715, %v2723_v26  ;;  %v6690_v30 = vpop.f32.mrb[31].mxu1  ;;  %v2728_v37 = vmul.f32 0.5, %v2723_v26  ;;  %v5857_v28 = vld [vmem:[#allocation5 + $0xa] ss:$0 sm:$0xff] }
 0x5a7   :  { %v2730_v31 = vmul.f32 %v2729_v29, %v2723_v26 }
 0x5a9   :  { %v2731_v32 = vmul.f32 %v2730_v31, %v2723_v26 }
 0x5ab   :  { %v2732_v33 = vadd.f32 %v2731_v32, %v2723_v26 }
 0x5ad   :  { %v2733_v35 = vmul.f32 0.7978846, %v2732_v33 }
 0x5af   :  { %7480 = vtanh.f32 %v2733_v35 }
 0x5b9   :  { %v7481_v36 = vpop.eup %7480 }
 0x5ba   :  { %v2735_v38 = vadd.f32 1.0, %v7481_v36 }
 0x5bc   :  { %v2736_v39 = vmul.f32 %v2735_v38, %v2728_v37  ;;  %v7301_v38 = vld [vmem:[#allocation2 + $0x800] sm:$0xff]  }
 0x5be   :  { %v2737_v40 = vpack.c.bf16 %v2736_v39, %v2736_v39  ;;  %v7302_v39 = vld [vmem:[#allocation2 + $0x808] sm:$0xff]  }
 0x5c0   :  { %6708 = vmatmul.mubr.bf16.vlgmr.msra.gmra.mrb[32].mxu0 %v2737_v40 }
 0x5c1   :  { %6747 = vmatprep.mubr.msk.bf16.mxu0 %vm7582_vm0, %v7581_v54  ;;  %6732 = vmatpush3.bf16.msra.mxu0 %v7293_v2  ;;  %v7311_v2 = vld [vmem:[#allocation2 + $0x850] sm:$0xff]  }
 0x5c2   :  { %6733 = vmatprep.subr.bf16.mxu0 %v7581_v54 }
 0x5c5   :  { %6734 = vmatpush3.bf16.msra.mxu0 %v7294_v3  ;;  %v7312_v3 = vld [vmem:[#allocation2 + $0x858] sm:$0xff]  }
 0x5c6   :  { %6735 = vmatprep.subr.bf16.mxu0 %v7581_v54 }
 0x5c9   :  { %6736 = vmatpush3.bf16.msra.mxu0 %v7295_v4  ;;  %v7313_v4 = vld [vmem:[#allocation2 + $0x860] sm:$0xff]  }
 0x5ca   :  { %6737 = vmatprep.subr.bf16.mxu0 %v7581_v54 }
 0x5cd   :  { %6738 = vmatpush3.bf16.msra.mxu0 %v7296_v5  ;;  %v7314_v5 = vld [vmem:[#allocation2 + $0x868] sm:$0xff]  }
 0x5ce   :  { %6739 = vmatprep.subr.bf16.mxu0 %v7581_v54 }
 0x5d1   :  { %6740 = vmatpush3.bf16.msra.mxu0 %v7297_v6  ;;  %v7315_v6 = vld [vmem:[#allocation2 + $0x870] sm:$0xff]  }
 0x5d2   :  { %6741 = vmatprep.subr.bf16.mxu0 %v7581_v54 }
 0x5d5   :  { %6742 = vmatpush3.bf16.msra.mxu0 %v7298_v7  ;;  %v7316_v7 = vld [vmem:[#allocation2 + $0x878] sm:$0xff]  }
 0x5d6   :  { %6743 = vmatprep.subr.bf16.mxu0 %v7581_v54 }
 0x5d9   :  { %6744 = vmatpush3.bf16.msra.mxu0 %v7299_v8  ;;  %v5868_v8 = vld [vmem:[#allocation5 + $0xd] ss:$0 sm:$0xff] }
 0x5da   :  { %6745 = vmatprep.subr.bf16.mxu0 %v7581_v54 }
 0x5dd   :  { %6746 = vmatpush3.bf16.msra.mxu0 %v7300_v19 }
 0x5de   :  { %6771 = vmatprep.subr.bf16.mxu0 %v7581_v54 }
 0x693   :  { %v2841_v42 = vpop.f32.mrb[32].mxu0 }
 0x694   :  { %v2842_v43 = vadd.f32 %v5837_v41, %v2841_v42  ;;  %v6709_v45 = vpop.f32.mrb[33].mxu0 }
 0x695   :  { %v2844_v46 = vpop.f32.mrb[34].mxu0 }
 0x696   :  { %v2847_v47 = vadd.f32 %v2842_v43, %v2617_v14  ;;  %v6710_v48 = vpop.f32.mrb[35].mxu0 }
 0x697   :  { %v7304_v48 = vld [vmem:[#allocation2 + $0x818] sm:$0xff]  }
 0x698   :  { %v2850_v49 = vmul.f32 %v7718_v50, %v2847_v47 }
 0x69a   :  { %v2851_v51 = vsel %vm2593_vm2, %v2850_v49, 0.0  ;;  %v7305_v49 = vld [vmem:[#allocation2 + $0x820] sm:$0xff]  }
 0x69b   :  { %2852 = vadd.xlane.f32.xlu1 %v2851_v51  ;;  %v7306_v51 = vld [vmem:[#allocation2 + $0x828] sm:$0xff]  }
 0x728   :  { %v2853_v55 = vpop.xlane.xlu1 %2852 }
 0x729   :  { %v2854_v23 = vmul.f32 0.03125, %v2853_v55  ;;  %v7309_v55 = vld [vmem:[#allocation2 + $0x840] sm:$0xff]  }
 0x72b   :  { %v2855_v56 = vsub.f32 %v2847_v47, %v2854_v23  ;;  %v7303_v47 = vld [vmem:[#allocation2 + $0x810] sm:$0xff]  }
 0x72d   :  { %v2856_v57 = vmul.f32 %v7718_v50, %v2855_v56 }
 0x72f   :  { %v2857_v58 = vmul.f32 %v2856_v57, %v2856_v57 }
 0x731   :  { %v2858_v59 = vsel %vm2593_vm2, %v2857_v58, 0.0 }
 0x732   :  { %2859 = vadd.xlane.f32.xlu1 %v2858_v59  ;;  %v5866_v59 = vld [vmem:[#allocation5 + $0xb] ss:$0 sm:$0xff] }
 0x7bf   :  { %v2860_v9 = vpop.xlane.xlu1 %2859 }
 0x7c0   :  { %v2861_v10 = vmul.f32 0.03125, %v2860_v9 }
 0x7c2   :  { %v2862_v11 = vadd.f32 1e-05, %v2861_v10 }
 0x7c4   :  { %7482 = vrsqrt.f32 %v2862_v11 }
 0x7ce   :  { %v7483_v12 = vpop.eup %7482 }
 0x7cf   :  { %v2864_v14 = vmul.f32 %v7483_v12, %v2855_v56 }
 0x7d1   :  { %v2869_v16 = vmul.f32 %v5846_v13, %v2864_v14 }
 0x7d3   :  { %v2874_v17 = vadd.f32 %v5847_v15, %v2869_v16 }
 0x7d5   :  { %v2875_v18 = vpack.c.bf16 %v2874_v17, %v2874_v17 }
 0x7d7   :  { %6728 = vmatmul.mubr.bf16.vlgmr.msra.gmra.mrb[32].mxu1 %v2875_v18 }
 0x7d8   :  { %6767 = vmatprep.mubr.msk.bf16.mxu1 %vm7582_vm0, %v7581_v54  ;;  %6752 = vmatpush3.bf16.msra.mxu1 %v7301_v38  ;;  %v7321_v38 = vld [vmem:[#allocation2 + $0x8c8] sm:$0xff]  }
 0x7d9   :  { %6753 = vmatprep.subr.bf16.mxu1 %v7581_v54 }
 0x7dc   :  { %6754 = vmatpush3.bf16.msra.mxu1 %v7302_v39  ;;  %v7320_v39 = vld [vmem:[#allocation2 + $0x648] sm:$0xff]  }
 0x7dd   :  { %6755 = vmatprep.subr.bf16.mxu1 %v7581_v54 }
 0x7e0   :  { %6756 = vmatpush3.bf16.msra.mxu1 %v7303_v47 }
 0x7e1   :  { %6757 = vmatprep.subr.bf16.mxu1 %v7581_v54 }
 0x7e4   :  { %6758 = vmatpush3.bf16.msra.mxu1 %v7304_v48 }
 0x7e5   :  { %6759 = vmatprep.subr.bf16.mxu1 %v7581_v54 }
 0x7e8   :  { %6760 = vmatpush3.bf16.msra.mxu1 %v7305_v49  ;;  %v7324_v49 = vld [vmem:[#allocation2 + $0x8d0] sm:$0xff]  }
 0x7e9   :  { %6761 = vmatprep.subr.bf16.mxu1 %v7581_v54 }
 0x7ec   :  { %6762 = vmatpush3.bf16.msra.mxu1 %v7306_v51  ;;  %v7325_v51 = vld [vmem:[#allocation2 + $0x890] sm:$0xff]  }
 0x7ed   :  { %6763 = vmatprep.subr.bf16.mxu1 %v7581_v54 }
 0x7f0   :  { %6764 = vmatpush3.bf16.msra.mxu1 %v7307_v52  ;;  %v7326_v52 = vld [vmem:[#allocation2 + $0x658] sm:$0xff]  }
 0x7f1   :  { %6765 = vmatprep.subr.bf16.mxu1 %v7581_v54 }
 0x7f4   :  { %6766 = vmatpush3.bf16.msra.mxu1 %v7308_v53  ;;  %v7327_v53 = vld [vmem:[#allocation2 + $0x8d8] sm:$0xff]  }
 0x7f5   :  { %6791 = vmatprep.subr.bf16.mxu1 %v7581_v54 }
 0x8aa   :  { %v2979_v21 = vpop.f32.mrb[32].mxu1 }
 0x8ab   :  { %v2980_v22 = vadd.f32 %v5848_v20, %v2979_v21  ;;  %v6729_v24 = vpop.f32.mrb[33].mxu1 }
 0x8ac   :  { %v2982_v25 = vpop.f32.mrb[34].mxu1 }
 0x8ad   :  { %v2985_v26 = vpack.c.bf16 %v2980_v22, %v2980_v22  ;;  %v6730_v27 = vpop.f32.mrb[35].mxu1  ;;  %v5877_v25 = vld [vmem:[#allocation5 + $0xe] ss:$0 sm:$0xff] }
 0x8af   :  { %6748 = vmatmul.mubr.bf16.vlgmr.msra.gmra.mrb[36].mxu0 %v2985_v26 }
 0x8b0   :  { %6787 = vmatprep.mubr.msk.bf16.mxu0 %vm7582_vm0, %v7581_v54  ;;  %6772 = vmatpush3.bf16.msra.mxu0 %v7309_v55  ;;  %v7328_v55 = vld [vmem:[#allocation2 + $0x898] sm:$0xff]  }
 0x8b1   :  { %6773 = vmatprep.subr.bf16.mxu0 %v7581_v54 }
 0x8b4   :  { %6774 = vmatpush3.bf16.msra.mxu0 %v7310_v1  ;;  %v7341_v1 = vld [vmem:[#allocation2 + $0x940] sm:$0xff]  }
 0x8b5   :  { %6775 = vmatprep.subr.bf16.mxu0 %v7581_v54 }
 0x8b8   :  { %6776 = vmatpush3.bf16.msra.mxu0 %v7311_v2  ;;  %v7340_v2 = vld [vmem:[#allocation2 + $0x8b8] sm:$0xff]  }
 0x8b9   :  { %6777 = vmatprep.subr.bf16.mxu0 %v7581_v54 }
 0x8bc   :  { %6778 = vmatpush3.bf16.msra.mxu0 %v7312_v3  ;;  %v3490_v3 = vld [vmem:[%s7984_s0 + $0x19] sm:$0x7f] }
 0x8bd   :  { %6779 = vmatprep.subr.bf16.mxu0 %v7581_v54 }
 0x8c0   :  { %6780 = vmatpush3.bf16.msra.mxu0 %v7313_v4  ;;  %v3616_v4 = vrot.slane %v3490_v3, %v7629_v34 }
 0x8c1   :  { %6781 = vmatprep.subr.bf16.mxu0 %v7581_v54 }
 0x8c4   :  { %6782 = vmatpush3.bf16.msra.mxu0 %v7314_v5  ;;  %v3624_v5 = vcombine.high %v3616_v4, %v3616_v4 }
 0x8c5   :  { %6783 = vmatprep.subr.bf16.mxu0 %v7581_v54 }
 0x8c8   :  { %6784 = vmatpush3.bf16.msra.mxu0 %v7315_v6  ;;  %v3646_v6 = vrot.slane %v3624_v5, %v7629_v34 }
 0x8c9   :  { %6785 = vmatprep.subr.bf16.mxu0 %v7581_v54 }
 0x8cc   :  { %6786 = vmatpush3.bf16.msra.mxu0 %v7316_v7  ;;  %v7343_v7 = vld [vmem:[#allocation2 + $0x9c0] sm:$0xff]  }
 0x982   :  { %v3089_v29 = vpop.f32.mrb[36].mxu0 }
 0x983   :  { %v3090_v30 = vadd.f32 %v5857_v28, %v3089_v29  ;;  %v6749_v31 = vpop.f32.mrb[37].mxu0 }
 0x984   :  { %v3092_v32 = vpop.f32.mrb[38].mxu0 }
 0x985   :  { %v3095_v33 = vadd.f32 %v3090_v30, %v2874_v17  ;;  %v6750_v35 = vpop.f32.mrb[39].mxu0 }
 0x986   :  { %v7317_v35 = vld [vmem:[#allocation2 + $0x640] sm:$0xff]  }
 0x987   :  { %v3098_v36 = vmul.f32 %v7718_v50, %v3095_v33 }
 0x989   :  { %v3099_v37 = vsel %vm2593_vm2, %v3098_v36, 0.0  ;;  %v7318_v36 = vld [vmem:[#allocation2 + $0x8c0] sm:$0xff]  }
 0x98a   :  { %3100 = vadd.xlane.f32.xlu0 %v3099_v37  ;;  %v7319_v37 = vld [vmem:[#allocation2 + $0x880] sm:$0xff]   ;;  %6424 = vmatprep.subr.bf16.mxu0 %v7318_v36 }
 0xa17   :  { %v3101_v40 = vpop.xlane.xlu0 %3100 }
 0xa18   :  { %v3102_v41 = vmul.f32 0.03125, %v3101_v40  ;;  %v7322_v40 = vld [vmem:[#allocation2 + $0x888] sm:$0xff]  }
 0xa1a   :  { %v3103_v42 = vsub.f32 %v3095_v33, %v3102_v41  ;;  %v7323_v41 = vld [vmem:[#allocation2 + $0x650] sm:$0xff]  }
 0xa1c   :  { %v3104_v43 = vmul.f32 %v7718_v50, %v3103_v42 }
 0xa1e   :  { %v3105_v45 = vmul.f32 %v3104_v43, %v3104_v43 }
 0xa20   :  { %v3106_v46 = vsel %vm2593_vm2, %v3105_v45, 0.0 }
 0xa21   :  { %3107 = vadd.xlane.f32.xlu1 %v3106_v46 }
 0xaae   :  { %v3108_v23 = vpop.xlane.xlu1 %3107 }
 0xaaf   :  { %v3109_v56 = vmul.f32 0.03125, %v3108_v23  ;;  %v7329_v23 = vld [vmem:[#allocation2 + $0x660] sm:$0xff]  }
 0xab1   :  { %v3110_v57 = vadd.f32 1e-05, %v3109_v56  ;;  %v7330_v56 = vld [vmem:[#allocation2 + $0x8e0] sm:$0xff]  }
 0xab3   :  { %7484 = vrsqrt.f32 %v3110_v57  ;;  %v7331_v57 = vld [vmem:[#allocation2 + $0x8a0] sm:$0xff]  }
 0xabd   :  { %v7485_v58 = vpop.eup %7484 }
 0xabe   :  { %v3112_v60 = vmul.f32 %v7485_v58, %v3103_v42  ;;  %v7332_v58 = vld [vmem:[#allocation2 + $0x668] sm:$0xff]  }
 0xac0   :  { %v3117_v62 = vmul.f32 %v5866_v59, %v3112_v60  ;;  %v7334_v59 = vld [vmem:[#allocation2 + $0x8a8] sm:$0xff]   ;;  %v7336_v60 = vld [vmem:[#allocation2 + $0x8f0] sm:$0xff]  }
 0xac2   :  { %v3122_v63 = vadd.f32 %v5867_v61, %v3117_v62  ;;  %v7335_v61 = vld [vmem:[#allocation2 + $0x670] sm:$0xff]  }
 0xac3   :  { %v7337_v62 = vld [vmem:[#allocation2 + $0x8b0] sm:$0xff]  }
 0xac4   :  { %v3123_v0 = vpack.c.bf16 %v3122_v63, %v3122_v63 }
 0xac6   :  { %6768 = vmatmul.mubr.bf16.vlgmr.msra.gmra.mrb[36].mxu1 %v3123_v0  ;;  %v7338_v0 = vld [vmem:[#allocation2 + $0x678] sm:$0xff]  }
 0xac7   :  { %6807 = vmatprep.mubr.msk.bf16.mxu1 %vm7582_vm0, %v7581_v54  ;;  %6792 = vmatpush3.bf16.msra.mxu1 %v7317_v35  ;;  %v5886_v35 = vld [vmem:[#allocation5 + $0xf] ss:$0 sm:$0xff] }
 0xac8   :  { %6793 = vmatprep.subr.bf16.mxu1 %v7581_v54 }
 0xacb   :  { %6794 = vmatpush3.bf16.msra.mxu1 %v7320_v39 }
 0xacc   :  { %6795 = vmatprep.subr.bf16.mxu1 %v7581_v54 }
 0xacf   :  { %6796 = vmatpush3.bf16.msra.mxu1 %v7323_v41  ;;  %v3656_v41 = vcombine.high %v3646_v6, %v3646_v6 }
 0xad0   :  { %6797 = vmatprep.subr.bf16.mxu1 %v7581_v54 }
 0xad3   :  { %6798 = vmatpush3.bf16.msra.mxu1 %v7326_v52  ;;  %v7358_v52 = vld [vmem:[#allocation2 + $0x920] sm:$0xff]  }
 0xad4   :  { %6799 = vmatprep.subr.bf16.mxu1 %v7581_v54 }
 0xad7   :  { %6800 = vmatpush3.bf16.msra.mxu1 %v7329_v23  ;;  %v7365_v23 = vld [vmem:[#allocation2 + $0x970] sm:$0xff]  }
 0xad8   :  { %6801 = vmatprep.subr.bf16.mxu1 %v7581_v54 }
 0xadb   :  { %6802 = vmatpush3.bf16.msra.mxu1 %v7332_v58 }
 0xadc   :  { %6803 = vmatprep.subr.bf16.mxu1 %v7581_v54 }
 0xadf   :  { %6804 = vmatpush3.bf16.msra.mxu1 %v7335_v61  ;;  %v7376_v61 = vld [vmem:[#allocation2 + $0xa10] sm:$0xff]  }
 0xae0   :  { %6805 = vmatprep.subr.bf16.mxu1 %v7581_v54 }
 0xae3   :  { %6806 = vmatpush3.bf16.msra.mxu1 %v7338_v0  ;;  %v7379_v0 = vld [vmem:[#allocation2 + $0xa28] sm:$0xff]  }
 0xae4   :  { %6446 = vmatprep.subr.bf16.mxu1 %v7341_v1  ;;  %v7380_v1 = vld [vmem:[#allocation2 + $0xa30] sm:$0xff]  }
 0xb99   :  { %v3227_v9 = vpop.f32.mrb[36].mxu1 }
 0xb9a   :  { %v3228_v10 = vadd.f32 %v5868_v8, %v3227_v9  ;;  %v6769_v11 = vpop.f32.mrb[37].mxu1  ;;  %v7809_v8 = vrot.slane %v3616_v4, %v7629_v34  ;;  %v7344_v9 = vld [vmem:[#allocation2 + $0x980] sm:$0xff]  }
 0xb9b   :  { %v3230_v12 = vpop.f32.mrb[38].mxu1  ;;  %v7348_v11 = vld [vmem:[#allocation2 + $0x988] sm:$0xff]  }
 0xb9c   :  { %v3234_v13 = vmul.f32 0.044715, %v3228_v10  ;;  %v6770_v14 = vpop.f32.mrb[39].mxu1  ;;  %v3233_v20 = vmul.f32 0.5, %v3228_v10  ;;  %v7351_v12 = vld [vmem:[#allocation2 + $0x9d0] sm:$0xff]   ;;  %v3654_v58 = vcombine.high %v7809_v8, %v7809_v8 }
 0xb9d   :  { %v7355_v14 = vld [vmem:[#allocation2 + $0x9d8] sm:$0xff]  }
 0xb9e   :  { %v3235_v15 = vmul.f32 %v3234_v13, %v3228_v10  ;;  %v7352_v13 = vld [vmem:[#allocation2 + $0x990] sm:$0xff]  }
 0xba0   :  { %v3236_v16 = vmul.f32 %v3235_v15, %v3228_v10  ;;  %v7356_v15 = vld [vmem:[#allocation2 + $0x998] sm:$0xff]  }
 0xba2   :  { %v3237_v17 = vadd.f32 %v3236_v16, %v3228_v10  ;;  %v7347_v10 = vld [vmem:[#allocation2 + $0x9c8] sm:$0xff]   ;;  %v7359_v16 = vld [vmem:[#allocation2 + $0x9e0] sm:$0xff]  }
 0xba4   :  { %v3238_v18 = vmul.f32 0.7978846, %v3237_v17  ;;  %v7360_v17 = vld [vmem:[#allocation2 + $0x9a0] sm:$0xff]  }
 0xba6   :  { %7486 = vtanh.f32 %v3238_v18  ;;  %v7363_v18 = vld [vmem:[#allocation2 + $0x9e8] sm:$0xff]  }
 0xbb0   :  { %v7487_v19 = vpop.eup %7486 }
 0xbb1   :  { %v3240_v21 = vadd.f32 1.0, %v7487_v19  ;;  %v7364_v19 = vld [vmem:[#allocation2 + $0x9a8] sm:$0xff]  }
 0xbb3   :  { %v3241_v22 = vmul.f32 %v3240_v21, %v3233_v20  ;;  %v7367_v20 = vld [vmem:[#allocation2 + $0x9f0] sm:$0xff]  }
 0xbb4   :  { %v7368_v21 = vld [vmem:[#allocation2 + $0x9b0] sm:$0xff]  }
 0xbb5   :  { %v3242_v24 = vpack.c.bf16 %v3241_v22, %v3241_v22  ;;  %v3609_v22 = vcombine.high %v3490_v3, %v3490_v3 }
 0xbb7   :  { %6788 = vmatmul.mubr.bf16.vlgmr.msra.gmra.mrb[40].mxu0 %v3242_v24  ;;  %v3623_v24 = vrot.slane %v3609_v22, %v7629_v34  ;;  %v7390_v22 = vld [vmem:[#allocation2 + $0xac0] sm:$0xff]  }
 0xbb8   :  { %6425 = vmatpush3.bf16.msra.mxu0 %v7319_v37  ;;  %4032 = vmatprep.mubr.bf16.mxu0 %v3646_v6  ;;  %v5887_v37 = vld [vmem:[#allocation5 + $0x10] ss:$0 sm:$0xff] }
 0xbb9   :  { %6426 = vmatprep.subr.bf16.mxu0 %v7321_v38 }
 0xbbc   :  { %6427 = vmatpush3.bf16.msra.mxu0 %v7322_v40  ;;  %v7342_v40 = vld [vmem:[#allocation2 + $0x900] sm:$0xff]  }
 0xbbd   :  { %6428 = vmatprep.subr.bf16.mxu0 %v7324_v49  ;;  %v7353_v49 = vld [vmem:[#allocation2 + $0x958] sm:$0xff]  }
 0xbc0   :  { %6429 = vmatpush3.bf16.msra.mxu0 %v7325_v51  ;;  %v7354_v51 = vld [vmem:[#allocation2 + $0x918] sm:$0xff]  }
 0xbc1   :  { %6430 = vmatprep.subr.bf16.mxu0 %v7327_v53  ;;  %v7361_v53 = vld [vmem:[#allocation2 + $0x968] sm:$0xff]  }
 0xbc4   :  { %6431 = vmatpush3.bf16.msra.mxu0 %v7328_v55  ;;  %v7362_v55 = vld [vmem:[#allocation2 + $0x928] sm:$0xff]  }
 0xbc5   :  { %6432 = vmatprep.subr.bf16.mxu0 %v7330_v56  ;;  %v7366_v56 = vld [vmem:[#allocation2 + $0x930] sm:$0xff]  }
 0xbc8   :  { %6433 = vmatpush3.bf16.msra.mxu0 %v7331_v57  ;;  %v7369_v57 = vld [vmem:[#allocation2 + $0x978] sm:$0xff]  }
 0xc8a   :  { %v3346_v26 = vpop.f32.mrb[40].mxu0 }
 0xc8b   :  { %v3347_v27 = vadd.f32 %v5877_v25, %v3346_v26  ;;  %v6789_v28 = vpop.f32.mrb[41].mxu0  ;;  %v7371_v25 = vld [vmem:[#allocation2 + $0x9f8] sm:$0xff]  }
 0xc8c   :  { %v3349_v29 = vpop.f32.mrb[42].mxu0  ;;  %v7372_v26 = vld [vmem:[#allocation2 + $0x9b8] sm:$0xff]  }
 0xc8d   :  { %v3352_v30 = vadd.f32 %v3347_v27, %v3122_v63  ;;  %v6790_v31 = vpop.f32.mrb[43].mxu0  ;;  %v7339_v63 = vld [vmem:[#allocation2 + $0x8f8] sm:$0xff]   ;;  %v3625_v27 = vcombine.high %v3623_v24, %v3623_v24  ;;  %v7815_v29 = vrot.slane %v3623_v24, %v7629_v34  ;;  %v7391_v24 = vld [vmem:[#allocation2 + $0xac8] sm:$0xff]  }
 0xc8f   :  { %v3355_v32 = vmul.f32 %v7718_v50, %v3352_v30  ;;  %v3653_v28 = vrot.slane %v3625_v27, %v7629_v34  ;;  %v3655_v3 = vcombine.high %v7815_v29, %v7815_v29  ;;  %v7394_v27 = vld [vmem:[#allocation2 + $0xae0] sm:$0xff]  }
 0xc91   :  { %v3356_v33 = vsel %vm2593_vm2, %v3355_v32, 0.0 }
 0xc92   :  { %3357 = vadd.xlane.f32.xlu0 %v3356_v33 }
 0xd1f   :  { %v3358_v42 = vpop.xlane.xlu0 %3357 }
 0xd20   :  { %v3359_v43 = vmul.f32 0.03125, %v3358_v42 }
 0xd22   :  { %v7794_v45 = vsub.f32 %v3352_v30, %v3359_v43  ;;  %v7345_v43 = vld [vmem:[#allocation2 + $0x948] sm:$0xff]  }
 0xd24   :  { %v3361_v46 = vmul.f32 %v7718_v50, %v7794_v45  ;;  %v7333_v50 = vld [vmem:[#allocation2 + $0x8e8] sm:$0xff]  }
 0xd25   :  { %6434 = vmatprep.subr.bf16.mxu0 %v7333_v50  ;;  %v7370_v50 = vld [vmem:[#allocation2 + $0x938] sm:$0xff]  }
 0xd26   :  { %v3362_v47 = vmul.f32 %v3361_v46, %v3361_v46  ;;  %6435 = vmatpush3.bf16.msra.mxu0 %v7334_v59  ;;  %v7346_v46 = vld [vmem:[#allocation2 + $0x908] sm:$0xff]   ;;  %v7374_v59 = vld [vmem:[#allocation2 + $0xa00] sm:$0xff]  }
 0xd27   :  { %6436 = vmatprep.subr.bf16.mxu0 %v7336_v60  ;;  %v7375_v60 = vld [vmem:[#allocation2 + $0xa08] sm:$0xff]  }
 0xd28   :  { %v3363_v48 = vsel %vm2593_vm2, %v3362_v47, 0.0  ;;  %v7349_v47 = vld [vmem:[#allocation2 + $0x950] sm:$0xff]  }
 0xd29   :  { %3364 = vadd.xlane.f32.xlu1 %v3363_v48  ;;  %v7350_v48 = vld [vmem:[#allocation2 + $0x910] sm:$0xff]  }
 0xd2a   :  { %6437 = vmatpush3.bf16.msra.mxu0 %v7337_v62  ;;  %v7377_v62 = vld [vmem:[#allocation2 + $0xa18] sm:$0xff]  }
 0xd2b   :  { %6438 = vmatprep.subr.bf16.mxu0 %v7339_v63  ;;  %v7378_v63 = vld [vmem:[#allocation2 + $0xa20] sm:$0xff]  }
 0xd2e   :  { %6439 = vmatpush3.bf16.msra.mxu0 %v7340_v2  ;;  %v7381_v2 = vld [vmem:[#allocation2 + $0xa38] sm:$0xff]  }
 0xd2f   :  { %6468 = vmatprep.subr.bf16.mxu0 %v7343_v7 }
 0xd31   :  { %4033 = vmatmul.mubr.bf16.vlgmr.msra.gmra.mrb[44].mxu0 %v7809_v8 }
 0xd32   :  { %6469 = vmatpush3.bf16.msra.mxu0 %v7344_v9  ;;  %4112 = vmatprep.mubr.bf16.mxu0 %v3653_v28  ;;  %v7395_v28 = vld [vmem:[#allocation2 + $0xae8] sm:$0xff]  }
 0xd33   :  { %6470 = vmatprep.subr.bf16.mxu0 %v7347_v10 }
 0xd36   :  { %6471 = vmatpush3.bf16.msra.mxu0 %v7348_v11  ;;  %v7382_v11 = vld [vmem:[#allocation2 + $0xa80] sm:$0xff]  }
 0xd37   :  { %6472 = vmatprep.subr.bf16.mxu0 %v7351_v12 }
 0xd3a   :  { %6473 = vmatpush3.bf16.msra.mxu0 %v7352_v13 }
 0xd3b   :  { %6474 = vmatprep.subr.bf16.mxu0 %v7355_v14  ;;  %v7383_v14 = vld [vmem:[#allocation2 + $0xa88] sm:$0xff]  }
 0xd3e   :  { %6475 = vmatpush3.bf16.msra.mxu0 %v7356_v15 }
 0xd3f   :  { %6476 = vmatprep.subr.bf16.mxu0 %v7359_v16  ;;  %v7384_v16 = vld [vmem:[#allocation2 + $0xa90] sm:$0xff]  }
 0xd42   :  { %6477 = vmatpush3.bf16.msra.mxu0 %v7360_v17  ;;  %v7385_v17 = vld [vmem:[#allocation2 + $0xa98] sm:$0xff]  }
 0xd43   :  { %6478 = vmatprep.subr.bf16.mxu0 %v7363_v18  ;;  %v7386_v18 = vld [vmem:[#allocation2 + $0xaa0] sm:$0xff]  }
 0xd46   :  { %6479 = vmatpush3.bf16.msra.mxu0 %v7364_v19  ;;  %v7387_v19 = vld [vmem:[#allocation2 + $0xaa8] sm:$0xff]  }
 0xd47   :  { %6480 = vmatprep.subr.bf16.mxu0 %v7367_v20  ;;  %v7388_v20 = vld [vmem:[#allocation2 + $0xab0] sm:$0xff]  }
 0xd4a   :  { %6481 = vmatpush3.bf16.msra.mxu0 %v7368_v21  ;;  %v7389_v21 = vld [vmem:[#allocation2 + $0xab8] sm:$0xff]  }
 0xd4b   :  { %6482 = vmatprep.subr.bf16.mxu0 %v7371_v25  ;;  %v7392_v25 = vld [vmem:[#allocation2 + $0xad0] sm:$0xff]  }
 0xd4e   :  { %6483 = vmatpush3.bf16.msra.mxu0 %v7372_v26  ;;  %v7393_v26 = vld [vmem:[#allocation2 + $0xad8] sm:$0xff]  }
 0xd4f   :  { %6831 = vmatprep.subr.bf16.mxu0 %v7581_v54 }
 0xd51   :  { %4113 = vmatmul.mubr.bf16.vlgmr.msra.gmra.mrb[48].mxu0 %v7815_v29  ;;  %v7396_v29 = vld [vmem:[#allocation2 + $0xaf0] sm:$0xff]  }
 0xd52   :  { %6847 = vmatprep.mubr.msk.bf16.mxu0 %vm7582_vm0, %v7581_v54  ;;  %6832 = vmatpush3.bf16.msra.mxu0 %v7382_v11  ;;  %v7402_v11 = vld [vmem:[#allocation2 + $0xb20] sm:$0xff]  }
 0xd53   :  { %6833 = vmatprep.subr.bf16.mxu0 %v7581_v54 }
 0xd56   :  { %6834 = vmatpush3.bf16.msra.mxu0 %v7383_v14  ;;  %v7405_v14 = vld [vmem:[#allocation2 + $0xb38] sm:$0xff]  }
 0xd57   :  { %6835 = vmatprep.subr.bf16.mxu0 %v7581_v54 }
 0xd5a   :  { %6836 = vmatpush3.bf16.msra.mxu0 %v7384_v16 }
 0xd5b   :  { %6837 = vmatprep.subr.bf16.mxu0 %v7581_v54 }
 0xd5e   :  { %6838 = vmatpush3.bf16.msra.mxu0 %v7385_v17 }
 0xd5f   :  { %6839 = vmatprep.subr.bf16.mxu0 %v7581_v54 }
 0xd62   :  { %6840 = vmatpush3.bf16.msra.mxu0 %v7386_v18 }
 0xd63   :  { %6841 = vmatprep.subr.bf16.mxu0 %v7581_v54 }
 0xd66   :  { %6842 = vmatpush3.bf16.msra.mxu0 %v7387_v19 }
 0xd67   :  { %6843 = vmatprep.subr.bf16.mxu0 %v7581_v54 }
 0xd6a   :  { %6844 = vmatpush3.bf16.msra.mxu0 %v7388_v20  ;;  %v5973_v20 = vld [vmem:[#allocation5 + $0x14] ss:$0 sm:$0xff] }
 0xd6b   :  { %6845 = vmatprep.subr.bf16.mxu0 %v7581_v54 }
 0xd6e   :  { %6846 = vmatpush3.bf16.msra.mxu0 %v7389_v21 }
 0xd6f   :  { %6871 = vmatprep.subr.bf16.mxu0 %v7581_v54 }
 0xdb6   :  { %v3365_v30 = vpop.xlane.xlu1 %3364 }
 0xdb7   :  { %v3366_v31 = vmul.f32 0.03125, %v3365_v30  ;;  %v5897_v30 = vld [vmem:[#allocation5 + $0x11] ss:$0 sm:$0xff] }
 0xdb9   :  { %v3367_v32 = vadd.f32 1e-05, %v3366_v31 }
 0xdbb   :  { %7488 = vrsqrt.f32 %v3367_v32 }
 0xdc5   :  { %v7489_v33 = vpop.eup %7488 }
 0xdc6   :  { %v3369_v36 = vmul.f32 %v7489_v33, %v7794_v45  ;;  %v7357_v45 = vld [vmem:[#allocation2 + $0x960] sm:$0xff]  }
 0xdc8   :  { %v3374_v38 = vmul.f32 %v5886_v35, %v3369_v36 }
 0xdca   :  { %v3379_v39 = vadd.f32 %v5887_v37, %v3374_v38 }
 0xdcc   :  { %v3380_v42 = vpack.c.bf16 %v3379_v39, %v3379_v39 }
 0xdce   :  { %6808 = vmatmul.mubr.bf16.vlgmr.msra.gmra.mrb[40].mxu1 %v3380_v42 }
 0xdcf   :  { %6447 = vmatpush3.bf16.msra.mxu1 %v7342_v40  ;;  %4072 = vmatprep.mubr.bf16.mxu1 %v3656_v41 }
 0xdd0   :  { %6448 = vmatprep.subr.bf16.mxu1 %v7345_v43 }
 0xdd3   :  { %6449 = vmatpush3.bf16.msra.mxu1 %v7346_v46 }
 0xdd4   :  { %6450 = vmatprep.subr.bf16.mxu1 %v7349_v47 }
 0xdd7   :  { %6451 = vmatpush3.bf16.msra.mxu1 %v7350_v48  ;;  %v7397_v48 = vld [vmem:[#allocation2 + $0xaf8] sm:$0xff]  }
 0xdd8   :  { %6452 = vmatprep.subr.bf16.mxu1 %v7353_v49  ;;  %v5955_v49 = vld [vmem:[#allocation5 + $0x12] ss:$0 sm:$0xff] }
 0xddb   :  { %6453 = vmatpush3.bf16.msra.mxu1 %v7354_v51 }
 0xddc   :  { %6454 = vmatprep.subr.bf16.mxu1 %v7357_v45 }
 0xddf   :  { %6455 = vmatpush3.bf16.msra.mxu1 %v7358_v52 }
 0xde0   :  { %6456 = vmatprep.subr.bf16.mxu1 %v7361_v53 }
 0xde3   :  { %6457 = vmatpush3.bf16.msra.mxu1 %v7362_v55 }
 0xde4   :  { %6458 = vmatprep.subr.bf16.mxu1 %v7365_v23 }
 0xde7   :  { %6459 = vmatpush3.bf16.msra.mxu1 %v7366_v56  ;;  %v5964_v56 = vld [vmem:[#allocation5 + $0x13] ss:$0 sm:$0xff] }
 0xde8   :  { %6460 = vmatprep.subr.bf16.mxu1 %v7369_v57 }
 0xdeb   :  { %6461 = vmatpush3.bf16.msra.mxu1 %v7370_v50 }
 0xdec   :  { %6811 = vmatprep.subr.bf16.mxu1 %v7581_v54 }
 0xdee   :  { %4073 = vmatmul.mubr.bf16.vlgmr.msra.gmra.mrb[44].mxu1 %v3654_v58 }
 0xdef   :  { %6812 = vmatpush3.bf16.msra.mxu1 %v7374_v59  ;;  %6827 = vmatprep.mubr.msk.bf16.mxu1 %vm7582_vm0, %v7581_v54 }
 0xdf0   :  { %6813 = vmatprep.subr.bf16.mxu1 %v7581_v54 }
 0xdf3   :  { %6814 = vmatpush3.bf16.msra.mxu1 %v7375_v60  ;;  %v7861_v60 = vsel %vm4160_vm3, 1.0, %v7581_v54 }
 0xdf4   :  { %6815 = vmatprep.subr.bf16.mxu1 %v7581_v54 }
 0xdf7   :  { %6816 = vmatpush3.bf16.msra.mxu1 %v7376_v61 }
 0xdf8   :  { %6817 = vmatprep.subr.bf16.mxu1 %v7581_v54 }
 0xdfb   :  { %6818 = vmatpush3.bf16.msra.mxu1 %v7377_v62 }
 0xdfc   :  { %6819 = vmatprep.subr.bf16.mxu1 %v7581_v54 }
 0xdff   :  { %6820 = vmatpush3.bf16.msra.mxu1 %v7378_v63 }
 0xe00   :  { %6821 = vmatprep.subr.bf16.mxu1 %v7581_v54 }
 0xe03   :  { %6822 = vmatpush3.bf16.msra.mxu1 %v7379_v0 }
 0xe04   :  { %6823 = vmatprep.subr.bf16.mxu1 %v7581_v54  ;;  %v6440_v4 = vpop.f32.mrb[44].mxu0 }
 0xe05   :  { %v6441_v5 = vpop.f32.mrb[45].mxu0 }
 0xe06   :  { %v6442_v6 = vadd.f32 %v6441_v5, %v6440_v4  ;;  %v6443_v7 = vpop.f32.mrb[46].mxu0 }
 0xe07   :  { %6824 = vmatpush3.bf16.msra.mxu1 %v7380_v1  ;;  %v6444_v8 = vpop.f32.mrb[47].mxu0  ;;  %v7398_v1 = vld [vmem:[#allocation2 + $0xb00] sm:$0xff]  }
 0xe08   :  { %6825 = vmatprep.subr.bf16.mxu1 %v7581_v54  ;;  %v4035_v33 = vadd.f32 %v6442_v6, %v5897_v30  ;;  %v7410_v30 = vld [vmem:[#allocation2 + $0xb60] sm:$0xff]  }
 0xe0b   :  { %6826 = vmatpush3.bf16.msra.mxu1 %v7381_v2  ;;  %v7399_v2 = vld [vmem:[#allocation2 + $0xb08] sm:$0xff]  }
 0xe0c   :  { %6851 = vmatprep.subr.bf16.mxu1 %v7581_v54 }
 0xe0e   :  { %6828 = vmatmul.mubr.bf16.vlgmr.msra.gmra.mrb[48].mxu1 %v3655_v3 }
 0xe0f   :  { %6867 = vmatprep.mubr.msk.bf16.mxu1 %vm7582_vm0, %v7581_v54  ;;  %6852 = vmatpush3.bf16.msra.mxu1 %v7390_v22  ;;  %v5974_v22 = vld [vmem:[#allocation5 + $0x15] ss:$0 sm:$0xff] }
 0xe10   :  { %6853 = vmatprep.subr.bf16.mxu1 %v7581_v54 }
 0xe13   :  { %6854 = vmatpush3.bf16.msra.mxu1 %v7391_v24 }
 0xe14   :  { %6855 = vmatprep.subr.bf16.mxu1 %v7581_v54 }
 0xe17   :  { %6856 = vmatpush3.bf16.msra.mxu1 %v7392_v25 }
 0xe18   :  { %6857 = vmatprep.subr.bf16.mxu1 %v7581_v54 }
 0xe1b   :  { %6858 = vmatpush3.bf16.msra.mxu1 %v7393_v26 }
 0xe1c   :  { %6859 = vmatprep.subr.bf16.mxu1 %v7581_v54 }
 0xe1f   :  { %6860 = vmatpush3.bf16.msra.mxu1 %v7394_v27  ;;  %v7407_v27 = vld [vmem:[#allocation2 + $0xb48] sm:$0xff]  }
 0xe20   :  { %6861 = vmatprep.subr.bf16.mxu1 %v7581_v54 }
 0xe23   :  { %6862 = vmatpush3.bf16.msra.mxu1 %v7395_v28  ;;  %v7408_v28 = vld [vmem:[#allocation2 + $0xb50] sm:$0xff]  }
 0xe24   :  { %v6484_v9 = vpop.f32.mrb[48].mxu0  ;;  %6863 = vmatprep.subr.bf16.mxu1 %v7581_v54 }
 0xe25   :  { %v6485_v10 = vpop.f32.mrb[49].mxu0 }
 0xe26   :  { %v6486_v12 = vadd.f32 %v6485_v10, %v6484_v9  ;;  %v6487_v13 = vpop.f32.mrb[50].mxu0  ;;  %v7400_v9 = vld [vmem:[#allocation2 + $0xb10] sm:$0xff]   ;;  %v7401_v10 = vld [vmem:[#allocation2 + $0xb18] sm:$0xff]  }
 0xe27   :  { %v6488_v15 = vpop.f32.mrb[51].mxu0  ;;  %6864 = vmatpush3.bf16.msra.mxu1 %v7396_v29  ;;  %v7404_v13 = vld [vmem:[#allocation2 + $0xb30] sm:$0xff]   ;;  %v7409_v29 = vld [vmem:[#allocation2 + $0xb58] sm:$0xff]  }
 0xe28   :  { %6865 = vmatprep.subr.bf16.mxu1 %v7581_v54  ;;  %v7406_v15 = vld [vmem:[#allocation2 + $0xb40] sm:$0xff]  }
 0xe2b   :  { %6866 = vmatpush3.bf16.msra.mxu1 %v7397_v48  ;;  %v7422_v48 = vld [vmem:[#allocation2 + $0xbe0] sm:$0xff]  }
 0xe2c   :  { %6891 = vmatprep.subr.bf16.mxu1 %v7581_v54 }
 0xec1   :  { %v6462_v31 = vpop.f32.mrb[44].mxu1 }
 0xec2   :  { %v6463_v32 = vpop.f32.mrb[45].mxu1 }
 0xec3   :  { %v6464_v35 = vadd.f32 %v6463_v32, %v6462_v31  ;;  %v6465_v36 = vpop.f32.mrb[46].mxu1  ;;  %v7411_v31 = vld [vmem:[#allocation2 + $0xb68] sm:$0xff]   ;;  %v7412_v32 = vld [vmem:[#allocation2 + $0xb70] sm:$0xff]  }
 0xec4   :  { %v6466_v37 = vpop.f32.mrb[47].mxu1  ;;  %v7415_v36 = vld [vmem:[#allocation2 + $0xb80] sm:$0xff]  }
 0xec5   :  { %v4075_v38 = vadd.f32 %v6464_v35, %v4035_v33  ;;  %v7413_v33 = vld [vmem:[#allocation2 + $0xb78] sm:$0xff]   ;;  %v7414_v35 = vld [vmem:[#allocation2 + $0xbc0] sm:$0xff]   ;;  %v7416_v37 = vld [vmem:[#allocation2 + $0xbc8] sm:$0xff]  }
 0xec7   :  { %v4115_v39 = vadd.f32 %v6486_v12, %v4075_v38  ;;  %v7403_v12 = vld [vmem:[#allocation2 + $0xb28] sm:$0xff]  }
 0xec8   :  { %v7417_v38 = vld [vmem:[#allocation2 + $0xb88] sm:$0xff]  }
 0xee1   :  { %v4154_v40 = vpop.f32.mrb[48].mxu1 }
 0xee2   :  { %v4155_v41 = vadd.f32 %v4154_v40, %v4115_v39  ;;  %v6829_v42 = vpop.f32.mrb[49].mxu1  ;;  %v7418_v39 = vld [vmem:[#allocation2 + $0xbd0] sm:$0xff]   ;;  %v6004_v40 = vld.sshfl [vmem:[%s7984_s0 + $0x20] sm:$0x11 pattern:$0x75316420] }
 0xee3   :  { %v4157_v43 = vpop.f32.mrb[50].mxu1  ;;  %v7419_v42 = vld [vmem:[#allocation2 + $0xb90] sm:$0xff]   ;;  %s7583_s0 = smov [#allocation7]  }
 0xee4   :  { %v4163_v46 = vpack.c.bf16 %v4155_v41, %v4155_v41  ;;  %v6830_v47 = vpop.f32.mrb[51].mxu1  ;;  %v7420_v43 = vld [vmem:[#allocation2 + $0xbd8] sm:$0xff]   ;;  %s5595_s23 = sshll.u32 %s7583_s0, 4  ;;  %s5596_s23 = int_to_ptr.vmem [resolvable:$true] %s5595_s23 }
 0xee5   :  { %v7421_v47 = vld [vmem:[#allocation2 + $0xb98] sm:$0xff]   ;;  %s7546_s24 = scalar_lea.vmem %s5596_s23, 32  ;;  %p7551_p3 = scmp.lt.s32.totalorder %s5596_s23, %s5596_s23 }
 0xee6   :  { %6848 = vmatmul.mubr.bf16.vlgmr.msra.gmra.mrb[52].mxu0 %v4163_v46  ;;  %p7547_p2 = scmp.ne.s32.totalorder %s5596_s23, %s7546_s24  ;;  %p7552_p4 = scmp.lt.s32.totalorder %s7546_s24, %s7546_s24 }
 0xee7   :  { %6887 = vmatprep.mubr.msk.bf16.mxu0 %vm7582_vm0, %v7581_v54  ;;  %6872 = vmatpush3.bf16.msra.mxu0 %v7398_v1 }
 0xee8   :  { %6873 = vmatprep.subr.bf16.mxu0 %v7581_v54  ;;  %p7553_p5 = por %p7552_p4, %p7551_p3 }
 0xeea   :  { %p7554_p6 = pnand %p7553_p5, %p7547_p2 }
 0xeeb   :  { %6874 = vmatpush3.bf16.msra.mxu0 %v7399_v2 }
 0xeec   :  { %6875 = vmatprep.subr.bf16.mxu0 %v7581_v54 }
 0xeef   :  { %6876 = vmatpush3.bf16.msra.mxu0 %v7400_v9  ;;  %v7431_v9 = vld [vmem:[#allocation2 + $0xc48] sm:$0xff]  }
 0xef0   :  { %6877 = vmatprep.subr.bf16.mxu0 %v7581_v54 }
 0xef3   :  { %6878 = vmatpush3.bf16.msra.mxu0 %v7401_v10  ;;  %v7432_v10 = vld [vmem:[#allocation2 + $0xc50] sm:$0xff]  }
 0xef4   :  { %6879 = vmatprep.subr.bf16.mxu0 %v7581_v54 }
 0xef7   :  { %6880 = vmatpush3.bf16.msra.mxu0 %v7402_v11  ;;  %v7433_v11 = vld [vmem:[#allocation2 + $0xc58] sm:$0xff]  }
 0xef8   :  { %6881 = vmatprep.subr.bf16.mxu0 %v7581_v54 }
 0xefb   :  { %6882 = vmatpush3.bf16.msra.mxu0 %v7403_v12  ;;  %v7434_v12 = vld [vmem:[#allocation2 + $0xc60] sm:$0xff]  }
 0xefc   :  { %6883 = vmatprep.subr.bf16.mxu0 %v7581_v54 }
 0xeff   :  { %6884 = vmatpush3.bf16.msra.mxu0 %v7404_v13  ;;  %v7435_v13 = vld [vmem:[#allocation2 + $0xc68] sm:$0xff]  }
 0xf00   :  { %6885 = vmatprep.subr.bf16.mxu0 %v7581_v54 }
 0xf03   :  { %6886 = vmatpush3.bf16.msra.mxu0 %v7405_v14  ;;  %v7436_v14 = vld [vmem:[#allocation2 + $0xc70] sm:$0xff]  }
 0xf04   :  { %6544 = vmatprep.subr.bf16.mxu0 %v7414_v35 }
 0xfb9   :  { %v4267_v51 = vpop.f32.mrb[52].mxu0 }
 0xfba   :  { %v4268_v45 = vadd.f32 %v5955_v49, %v4267_v51  ;;  %v6849_v52 = vpop.f32.mrb[53].mxu0  ;;  %v7423_v49 = vld [vmem:[#allocation2 + $0xba0] sm:$0xff]   ;;  %v7424_v51 = vld [vmem:[#allocation2 + $0xbe8] sm:$0xff]  }
 0xfbb   :  { %v4270_v53 = vpop.f32.mrb[54].mxu0  ;;  %v7426_v52 = vld [vmem:[#allocation2 + $0xbf0] sm:$0xff]  }
 0xfbc   :  { %v4273_v55 = vpack.c.bf16 %v4268_v45, %v4268_v45  ;;  %v6850_v23 = vpop.f32.mrb[55].mxu0  ;;  %v7425_v45 = vld [vmem:[#allocation2 + $0xba8] sm:$0xff]   ;;  %v7427_v53 = vld [vmem:[#allocation2 + $0xbb0] sm:$0xff]  }
 0xfbd   :  { %v7429_v23 = vld [vmem:[#allocation2 + $0xbb8] sm:$0xff]  }
 0xfbe   :  { %6868 = vmatmul.mubr.bf16.vlgmr.msra.gmra.mrb[52].mxu1 %v4273_v55  ;;  %v7428_v55 = vld [vmem:[#allocation2 + $0xbf8] sm:$0xff]  }
 0xfbf   :  { %6907 = vmatprep.mubr.msk.bf16.mxu1 %vm7582_vm0, %v7581_v54  ;;  %6892 = vmatpush3.bf16.msra.mxu1 %v7406_v15 }
 0xfc0   :  { %6893 = vmatprep.subr.bf16.mxu1 %v7581_v54 }
 0xfc3   :  { %6894 = vmatpush3.bf16.msra.mxu1 %v7407_v27 }
 0xfc4   :  { %6895 = vmatprep.subr.bf16.mxu1 %v7581_v54 }
 0xfc7   :  { %6896 = vmatpush3.bf16.msra.mxu1 %v7408_v28 }
 0xfc8   :  { %6897 = vmatprep.subr.bf16.mxu1 %v7581_v54 }
 0xfcb   :  { %6898 = vmatpush3.bf16.msra.mxu1 %v7409_v29 }
 0xfcc   :  { %6899 = vmatprep.subr.bf16.mxu1 %v7581_v54 }
 0xfcf   :  { %6900 = vmatpush3.bf16.msra.mxu1 %v7410_v30 }
 0xfd0   :  { %6901 = vmatprep.subr.bf16.mxu1 %v7581_v54 }
 0xfd3   :  { %6902 = vmatpush3.bf16.msra.mxu1 %v7411_v31 }
 0xfd4   :  { %6903 = vmatprep.subr.bf16.mxu1 %v7581_v54 }
 0xfd7   :  { %6904 = vmatpush3.bf16.msra.mxu1 %v7412_v32 }
 0xfd8   :  { %6905 = vmatprep.subr.bf16.mxu1 %v7581_v54 }
 0xfdb   :  { %6906 = vmatpush3.bf16.msra.mxu1 %v7413_v33 }
 0xfdc   :  { %6911 = vmatprep.subr.bf16.mxu1 %v7581_v54 }
0x1091   :  { %v4377_v57 = vpop.f32.mrb[52].mxu1 }
0x1092   :  { %v4378_v50 = vadd.f32 %v5964_v56, %v4377_v57  ;;  %v6869_v58 = vpop.f32.mrb[53].mxu1  ;;  %v4827_v56 = vrot.slane %v6004_v40, %v7629_v34  ;;  %v5975_v57 = vld [vmem:[#allocation5 + $0x16] ss:$0 sm:$0xff] }
0x1093   :  { %v4380_v59 = vpop.f32.mrb[54].mxu1 }
0x1094   :  { %v4383_v61 = vadd.f32 %v4378_v50, %v4155_v41  ;;  %v6870_v62 = vpop.f32.mrb[55].mxu1  ;;  %v4820_v41 = vcombine.high %v6004_v40, %v6004_v40 }
0x1096   :  { %v4386_v63 = vmul.f32 %v7861_v60, %v4383_v61  ;;  %v4834_v46 = vrot.slane %v4820_v41, %v7629_v34 }
0x1098   :  { %v4387_v0 = vsel %vm2593_vm2, %v4386_v63, 0.0 }
0x1099   :  { %4388 = vadd.xlane.f32.xlu0 %v4387_v0 }
0x1126   :  { %v4389_v3 = vpop.xlane.xlu0 %4388 }
0x1127   :  { %v4390_v4 = vmul.f32 0.041666668, %v4389_v3 }
0x1129   :  { %v4391_v5 = vsub.f32 %v4383_v61, %v4390_v4 }
0x112b   :  { %v4392_v6 = vmul.f32 %v7861_v60, %v4391_v5 }
0x112d   :  { %v4393_v7 = vmul.f32 %v4392_v6, %v4392_v6 }
0x112f   :  { %v4394_v8 = vsel %vm2593_vm2, %v4393_v7, 0.0 }
0x1130   :  { %4395 = vadd.xlane.f32.xlu1 %v4394_v8  ;;  %v7430_v8 = vld [vmem:[#allocation2 + $0xc40] sm:$0xff]  }
0x11bd   :  { %v4396_v16 = vpop.xlane.xlu1 %4395 }
0x11be   :  { %v4397_v17 = vmul.f32 0.041666668, %v4396_v16  ;;  %v7437_v16 = vld [vmem:[#allocation2 + $0xc78] sm:$0xff]  }
0x11c0   :  { %v4398_v18 = vadd.f32 1e-05, %v4397_v17  ;;  %v6003_v17 = vld [vmem:[#allocation5 + $0x1a] ss:$0 sm:$0xff] }
0x11c2   :  { %7490 = vrsqrt.f32 %v4398_v18 }
0x11cc   :  { %v7491_v19 = vpop.eup %7490 }
0x11cd   :  { %v4400_v21 = vmul.f32 %v7491_v19, %v4391_v5 }
0x11cf   :  { %v4405_v24 = vmul.f32 %v5973_v20, %v4400_v21 }
0x11d1   :  { %v7875_v25 = vadd.f32 %v5974_v22, %v4405_v24 }
0x11d3   :  { %v4411_v26 = vpack.c.bf16 %v7875_v25, %v7875_v25 }
0x11d5   :  { %6888 = vmatmul.mubr.bf16.vlgmr.msra.gmra.mrb[56].mxu0 %v4411_v26  ;;  %v5984_v26 = vld [vmem:[#allocation5 + $0x17] ss:$0 sm:$0xff] }
0x11d6   :  { %6545 = vmatpush3.bf16.msra.mxu0 %v7415_v36  ;;  %4965 = vmatprep.mubr.bf16.mxu0 %v4834_v46  ;;  %v7438_v36 = vld [vmem:[#allocation2 + $0xa40] sm:$0xff]   ;;  %v7441_v46 = vld [vmem:[#allocation2 + $0xa58] sm:$0xff]  }
0x11d7   :  { %6546 = vmatprep.subr.bf16.mxu0 %v7416_v37  ;;  %v7439_v37 = vld [vmem:[#allocation2 + $0xa48] sm:$0xff]  }
0x11da   :  { %6547 = vmatpush3.bf16.msra.mxu0 %v7417_v38  ;;  %v7440_v38 = vld [vmem:[#allocation2 + $0xa50] sm:$0xff]  }
0x11db   :  { %6548 = vmatprep.subr.bf16.mxu0 %v7418_v39 }
0x11de   :  { %6549 = vmatpush3.bf16.msra.mxu0 %v7419_v42 }
0x11df   :  { %6550 = vmatprep.subr.bf16.mxu0 %v7420_v43 }
0x11e2   :  { %6551 = vmatpush3.bf16.msra.mxu0 %v7421_v47  ;;  %v7442_v47 = vld [vmem:[#allocation2 + $0xa60] sm:$0xff]  }
0x11e3   :  { %6552 = vmatprep.subr.bf16.mxu0 %v7422_v48  ;;  %v7443_v48 = vld [vmem:[#allocation2 + $0xa68] sm:$0xff]  }
0x11e6   :  { %6553 = vmatpush3.bf16.msra.mxu0 %v7423_v49  ;;  %v7444_v49 = vld [vmem:[#allocation2 + $0xa70] sm:$0xff]  }
0x11e7   :  { %6554 = vmatprep.subr.bf16.mxu0 %v7424_v51  ;;  %v7445_v51 = vld [vmem:[#allocation2 + $0xa78] sm:$0xff]  }
0x11ea   :  { %6555 = vmatpush3.bf16.msra.mxu0 %v7425_v45 }
0x11eb   :  { %6556 = vmatprep.subr.bf16.mxu0 %v7426_v52 }
0x11ee   :  { %6557 = vmatpush3.bf16.msra.mxu0 %v7427_v53 }
0x11ef   :  { %6558 = vmatprep.subr.bf16.mxu0 %v7428_v55 }
0x11f2   :  { %6559 = vmatpush3.bf16.msra.mxu0 %v7429_v23 }
0x11f3   :  { %6931 = vmatprep.subr.bf16.mxu0 %v7581_v54 }
0x11f5   :  { %4966 = vmatmul.mubr.bf16.vlgmr.msra.gmra.mrb[60].mxu0 %v4827_v56 }
0x11f6   :  { %6947 = vmatprep.mubr.msk.bf16.mxu0 %vm7582_vm0, %v7581_v54  ;;  %6932 = vmatpush3.bf16.msra.mxu0 %v7430_v8  ;;  %v7453_v8 = vld [vmem:[#allocation2 + $0xcb8] sm:$0xff]  }
0x11f7   :  { %6933 = vmatprep.subr.bf16.mxu0 %v7581_v54 }
0x11fa   :  { %6934 = vmatpush3.bf16.msra.mxu0 %v7431_v9 }
0x11fb   :  { %6935 = vmatprep.subr.bf16.mxu0 %v7581_v54 }
0x11fe   :  { %6936 = vmatpush3.bf16.msra.mxu0 %v7432_v10  ;;  %v6031_v10 = vld [vmem:[#allocation5 + $0x1c] ss:$0 sm:$0xff] }
0x11ff   :  { %6937 = vmatprep.subr.bf16.mxu0 %v7581_v54 }
0x1202   :  { %6938 = vmatpush3.bf16.msra.mxu0 %v7433_v11 }
0x1203   :  { %6939 = vmatprep.subr.bf16.mxu0 %v7581_v54 }
0x1206   :  { %6940 = vmatpush3.bf16.msra.mxu0 %v7434_v12 }
0x1207   :  { %6941 = vmatprep.subr.bf16.mxu0 %v7581_v54 }
0x120a   :  { %6942 = vmatpush3.bf16.msra.mxu0 %v7435_v13 }
0x120b   :  { %6943 = vmatprep.subr.bf16.mxu0 %v7581_v54 }
0x120e   :  { %6944 = vmatpush3.bf16.msra.mxu0 %v7436_v14 }
0x120f   :  { %6945 = vmatprep.subr.bf16.mxu0 %v7581_v54 }
0x1212   :  { %6946 = vmatpush3.bf16.msra.mxu0 %v7437_v16 }
0x1213   :  { %6971 = vmatprep.subr.bf16.mxu0 %v7581_v54 }
0x12a8   :  { %v4515_v50 = vpop.f32.mrb[56].mxu0 }
0x12a9   :  { %v4516_v58 = vadd.f32 %v5975_v57, %v4515_v50  ;;  %v6889_v59 = vpop.f32.mrb[57].mxu0  ;;  %v5993_v50 = vld [vmem:[#allocation5 + $0x18] ss:$0 sm:$0xff] }
0x12aa   :  { %v4518_v61 = vpop.f32.mrb[58].mxu0  ;;  %v5994_v59 = vld [vmem:[#allocation5 + $0x19] ss:$0 sm:$0xff] }
0x12ab   :  { %v4522_v62 = vmul.f32 0.044715, %v4516_v58  ;;  %v6890_v63 = vpop.f32.mrb[59].mxu0  ;;  %v4521_v4 = vmul.f32 0.5, %v4516_v58 }
0x12ac   :  { %v7446_v63 = vld [vmem:[#allocation2 + $0xc80] sm:$0xff]  }
0x12ad   :  { %v4523_v0 = vmul.f32 %v4522_v62, %v4516_v58 }
0x12af   :  { %v4524_v1 = vmul.f32 %v4523_v0, %v4516_v58 }
0x12b1   :  { %v4525_v2 = vadd.f32 %v4524_v1, %v4516_v58  ;;  %v7447_v1 = vld [vmem:[#allocation2 + $0xc88] sm:$0xff]  }
0x12b3   :  { %v4526_v3 = vmul.f32 0.7978846, %v4525_v2  ;;  %v7448_v2 = vld [vmem:[#allocation2 + $0xc90] sm:$0xff]  }
0x12b5   :  { %7492 = vtanh.f32 %v4526_v3  ;;  %v7449_v3 = vld [vmem:[#allocation2 + $0xc98] sm:$0xff]  }
0x12bf   :  { %v7493_v34 = vpop.eup %7492 }
0x12c0   :  { %v4528_v5 = vadd.f32 1.0, %v7493_v34  ;;  %v7450_v34 = vld [vmem:[#allocation2 + $0xca0] sm:$0xff]  }
0x12c2   :  { %v4529_v6 = vmul.f32 %v4528_v5, %v4521_v4  ;;  %v7451_v4 = vld [vmem:[#allocation2 + $0xca8] sm:$0xff]   ;;  %v6022_v5 = vld [vmem:[#allocation5 + $0x1b] ss:$0 sm:$0xff] }
0x12c4   :  { %v4530_v7 = vpack.c.bf16 %v4529_v6, %v4529_v6  ;;  %v7452_v6 = vld [vmem:[#allocation2 + $0xcb0] sm:$0xff]  }
0x12c6   :  { %6908 = vmatmul.mubr.bf16.vlgmr.msra.gmra.mrb[56].mxu1 %v4530_v7 }
0x12c7   :  { %6927 = vmatprep.mubr.msk.bf16.mxu1 %vm7582_vm0, %v7581_v54  ;;  %6912 = vmatpush3.bf16.msra.mxu1 %v7438_v36  ;;  %v7462_v36 = vld [vmem:[#allocation2 + $0xd00] sm:$0xff]  }
0x12c8   :  { %v6560_v15 = vpop.f32.mrb[60].mxu0  ;;  %6913 = vmatprep.subr.bf16.mxu1 %v7581_v54 }
0x12c9   :  { %v6561_v18 = vpop.f32.mrb[61].mxu0 }
0x12ca   :  { %v6562_v19 = vadd.f32 %v6561_v18, %v6560_v15  ;;  %v6563_v20 = vpop.f32.mrb[62].mxu0  ;;  %v7937_v15 = vsel %vm4973_vm4, 1.0, %v7581_v54 }
0x12cb   :  { %v6564_v21 = vpop.f32.mrb[63].mxu0  ;;  %6914 = vmatpush3.bf16.msra.mxu1 %v7439_v37  ;;  %v7454_v20 = vld [vmem:[#allocation2 + $0xcc0] sm:$0xff]  }
0x12cc   :  { %v7903_v22 = vadd.f32 %v6562_v19, %v6003_v17  ;;  %6915 = vmatprep.subr.bf16.mxu1 %v7581_v54  ;;  %v7455_v21 = vld [vmem:[#allocation2 + $0xcc8] sm:$0xff]  }
0x12ce   :  { %v4976_v24 = vpack.c.bf16 %v7903_v22, %v7903_v22 }
0x12cf   :  { %6916 = vmatpush3.bf16.msra.mxu1 %v7440_v38 }
0x12d0   :  { %6948 = vmatmul.mubr.bf16.vlgmr.msra.gmra.mrb[64].mxu0 %v4976_v24  ;;  %6917 = vmatprep.subr.bf16.mxu1 %v7581_v54 }
0x12d1   :  { %6987 = vmatprep.mubr.msk.bf16.mxu0 %vm7582_vm0, %v7581_v54  ;;  %6972 = vmatpush3.bf16.msra.mxu0 %v7454_v20 }
0x12d2   :  { %6973 = vmatprep.subr.bf16.mxu0 %v7581_v54 }
0x12d3   :  { %6918 = vmatpush3.bf16.msra.mxu1 %v7441_v46 }
0x12d4   :  { %6919 = vmatprep.subr.bf16.mxu1 %v7581_v54 }
0x12d5   :  { %6974 = vmatpush3.bf16.msra.mxu0 %v7455_v21 }
0x12d6   :  { %6975 = vmatprep.subr.bf16.mxu0 %v7581_v54 }
0x12d7   :  { %6920 = vmatpush3.bf16.msra.mxu1 %v7442_v47 }
0x12d8   :  { %6921 = vmatprep.subr.bf16.mxu1 %v7581_v54 }
0x12db   :  { %6922 = vmatpush3.bf16.msra.mxu1 %v7443_v48  ;;  %v7463_v48 = vld [vmem:[#allocation2 + $0xd08] sm:$0xff]  }
0x12dc   :  { %6923 = vmatprep.subr.bf16.mxu1 %v7581_v54 }
0x12df   :  { %6924 = vmatpush3.bf16.msra.mxu1 %v7444_v49  ;;  %v7464_v49 = vld [vmem:[#allocation2 + $0xd10] sm:$0xff]  }
0x12e0   :  { %6925 = vmatprep.subr.bf16.mxu1 %v7581_v54 }
0x12e3   :  { %6926 = vmatpush3.bf16.msra.mxu1 %v7445_v51  ;;  %v7465_v51 = vld [vmem:[#allocation2 + $0xd18] sm:$0xff]  }
0x12e4   :  { %6951 = vmatprep.subr.bf16.mxu1 %v7581_v54 }
0x1399   :  { %v4634_v27 = vpop.f32.mrb[56].mxu1 }
0x139a   :  { %v4635_v28 = vadd.f32 %v5984_v26, %v4634_v27  ;;  %v6909_v29 = vpop.f32.mrb[57].mxu1 }
0x139b   :  { %v4637_v30 = vpop.f32.mrb[58].mxu1  ;;  %v7456_v29 = vld [vmem:[#allocation2 + $0xcd0] sm:$0xff]  }
0x139c   :  { %v4640_v31 = vadd.f32 %v4635_v28, %v7875_v25  ;;  %v6910_v32 = vpop.f32.mrb[59].mxu1  ;;  %6976 = vmatpush3.bf16.msra.mxu0 %v7456_v29  ;;  %v7457_v30 = vld [vmem:[#allocation2 + $0xcd8] sm:$0xff]  }
0x139d   :  { %6977 = vmatprep.subr.bf16.mxu0 %v7581_v54  ;;  %v7459_v32 = vld [vmem:[#allocation2 + $0xce8] sm:$0xff]  }
0x139e   :  { %v4643_v33 = vmul.f32 %v7861_v60, %v4640_v31 }
0x13a0   :  { %v4644_v35 = vsel %vm2593_vm2, %v4643_v33, 0.0  ;;  %6978 = vmatpush3.bf16.msra.mxu0 %v7457_v30  ;;  %v7460_v33 = vld [vmem:[#allocation2 + $0xcf0] sm:$0xff]  }
0x13a1   :  { %4645 = vadd.xlane.f32.xlu0 %v4644_v35  ;;  %6979 = vmatprep.subr.bf16.mxu0 %v7581_v54  ;;  %v7461_v35 = vld [vmem:[#allocation2 + $0xcf8] sm:$0xff]  }
0x142e   :  { %v4646_v39 = vpop.xlane.xlu0 %4645 }
0x142f   :  { %v4647_v25 = vmul.f32 0.041666668, %v4646_v39 }
0x1431   :  { %v4648_v40 = vsub.f32 %v4640_v31, %v4647_v25  ;;  %v7458_v31 = vld [vmem:[#allocation2 + $0xce0] sm:$0xff]  }
0x1432   :  { %6980 = vmatpush3.bf16.msra.mxu0 %v7458_v31 }
0x1433   :  { %v4649_v41 = vmul.f32 %v7861_v60, %v4648_v40  ;;  %v5080_v60 = vpop.f32.mrb[64].mxu0  ;;  %6981 = vmatprep.subr.bf16.mxu0 %v7581_v54 }
0x1434   :  { %v6949_v45 = vpop.f32.mrb[65].mxu0  ;;  %v5081_v7 = vadd.f32 %v6022_v5, %v5080_v60  ;;  %v7466_v60 = vld [vmem:[#allocation2 + $0xd20] sm:$0xff]  }
0x1435   :  { %v4650_v42 = vmul.f32 %v4649_v41, %v4649_v41  ;;  %v5083_v52 = vpop.f32.mrb[66].mxu0  ;;  %v7467_v45 = vld [vmem:[#allocation2 + $0xd28] sm:$0xff]   ;;  %v6051_v5 = vld [vmem:[#allocation5 + $0x20] ss:$0 sm:$0xff] }
0x1436   :  { %v6950_v53 = vpop.f32.mrb[67].mxu0  ;;  %v5086_v9 = vpack.c.bf16 %v5081_v7, %v5081_v7  ;;  %6982 = vmatpush3.bf16.msra.mxu0 %v7459_v32  ;;  %v7468_v52 = vld [vmem:[#allocation2 + $0xd30] sm:$0xff]  }
0x1437   :  { %v4651_v43 = vsel %vm2593_vm2, %v4650_v42, 0.0  ;;  %6983 = vmatprep.subr.bf16.mxu0 %v7581_v54  ;;  %v6041_v42 = vld [vmem:[#allocation5 + $0x1e] ss:$0 sm:$0xff] }
0x1438   :  { %4652 = vadd.xlane.f32.xlu1 %v4651_v43  ;;  %v7469_v53 = vld [vmem:[#allocation2 + $0xd38] sm:$0xff]  }
0x143a   :  { %6984 = vmatpush3.bf16.msra.mxu0 %v7460_v33  ;;  %v6060_v33 = vld [vmem:[#allocation5 + $0x21] ss:$0 sm:$0xff] }
0x143b   :  { %6985 = vmatprep.subr.bf16.mxu0 %v7581_v54 }
0x143e   :  { %6986 = vmatpush3.bf16.msra.mxu0 %v7461_v35 }
0x14c5   :  { %v4653_v55 = vpop.xlane.xlu1 %4652 }
0x14c6   :  { %v4654_v23 = vmul.f32 0.041666668, %v4653_v55  ;;  %v6042_v55 = vld [vmem:[#allocation5 + $0x1f] ss:$0 sm:$0xff] }
0x14c8   :  { %v4655_v56 = vadd.f32 1e-05, %v4654_v23 }
0x14ca   :  { %7494 = vrsqrt.f32 %v4655_v56 }
0x14d4   :  { %v7495_v57 = vpop.eup %7494 }
0x14d5   :  { %v4657_v58 = vmul.f32 %v7495_v57, %v4648_v40  ;;  %v6040_v40 = vld [vmem:[#allocation5 + $0x1d] ss:$0 sm:$0xff] }
0x14d7   :  { %v4662_v61 = vmul.f32 %v5993_v50, %v4657_v58 }
0x14d9   :  { %v4667_v62 = vadd.f32 %v5994_v59, %v4662_v61 }
0x14db   :  { %v4668_v0 = vpack.c.bf16 %v4667_v62, %v4667_v62 }
0x14dd   :  { %6928 = vmatmul.mubr.bf16.vlgmr.msra.gmra.mrb[40].mxu1 %v4668_v0 }
0x14de   :  { %6952 = vmatpush3.bf16.msra.mxu1 %v7446_v63  ;;  %6967 = vmatprep.mubr.msk.bf16.mxu1 %vm7582_vm0, %v7581_v54 }
0x14df   :  { %6953 = vmatprep.subr.bf16.mxu1 %v7581_v54 }
0x14e2   :  { %6954 = vmatpush3.bf16.msra.mxu1 %v7447_v1 }
0x14e3   :  { %6955 = vmatprep.subr.bf16.mxu1 %v7581_v54 }
0x14e6   :  { %6956 = vmatpush3.bf16.msra.mxu1 %v7448_v2 }
0x14e7   :  { %6957 = vmatprep.subr.bf16.mxu1 %v7581_v54 }
0x14ea   :  { %6958 = vmatpush3.bf16.msra.mxu1 %v7449_v3 }
0x14eb   :  { %6959 = vmatprep.subr.bf16.mxu1 %v7581_v54 }
0x14ee   :  { %6960 = vmatpush3.bf16.msra.mxu1 %v7450_v34 }
0x14ef   :  { %6961 = vmatprep.subr.bf16.mxu1 %v7581_v54 }
0x14f2   :  { %6962 = vmatpush3.bf16.msra.mxu1 %v7451_v4 }
0x14f3   :  { %6963 = vmatprep.subr.bf16.mxu1 %v7581_v54 }
0x14f6   :  { %6964 = vmatpush3.bf16.msra.mxu1 %v7452_v6 }
0x14f7   :  { %6965 = vmatprep.subr.bf16.mxu1 %v7581_v54 }
0x14fa   :  { %6966 = vmatpush3.bf16.msra.mxu1 %v7453_v8 }
0x14fb   :  { %6991 = vmatprep.subr.bf16.mxu1 %v7581_v54 }
0x14fd   :  { %6968 = vmatmul.mubr.bf16.vlgmr.msra.gmra.mrb[60].mxu1 %v5086_v9 }
0x14fe   :  { %7007 = vmatprep.mubr.msk.bf16.mxu1 %vm7582_vm0, %v7581_v54  ;;  %6992 = vmatpush3.bf16.msra.mxu1 %v7462_v36  ;;  %v6061_v36 = vld [vmem:[#allocation5 + $0x22] ss:$0 sm:$0xff] }
0x14ff   :  { %6993 = vmatprep.subr.bf16.mxu1 %v7581_v54 }
0x1502   :  { %6994 = vmatpush3.bf16.msra.mxu1 %v7463_v48 }
0x1503   :  { %6995 = vmatprep.subr.bf16.mxu1 %v7581_v54 }
0x1506   :  { %6996 = vmatpush3.bf16.msra.mxu1 %v7464_v49 }
0x1507   :  { %6997 = vmatprep.subr.bf16.mxu1 %v7581_v54 }
0x150a   :  { %6998 = vmatpush3.bf16.msra.mxu1 %v7465_v51 }
0x150b   :  { %6999 = vmatprep.subr.bf16.mxu1 %v7581_v54 }
0x150e   :  { %7000 = vmatpush3.bf16.msra.mxu1 %v7466_v60 }
0x150f   :  { %7001 = vmatprep.subr.bf16.mxu1 %v7581_v54 }
0x1512   :  { %7002 = vmatpush3.bf16.msra.mxu1 %v7467_v45 }
0x1513   :  { %7003 = vmatprep.subr.bf16.mxu1 %v7581_v54 }
0x1516   :  { %7004 = vmatpush3.bf16.msra.mxu1 %v7468_v52 }
0x1517   :  { %7005 = vmatprep.subr.bf16.mxu1 %v7581_v54 }
0x151a   :  { %7006 = vmatpush3.bf16.msra.mxu1 %v7469_v53 }
0x151b   :  { %7011 = vmatprep.subr.bf16.mxu1 %v7581_v54 }
0x15d0   :  { %v5190_v11 = vpop.f32.mrb[60].mxu1 }
0x15d1   :  { %v5191_v12 = vadd.f32 %v6031_v10, %v5190_v11  ;;  %v6969_v13 = vpop.f32.mrb[61].mxu1 }
0x15d2   :  { %v5193_v14 = vpop.f32.mrb[62].mxu1 }
0x15d3   :  { %v5196_v16 = vadd.f32 %v5191_v12, %v7903_v22  ;;  %v6970_v17 = vpop.f32.mrb[63].mxu1  ;;  %v7470_v14 = vld [vmem:[#allocation2 + $0xc00] sm:$0xff]  }
0x15d5   :  { %v5199_v18 = vmul.f32 %v7937_v15, %v5196_v16 }
0x15d7   :  { %v5200_v19 = vsel %vm2593_vm2, %v5199_v18, 0.0 }
0x15d8   :  { %5201 = vadd.xlane.f32.xlu0 %v5200_v19 }
0x1665   :  { %v5202_v44 = vpop.xlane.xlu0 %5201 }
0x1666   :  { %v5203_v24 = vmul.f32 0.0625, %v5202_v44 }
0x1668   :  { %v5204_v26 = vsub.f32 %v5196_v16, %v5203_v24  ;;  %v7471_v16 = vld [vmem:[#allocation2 + $0xc08] sm:$0xff]   ;;  %v7472_v24 = vld [vmem:[#allocation2 + $0xc10] sm:$0xff]  }
0x166a   :  { %v5205_v27 = vmul.f32 %v7937_v15, %v5204_v26 }
0x166c   :  { %v5206_v22 = vmul.f32 %v5205_v27, %v5205_v27  ;;  %v7474_v27 = vld [vmem:[#allocation2 + $0xc20] sm:$0xff]  }
0x166e   :  { %v5207_v28 = vsel %vm2593_vm2, %v5206_v22, 0.0  ;;  %v7475_v22 = vld [vmem:[#allocation2 + $0xc28] sm:$0xff]  }
0x166f   :  { %5208 = vadd.xlane.f32.xlu1 %v5207_v28  ;;  %v7477_v28 = vld [vmem:[#allocation2 + $0xc38] sm:$0xff]  }
0x16fc   :  { %v5209_v37 = vpop.xlane.xlu1 %5208 }
0x16fd   :  { %v5210_v38 = vmul.f32 0.0625, %v5209_v37 }
0x16ff   :  { %v5211_v39 = vadd.f32 1e-05, %v5210_v38 }
0x1701   :  { %7496 = vrsqrt.f32 %v5211_v39 }
0x170b   :  { %v7497_v25 = vpop.eup %7496 }
0x170c   :  { %v5213_v41 = vmul.f32 %v7497_v25, %v5204_v26  ;;  %v7473_v26 = vld [vmem:[#allocation2 + $0xc18] sm:$0xff]   ;;  %v5896_v25 = vld [vmem:[#allocation5 + $0x23] ss:$0 sm:$0xff] }
0x170e   :  { %v5218_v43 = vmul.f32 %v6040_v40, %v5213_v41 }
0x1710   :  { %v5223_v46 = vadd.f32 %v6041_v42, %v5218_v43 }
0x1712   :  { %v5224_v47 = vpack.c.bf16 %v5223_v46, %v5223_v46 }
0x1714   :  { %6988 = vmatmul.mubr.bf16.vlgmr.msra.gmra.mrb[68].mxu0 %v5224_v47 }
0x17e7   :  { %v5328_v23 = vpop.f32.mrb[68].mxu0 }
0x17e8   :  { %v5329_v56 = vadd.f32 %v6042_v55, %v5328_v23  ;;  %v6989_v57 = vpop.f32.mrb[69].mxu0 }
0x17e9   :  { %v5331_v50 = vpop.f32.mrb[70].mxu0 }
0x17ea   :  { %v5335_v58 = vmul.f32 0.044715, %v5329_v56  ;;  %v6990_v59 = vpop.f32.mrb[71].mxu0  ;;  %v5334_v2 = vmul.f32 0.5, %v5329_v56 }
0x17ec   :  { %v5336_v61 = vmul.f32 %v5335_v58, %v5329_v56 }
0x17ee   :  { %v5337_v62 = vmul.f32 %v5336_v61, %v5329_v56 }
0x17f0   :  { %v5338_v63 = vadd.f32 %v5337_v62, %v5329_v56 }
0x17f2   :  { %v5339_v0 = vmul.f32 0.7978846, %v5338_v63 }
0x17f4   :  { %7498 = vtanh.f32 %v5339_v0 }
0x17fe   :  { %v7499_v1 = vpop.eup %7498 }
0x17ff   :  { %v5341_v3 = vadd.f32 1.0, %v7499_v1 }
0x1801   :  { %v5342_v34 = vmul.f32 %v5341_v3, %v5334_v2 }
0x1803   :  { %v5343_v4 = vpack.c.bf16 %v5342_v34, %v5342_v34 }
0x1805   :  { %7008 = vmatmul.mubr.bf16.vlgmr.msra.gmra.mrb[64].mxu1 %v5343_v4 }
0x1806   :  { %7027 = vmatprep.mubr.msk.bf16.mxu1 %vm7582_vm0, %v7581_v54  ;;  %7012 = vmatpush3.bf16.msra.mxu1 %v7470_v14 }
0x1807   :  { %7013 = vmatprep.subr.bf16.mxu1 %v7581_v54 }
0x180a   :  { %7014 = vmatpush3.bf16.msra.mxu1 %v7471_v16 }
0x180b   :  { %7015 = vmatprep.subr.bf16.mxu1 %v7581_v54 }
0x180e   :  { %7016 = vmatpush3.bf16.msra.mxu1 %v7472_v24 }
0x180f   :  { %7017 = vmatprep.subr.bf16.mxu1 %v7581_v54 }
0x1812   :  { %7018 = vmatpush3.bf16.msra.mxu1 %v7473_v26 }
0x1813   :  { %7019 = vmatprep.subr.bf16.mxu1 %v7581_v54 }
0x1816   :  { %7020 = vmatpush3.bf16.msra.mxu1 %v7474_v27 }
0x1817   :  { %7021 = vmatprep.subr.bf16.mxu1 %v7581_v54 }
0x181a   :  { %7022 = vmatpush3.bf16.msra.mxu1 %v7475_v22 }
0x181b   :  { %7023 = vmatprep.subr.bf16.mxu1 %v7581_v54 }
0x18d8   :  { %v5447_v6 = vpop.f32.mrb[64].mxu1 }
0x18d9   :  { %v5448_v7 = vadd.f32 %v6051_v5, %v5447_v6  ;;  %v7009_v8 = vpop.f32.mrb[65].mxu1 }
0x18da   :  { %v5450_v9 = vpop.f32.mrb[66].mxu1 }
0x18db   :  { %v5453_v10 = vadd.f32 %v5448_v7, %v5223_v46  ;;  %v7010_v11 = vpop.f32.mrb[67].mxu1 }
0x18dd   :  { %v5456_v12 = vmul.f32 %v7937_v15, %v5453_v10 }
0x18df   :  { %v5457_v13 = vsel %vm2593_vm2, %v5456_v12, 0.0 }
0x18e0   :  { %5458 = vadd.xlane.f32.xlu0 %v5457_v13 }
0x196d   :  { %v5459_v17 = vpop.xlane.xlu0 %5458 }
0x196e   :  { %v5460_v18 = vmul.f32 0.0625, %v5459_v17 }
0x1970   :  { %v5461_v19 = vsub.f32 %v5453_v10, %v5460_v18 }
0x1972   :  { %v5462_v20 = vmul.f32 %v7937_v15, %v5461_v19  ;;  %v7476_v15 = vld [vmem:[#allocation2 + $0xc30] sm:$0xff]  }
0x1973   :  { %7024 = vmatpush3.bf16.msra.mxu1 %v7476_v15 }
0x1974   :  { %v5463_v21 = vmul.f32 %v5462_v20, %v5462_v20  ;;  %7025 = vmatprep.subr.bf16.mxu1 %v7581_v54 }
0x1976   :  { %v5464_v44 = vsel %vm2593_vm2, %v5463_v21, 0.0 }
0x1977   :  { %5465 = vadd.xlane.f32.xlu1 %v5464_v44  ;;  %7026 = vmatpush3.bf16.msra.mxu1 %v7477_v28 }
0x1a04   :  { %v5466_v29 = vpop.xlane.xlu1 %5465 }
0x1a05   :  { %v5467_v30 = vmul.f32 0.0625, %v5466_v29 }
0x1a07   :  { %v5468_v31 = vadd.f32 1e-05, %v5467_v30 }
0x1a09   :  { %7500 = vrsqrt.f32 %v5468_v31 }
0x1a13   :  { %v7501_v32 = vpop.eup %7500 }
0x1a14   :  { %v5470_v35 = vmul.f32 %v7501_v32, %v5461_v19 }
0x1a16   :  { %v5475_v37 = vmul.f32 %v6060_v33, %v5470_v35 }
0x1a18   :  { %v5480_v38 = vadd.f32 %v6061_v36, %v5475_v37 }
0x1a1a   :  { %v5481_v39 = vpack.c.bf16 %v5480_v38, %v5480_v38 }
0x1a1c   :  { %7028 = vmatmul.mubr.bf16.vlgmr.msra.gmra.mrb[40].mxu1 %v5481_v39 }
0x1aef   :  { %v5580_v40 = vpop.f32.mrb[40].mxu1 }
0x1af0   :  { %v7031_v41 = vadd.f32 %v5896_v25, %v5580_v40  ;;  %v7029_v54 = vpop.f32.mrb[41].mxu1 }
0x1af1   :  { %v5583_v42 = vpop.f32.mrb[42].mxu1 }
0x1af2   :  { %v7030_v43 = vpop.f32.mrb[43].mxu1  ;;  %5588 = vst.msk [vmem:[#allocation7] sm:$0x3] %vm5587_vm5, %v7031_v41 }
0x1af3   :  { %7557 = shalt.err (!%p7554_p6)
}
0x1af4   :  { %s7558_s27 = scalar_lea.hbm %s7987_s3, 32 }
0x1af5   :  { %p7559_p7 = scmp.ne.s32.totalorder %s7987_s3, %s7558_s27  ;;  %p7562_p8 = scmp.lt.u32.totalorder %s7558_s27, %s7987_s3 }
0x1af7   :  { %p7564_p9 = pnand %p7562_p8, %p7559_p7 }
0x1af9   :  { %7567 = shalt.err (!%p7564_p9)
}
0x1afa   :  { %5598 = dma.vmem_to_hbm [thread:$0]  %s5596_s23, 32, %s7987_s3, [#allocation4]  }
0x1afb   :  { %7572 = dma.done.wait [#allocation4], 32  }
0x1afc   :  { %7573 = vsyncadd [#allocation4], 4294967264 }
0x1afd   :  { %5602 = vsyncpa [#allocation3], 1 }
0x1afe   :  { %5603 = vsyncpa [#allocation6], 1 }
0x1aff   :  { %5604 = vsyncpa [#allocation4], 1 }

</bundles_post_ra>
